<compile_context>
chip_gen: v5e
topology: v5e:2x2
jax: 0.10.0
libtpu: 0.0.40
codegen_flags: <defaults>
</compile_context>

<pallas_src>
import math

import numpy as np

import jax
import jax.numpy as jnp
from jax.experimental import pallas as pl
from jax.experimental.pallas import tpu as pltpu


# ------------------------------ fused kernel ---------------------------------

def _make_kernel(couts):
    """Build the fused forward kernel; `couts` = conv out-channels of the four
    conv+pool blocks (static -> lane-roll amounts)."""
    f32 = jnp.float32
    bf16 = jnp.bfloat16

    def kernel(*refs):
        out_ref, pred_ref = refs[-2], refs[-1]
        x_ref, ops = refs[0], refs[1:-2]

        x = x_ref[...]                                   # (B*H, W*Cin) f32 slab
        idx = 0
        for cout in couts:
            wgp, cb, rmask, cmask, rg = ops[idx:idx + 5]
            idx += 5
            rows = x.shape[0]
            n = wgp.shape[1] // 3
            # ---- Conv 3x3 (s=1, p=1) + ReLU: one wide bf16 MXU matmul over the
            # three concatenated vertical taps; vertical shifts via XLU row-rolls
            # + VPU 0/1 masks (no shift matmuls).
            y = jnp.dot(x.astype(bf16), wgp[...], preferred_element_type=f32)
            y0, y1, y2 = y[:, :n], y[:, n:2 * n], y[:, 2 * n:]
            m_first = rmask[0]          # (rows,1): 0 at first row of each image
            m_last = rmask[1]           # (rows,1): 0 at last  row of each image
            a = y1
            a = a + pltpu.roll(y0, shift=1, axis=0) * m_first          # y0[i-1]
            a = a + pltpu.roll(y2, shift=rows - 1, axis=0) * m_last    # y2[i+1]
            a = jnp.maximum(a + cb[...], 0.0)            # (rows, W*Co), post-ReLU
            # TODO(synk): nn.Dropout(p=0.5) after conv2/conv4 is identity at inference.

            # ---- MaxPool2d(3, s=2, p=1) (+ trailing ReLU == identity, a >= 0).
            # Vertical 3-tap max via row rolls (zero-mask == -inf pad since a>=0),
            # then ONE stride-2 row-gather matmul.
            vmax = jnp.maximum(a, jnp.maximum(
                pltpu.roll(a, shift=1, axis=0) * m_first,
                pltpu.roll(a, shift=rows - 1, axis=0) * m_last))
            r = jnp.dot(rg[...], vmax.astype(bf16), preferred_element_type=f32)
            # Horizontal 3-tap max via lane rolls by Cout; the stride-2 column
            # selection is folded into the NEXT conv's weight matrix (exact).
            wc = r.shape[1]
            c_first = cmask[0]          # (1,wc): 0 on first Cout lanes
            c_last = cmask[1]           # (1,wc): 0 on last  Cout lanes
            x = jnp.maximum(r, jnp.maximum(
                pltpu.roll(r, shift=cout, axis=1) * c_first,
                pltpu.roll(r, shift=wc - cout, axis=1) * c_last))

        # ---- conv5 at H=W=1: only the centre tap contributes (pool4's column
        # selection already folded into its weights) -> single matmul + ReLU.
        wgp5, cb5 = ops[idx], ops[idx + 1]
        idx += 2
        feat = jnp.dot(x.astype(bf16), wgp5[...], preferred_element_type=f32)
        feat = jnp.maximum(feat + cb5[...], 0.0)         # (B, 128) == NCHW flatten (H=W=1)

        # ---- FC head (bf16 weights, f32 accumulation).
        fc1w, fc1b, fc2w, fc2b = ops[idx:idx + 4]
        h = jnp.dot(feat.astype(bf16), fc1w[...], preferred_element_type=f32) + fc1b[...]
        h = jnp.maximum(h, 0.0)
        out = jnp.dot(h.astype(bf16), fc2w[...], preferred_element_type=f32) + fc2b[...]
        out_ref[...] = out

        # ---- F.cosine_similarity between the two branch halves: the swap is a
        # row roll by half the padded batch (XLU) -> no swap matmul/operand.
        half = out.shape[0] // 2
        other = pltpu.roll(out, shift=half, axis=0)
        dots = jnp.sum(out * other, axis=-1, keepdims=True)
        n1 = jnp.sum(out * out, axis=-1, keepdims=True)
        n2 = jnp.sum(other * other, axis=-1, keepdims=True)
        eps2 = jnp.float32(1e-16)   # == eps^2, eps=1e-8 (PyTorch per-norm clamp)
        inv = jax.lax.rsqrt(jnp.maximum(n1, eps2)) * jax.lax.rsqrt(jnp.maximum(n2, eps2))
        pred_ref[...] = jnp.broadcast_to(dots * inv, pred_ref.shape)   # lane-dense store

    return kernel


# ----------------------- one-time operand preparation ------------------------

def prepare_operands(params, batch_per_branch, size):
    """Precompute (once, on host) the fused-kernel operands.

    Per conv+pool block: banded conv weight slab concatenated over the three
    vertical taps (with the previous pool's stride-2 column selection folded
    in), tiled bias row, row/lane boundary masks, stride-2 row-gather matrix.
    Then conv5 centre-tap weights and FC weights/biases (bf16 weights, f32 bias).
    Returns (operands, couts, P) with P = padded per-branch batch (2P % 8 == 0)."""
    P = -(-batch_per_branch // 4) * 4          # each branch padded -> 2P multiple of 8
    B = 2 * P
    convs = params["convs"]
    consts, couts = [], []
    H = size
    pending_ps = None                          # column selection to fold into next conv
    n_conv = len(convs)
    for l, (w, bias) in enumerate(convs):      # w: (3, 3, Cin, Cout)
        w = np.asarray(w, np.float32)
        bias = np.asarray(bias, np.float32)
        Ci, Co = int(w.shape[2]), int(w.shape[3])
        Wd = H
        last = (l == n_conv - 1)
        if last:
            wg = w[1, 1]                       # H=W=1: only the centre tap survives
        else:
            per_dy = []
            for dy in range(3):                # banded matrix folding dx taps + channels
                m = np.zeros((Wd * Ci, Wd * Co), np.float32)
                for dx in range(3):
                    for j in range(Wd):
                        jp = j + dx - 1
                        if 0 <= jp < Wd:
                            m[jp * Ci:(jp + 1) * Ci, j * Co:(j + 1) * Co] += w[dy, dx]
                per_dy.append(m)
            wg = np.concatenate(per_dy, axis=1)            # (Wd*Ci, 3*Wd*Co)
        if pending_ps is not None:
            wg = pending_ps @ wg               # fold previous pool's stride-2 column select
        consts.append(jnp.asarray(wg, jnp.bfloat16))
        consts.append(jnp.asarray(np.tile(bias, Wd)[None, :], jnp.float32))   # (1, Wd*Co)

        if last:
            break
        couts.append(Co)
        rows = B * H
        g = np.arange(rows) % H
        rmask = np.stack([(g != 0), (g != H - 1)]).astype(np.float32)[:, :, None]
        consts.append(jnp.asarray(rmask))                  # (2, rows, 1)
        wc = Wd * Co
        lane = np.arange(wc)
        cmask = np.stack([(lane >= Co), (lane < wc - Co)]).astype(np.float32)[:, None, :]
        consts.append(jnp.asarray(cmask))                  # (2, 1, wc)
        Ho = (H + 2 - 3) // 2 + 1
        R = np.zeros((Ho, H), np.float32)
        for io in range(Ho):
            R[io, 2 * io] = 1.0                            # pooled row io <- vmax row 2*io
        consts.append(jnp.asarray(np.kron(np.eye(B, dtype=np.float32), R), jnp.bfloat16))
        Wo = Ho
        Csel = np.zeros((Wd * Co, Wo * Co), np.float32)
        for jo in range(Wo):
            Csel[2 * jo * Co:(2 * jo + 1) * Co, jo * Co:(jo + 1) * Co] = np.eye(Co, dtype=np.float32)
        pending_ps = Csel                                  # deferred: folded into next conv
        H = O = Ho

    consts.extend([
        jnp.asarray(params["fc1_w"], jnp.bfloat16),
        jnp.asarray(params["fc1_b"], jnp.float32).reshape(1, -1),
        jnp.asarray(params["fc2_w"], jnp.bfloat16),
        jnp.asarray(params["fc2_b"], jnp.float32).reshape(1, -1),
    ])
    return tuple(consts), tuple(couts), P


# ------------------------------ parameters ------------------------------------

def init_params(key, size=16, l1=8, l2=16, l3=32, l4=64, l5=128,
                fc_units1=1024, fc_units2=128):
    """kaiming_normal_(mode='fan_out', nonlinearity='relu') weights,
    PyTorch-default uniform biases.  Deterministic via PRNGKey."""
    ls = [1, l1, l2, l3, l4, l5]
    keys = jax.random.split(key, 14)
    ki = 0
    convs = []
    for i in range(5):
        cin, cout = ls[i], ls[i + 1]
        std = math.sqrt(2.0 / (cout * 9))                 # fan_out = Cout*k*k
        w = std * jax.random.normal(keys[ki], (3, 3, cin, cout), jnp.float32); ki += 1
        bound = 1.0 / math.sqrt(cin * 9)                  # default bias init
        b = jax.random.uniform(keys[ki], (cout,), jnp.float32, -bound, bound); ki += 1
        convs.append((w, b))

    spatial = size // 16                                  # 4 stride-2 pools
    fc_in = l5 * spatial * spatial
    std1 = math.sqrt(2.0 / fc_units1)                     # fan_out = out_features
    fc1_w = std1 * jax.random.normal(keys[ki], (fc_in, fc_units1), jnp.float32); ki += 1
    b1 = 1.0 / math.sqrt(fc_in)
    fc1_b = jax.random.uniform(keys[ki], (fc_units1,), jnp.float32, -b1, b1); ki += 1
    std2 = math.sqrt(2.0 / fc_units2)
    fc2_w = std2 * jax.random.normal(keys[ki], (fc_units1, fc_units2), jnp.float32); ki += 1
    b2 = 1.0 / math.sqrt(fc_units1)
    fc2_b = jax.random.uniform(keys[ki], (fc_units2,), jnp.float32, -b2, b2); ki += 1

    return {"convs": convs, "fc1_w": fc1_w, "fc1_b": fc1_b,
            "fc2_w": fc2_w, "fc2_b": fc2_b}


# -------------------------------- forward -------------------------------------

def make_forward(couts, P, size, out_features):
    rows_out = 2 * P
    vmem = pl.BlockSpec(memory_space=pltpu.MemorySpace.VMEM)
    kernel = _make_kernel(couts)
    n_ops = 5 * len(couts) + 2 + 4

    call = pl.pallas_call(
        kernel,
        out_shape=(jax.ShapeDtypeStruct((rows_out, out_features), jnp.float32),
                   jax.ShapeDtypeStruct((rows_out, out_features), jnp.float32)),
        in_specs=[vmem] * (1 + n_ops),
        out_specs=(vmem, vmem),
    )
    # Grid-less on purpose: total VMEM residency < 1 MiB on every generation; a
    # grid / second-TensorCore split only pays off at much larger batch.

    @jax.jit
    def forward(input1, input2, operands):
        b = input1.shape[0]
        x1 = jnp.zeros((P, 1, size, size), jnp.float32).at[:b].set(input1.astype(jnp.float32))
        x2 = jnp.zeros((P, 1, size, size), jnp.float32).at[:b].set(input2.astype(jnp.float32))
        x0 = jnp.concatenate([x1, x2], axis=0).reshape(rows_out * size, size)   # (2P*H, W)
        out, pred_full = call(x0, *operands)
        o1 = out[:b]
        o2 = out[P:P + b]
        # TODO(synk): data_setup.distance_function is external config; defaulting to
        # 'cosine' (F.cosine_similarity). 'euclid' would be pairwise L2 instead.
        pred = pred_full[:b, 0]
        return o1, o2, pred

    return forward


# ---------------------------------- main ---------------------------------------

if __name__ == "__main__":
    key = jax.random.PRNGKey(0)
    pkey, k1, k2 = jax.random.split(key, 3)

    size = 16      # TODO(synk): data_setup.input_size is external config; using 16.
    batch = 2
    params = init_params(pkey, size=size)
    operands, couts, P = prepare_operands(params, batch_per_branch=batch, size=size)
    forward = make_forward(couts, P, size, out_features=int(params["fc2_w"].shape[1]))

    input1 = jax.random.normal(k1, (batch, 1, size, size), jnp.float32)
    input2 = jax.random.normal(k2, (batch, 1, size, size), jnp.float32)

    o1, o2, pred = forward(input1, input2, operands)
    jax.block_until_ready((o1, o2, pred))

    assert o1.shape == (batch, 128) and o2.shape == (batch, 128) and pred.shape == (batch,)
    assert bool(jnp.all(jnp.isfinite(o1))) and bool(jnp.all(jnp.isfinite(o2)))
    assert bool(jnp.all(jnp.isfinite(pred)))
    assert bool(jnp.all(jnp.abs(pred) <= 1.0 + 1e-3))   # cosine similarity range
    print("KERNEL_OK")
</pallas_src>

<mosaic_0001>
module attributes {stable_mosaic.version = 11 : i64} {
  func.func @kernel(%arg0: memref<128x16xf32, #tpu.memory_space<vmem>>, %arg1: memref<16x384xbf16, #tpu.memory_space<vmem>>, %arg2: memref<1x128xf32, #tpu.memory_space<vmem>>, %arg3: memref<2x128x1xf32, #tpu.memory_space<vmem>>, %arg4: memref<2x1x128xf32, #tpu.memory_space<vmem>>, %arg5: memref<64x128xbf16, #tpu.memory_space<vmem>>, %arg6: memref<128x384xbf16, #tpu.memory_space<vmem>>, %arg7: memref<1x128xf32, #tpu.memory_space<vmem>>, %arg8: memref<2x64x1xf32, #tpu.memory_space<vmem>>, %arg9: memref<2x1x128xf32, #tpu.memory_space<vmem>>, %arg10: memref<32x64xbf16, #tpu.memory_space<vmem>>, %arg11: memref<128x384xbf16, #tpu.memory_space<vmem>>, %arg12: memref<1x128xf32, #tpu.memory_space<vmem>>, %arg13: memref<2x32x1xf32, #tpu.memory_space<vmem>>, %arg14: memref<2x1x128xf32, #tpu.memory_space<vmem>>, %arg15: memref<16x32xbf16, #tpu.memory_space<vmem>>, %arg16: memref<128x384xbf16, #tpu.memory_space<vmem>>, %arg17: memref<1x128xf32, #tpu.memory_space<vmem>>, %arg18: memref<2x16x1xf32, #tpu.memory_space<vmem>>, %arg19: memref<2x1x128xf32, #tpu.memory_space<vmem>>, %arg20: memref<8x16xbf16, #tpu.memory_space<vmem>>, %arg21: memref<128x128xbf16, #tpu.memory_space<vmem>>, %arg22: memref<1x128xf32, #tpu.memory_space<vmem>>, %arg23: memref<128x1024xbf16, #tpu.memory_space<vmem>>, %arg24: memref<1x1024xf32, #tpu.memory_space<vmem>>, %arg25: memref<1024x128xbf16, #tpu.memory_space<vmem>>, %arg26: memref<1x128xf32, #tpu.memory_space<vmem>>, %arg27: memref<8x128xf32, #tpu.memory_space<vmem>>, %arg28: memref<8x128xf32, #tpu.memory_space<vmem>>) attributes {dimension_semantics = [], scalar_prefetch = 0 : i64, scratch_operands = 0 : i64, tpu.core_type = #tpu.core_type<tc>} {
    %c0 = arith.constant 0 : index
    %c0_0 = arith.constant 0 : index
    %0 = vector.load %arg0[%c0, %c0_0] : memref<128x16xf32, #tpu.memory_space<vmem>>, vector<128x16xf32>
    %1 = arith.truncf %0 : vector<128x16xf32> to vector<128x16xbf16>
    %c0_1 = arith.constant 0 : index
    %c0_2 = arith.constant 0 : index
    %2 = vector.load %arg1[%c0_1, %c0_2] : memref<16x384xbf16, #tpu.memory_space<vmem>>, vector<16x384xbf16>
    %cst = arith.constant dense<0.000000e+00> : vector<128x384xf32>
    %3 = tpu.matmul %1, %2, %cst {dimension_numbers = #tpu.dot_dimension_numbers<[1], [0], [0], [1], [0, 0, 1, 1], [], []>} : vector<128x16xbf16>, vector<16x384xbf16>, vector<128x384xf32> -> vector<128x384xf32>
    %4 = vector.extract_strided_slice %3 {offsets = [0, 0], sizes = [128, 128], strides = [1, 1]} : vector<128x384xf32> to vector<128x128xf32>
    %5 = vector.extract_strided_slice %3 {offsets = [0, 128], sizes = [128, 128], strides = [1, 1]} : vector<128x384xf32> to vector<128x128xf32>
    %6 = vector.extract_strided_slice %3 {offsets = [0, 256], sizes = [128, 128], strides = [1, 1]} : vector<128x384xf32> to vector<128x128xf32>
    %c0_3 = arith.constant 0 : index
    %c0_4 = arith.constant 0 : index
    %c0_5 = arith.constant 0 : index
    %7 = vector.load %arg3[%c0_3, %c0_4, %c0_5] : memref<2x128x1xf32, #tpu.memory_space<vmem>>, vector<1x128x1xf32>
    %8 = vector.shape_cast %7 : vector<1x128x1xf32> to vector<128x1xf32>
    %c1 = arith.constant 1 : index
    %c0_6 = arith.constant 0 : index
    %c0_7 = arith.constant 0 : index
    %9 = vector.load %arg3[%c1, %c0_6, %c0_7] : memref<2x128x1xf32, #tpu.memory_space<vmem>>, vector<1x128x1xf32>
    %10 = vector.shape_cast %9 : vector<1x128x1xf32> to vector<128x1xf32>
    %c1_i32 = arith.constant 1 : i32
    %11 = tpu.dynamic_rotate %4 by %c1_i32 dim 0 : vector<128x128xf32>, i32 -> vector<128x128xf32>
    %12 = vector.broadcast %8 : vector<128x1xf32> to vector<128x128xf32>
    %13 = arith.mulf %11, %12 : vector<128x128xf32>
    %14 = arith.addf %5, %13 : vector<128x128xf32>
    %c127_i32 = arith.constant 127 : i32
    %15 = tpu.dynamic_rotate %6 by %c127_i32 dim 0 : vector<128x128xf32>, i32 -> vector<128x128xf32>
    %16 = vector.broadcast %10 : vector<128x1xf32> to vector<128x128xf32>
    %17 = arith.mulf %15, %16 : vector<128x128xf32>
    %18 = arith.addf %14, %17 : vector<128x128xf32>
    %c0_8 = arith.constant 0 : index
    %c0_9 = arith.constant 0 : index
    %19 = vector.load %arg2[%c0_8, %c0_9] : memref<1x128xf32, #tpu.memory_space<vmem>>, vector<1x128xf32>
    %20 = vector.broadcast %19 : vector<1x128xf32> to vector<128x128xf32>
    %21 = arith.addf %18, %20 : vector<128x128xf32>
    %cst_10 = arith.constant 0.000000e+00 : f32
    %22 = vector.broadcast %cst_10 : f32 to vector<128x128xf32>
    %23 = arith.maximumf %21, %22 : vector<128x128xf32>
    %c1_i32_11 = arith.constant 1 : i32
    %24 = tpu.dynamic_rotate %23 by %c1_i32_11 dim 0 : vector<128x128xf32>, i32 -> vector<128x128xf32>
    %25 = vector.broadcast %8 : vector<128x1xf32> to vector<128x128xf32>
    %26 = arith.mulf %24, %25 : vector<128x128xf32>
    %c127_i32_12 = arith.constant 127 : i32
    %27 = tpu.dynamic_rotate %23 by %c127_i32_12 dim 0 : vector<128x128xf32>, i32 -> vector<128x128xf32>
    %28 = vector.broadcast %10 : vector<128x1xf32> to vector<128x128xf32>
    %29 = arith.mulf %27, %28 : vector<128x128xf32>
    %30 = arith.maximumf %26, %29 : vector<128x128xf32>
    %31 = arith.maximumf %23, %30 : vector<128x128xf32>
    %c0_13 = arith.constant 0 : index
    %c0_14 = arith.constant 0 : index
    %32 = vector.load %arg5[%c0_13, %c0_14] : memref<64x128xbf16, #tpu.memory_space<vmem>>, vector<64x128xbf16>
    %33 = arith.truncf %31 : vector<128x128xf32> to vector<128x128xbf16>
    %cst_15 = arith.constant dense<0.000000e+00> : vector<64x128xf32>
    %34 = tpu.matmul %32, %33, %cst_15 {dimension_numbers = #tpu.dot_dimension_numbers<[1], [0], [0], [1], [0, 0, 1, 1], [], []>} : vector<64x128xbf16>, vector<128x128xbf16>, vector<64x128xf32> -> vector<64x128xf32>
    %c0_16 = arith.constant 0 : index
    %c0_17 = arith.constant 0 : index
    %c0_18 = arith.constant 0 : index
    %35 = vector.load %arg4[%c0_16, %c0_17, %c0_18] : memref<2x1x128xf32, #tpu.memory_space<vmem>>, vector<1x1x128xf32>
    %36 = vector.shape_cast %35 : vector<1x1x128xf32> to vector<1x128xf32>
    %c1_19 = arith.constant 1 : index
    %c0_20 = arith.constant 0 : index
    %c0_21 = arith.constant 0 : index
    %37 = vector.load %arg4[%c1_19, %c0_20, %c0_21] : memref<2x1x128xf32, #tpu.memory_space<vmem>>, vector<1x1x128xf32>
    %38 = vector.shape_cast %37 : vector<1x1x128xf32> to vector<1x128xf32>
    %c8_i32 = arith.constant 8 : i32
    %39 = tpu.dynamic_rotate %34 by %c8_i32 dim 1 : vector<64x128xf32>, i32 -> vector<64x128xf32>
    %40 = vector.broadcast %36 : vector<1x128xf32> to vector<64x128xf32>
    %41 = arith.mulf %39, %40 : vector<64x128xf32>
    %c120_i32 = arith.constant 120 : i32
    %42 = tpu.dynamic_rotate %34 by %c120_i32 dim 1 : vector<64x128xf32>, i32 -> vector<64x128xf32>
    %43 = vector.broadcast %38 : vector<1x128xf32> to vector<64x128xf32>
    %44 = arith.mulf %42, %43 : vector<64x128xf32>
    %45 = arith.maximumf %41, %44 : vector<64x128xf32>
    %46 = arith.maximumf %34, %45 : vector<64x128xf32>
    %47 = arith.truncf %46 : vector<64x128xf32> to vector<64x128xbf16>
    %c0_22 = arith.constant 0 : index
    %c0_23 = arith.constant 0 : index
    %48 = vector.load %arg6[%c0_22, %c0_23] : memref<128x384xbf16, #tpu.memory_space<vmem>>, vector<128x384xbf16>
    %cst_24 = arith.constant dense<0.000000e+00> : vector<64x384xf32>
    %49 = tpu.matmul %47, %48, %cst_24 {dimension_numbers = #tpu.dot_dimension_numbers<[1], [0], [0], [1], [0, 0, 1, 1], [], []>} : vector<64x128xbf16>, vector<128x384xbf16>, vector<64x384xf32> -> vector<64x384xf32>
    %50 = vector.extract_strided_slice %49 {offsets = [0, 0], sizes = [64, 128], strides = [1, 1]} : vector<64x384xf32> to vector<64x128xf32>
    %51 = vector.extract_strided_slice %49 {offsets = [0, 128], sizes = [64, 128], strides = [1, 1]} : vector<64x384xf32> to vector<64x128xf32>
    %52 = vector.extract_strided_slice %49 {offsets = [0, 256], sizes = [64, 128], strides = [1, 1]} : vector<64x384xf32> to vector<64x128xf32>
    %c0_25 = arith.constant 0 : index
    %c0_26 = arith.constant 0 : index
    %c0_27 = arith.constant 0 : index
    %53 = vector.load %arg8[%c0_25, %c0_26, %c0_27] : memref<2x64x1xf32, #tpu.memory_space<vmem>>, vector<1x64x1xf32>
    %54 = vector.shape_cast %53 : vector<1x64x1xf32> to vector<64x1xf32>
    %c1_28 = arith.constant 1 : index
    %c0_29 = arith.constant 0 : index
    %c0_30 = arith.constant 0 : index
    %55 = vector.load %arg8[%c1_28, %c0_29, %c0_30] : memref<2x64x1xf32, #tpu.memory_space<vmem>>, vector<1x64x1xf32>
    %56 = vector.shape_cast %55 : vector<1x64x1xf32> to vector<64x1xf32>
    %c1_i32_31 = arith.constant 1 : i32
    %57 = tpu.dynamic_rotate %50 by %c1_i32_31 dim 0 : vector<64x128xf32>, i32 -> vector<64x128xf32>
    %58 = vector.broadcast %54 : vector<64x1xf32> to vector<64x128xf32>
    %59 = arith.mulf %57, %58 : vector<64x128xf32>
    %60 = arith.addf %51, %59 : vector<64x128xf32>
    %c63_i32 = arith.constant 63 : i32
    %61 = tpu.dynamic_rotate %52 by %c63_i32 dim 0 : vector<64x128xf32>, i32 -> vector<64x128xf32>
    %62 = vector.broadcast %56 : vector<64x1xf32> to vector<64x128xf32>
    %63 = arith.mulf %61, %62 : vector<64x128xf32>
    %64 = arith.addf %60, %63 : vector<64x128xf32>
    %c0_32 = arith.constant 0 : index
    %c0_33 = arith.constant 0 : index
    %65 = vector.load %arg7[%c0_32, %c0_33] : memref<1x128xf32, #tpu.memory_space<vmem>>, vector<1x128xf32>
    %66 = vector.broadcast %65 : vector<1x128xf32> to vector<64x128xf32>
    %67 = arith.addf %64, %66 : vector<64x128xf32>
    %cst_34 = arith.constant 0.000000e+00 : f32
    %68 = vector.broadcast %cst_34 : f32 to vector<64x128xf32>
    %69 = arith.maximumf %67, %68 : vector<64x128xf32>
    %c1_i32_35 = arith.constant 1 : i32
    %70 = tpu.dynamic_rotate %69 by %c1_i32_35 dim 0 : vector<64x128xf32>, i32 -> vector<64x128xf32>
    %71 = vector.broadcast %54 : vector<64x1xf32> to vector<64x128xf32>
    %72 = arith.mulf %70, %71 : vector<64x128xf32>
    %c63_i32_36 = arith.constant 63 : i32
    %73 = tpu.dynamic_rotate %69 by %c63_i32_36 dim 0 : vector<64x128xf32>, i32 -> vector<64x128xf32>
    %74 = vector.broadcast %56 : vector<64x1xf32> to vector<64x128xf32>
    %75 = arith.mulf %73, %74 : vector<64x128xf32>
    %76 = arith.maximumf %72, %75 : vector<64x128xf32>
    %77 = arith.maximumf %69, %76 : vector<64x128xf32>
    %c0_37 = arith.constant 0 : index
    %c0_38 = arith.constant 0 : index
    %78 = vector.load %arg10[%c0_37, %c0_38] : memref<32x64xbf16, #tpu.memory_space<vmem>>, vector<32x64xbf16>
    %79 = arith.truncf %77 : vector<64x128xf32> to vector<64x128xbf16>
    %cst_39 = arith.constant dense<0.000000e+00> : vector<32x128xf32>
    %80 = tpu.matmul %78, %79, %cst_39 {dimension_numbers = #tpu.dot_dimension_numbers<[1], [0], [0], [1], [0, 0, 1, 1], [], []>} : vector<32x64xbf16>, vector<64x128xbf16>, vector<32x128xf32> -> vector<32x128xf32>
    %c0_40 = arith.constant 0 : index
    %c0_41 = arith.constant 0 : index
    %c0_42 = arith.constant 0 : index
    %81 = vector.load %arg9[%c0_40, %c0_41, %c0_42] : memref<2x1x128xf32, #tpu.memory_space<vmem>>, vector<1x1x128xf32>
    %82 = vector.shape_cast %81 : vector<1x1x128xf32> to vector<1x128xf32>
    %c1_43 = arith.constant 1 : index
    %c0_44 = arith.constant 0 : index
    %c0_45 = arith.constant 0 : index
    %83 = vector.load %arg9[%c1_43, %c0_44, %c0_45] : memref<2x1x128xf32, #tpu.memory_space<vmem>>, vector<1x1x128xf32>
    %84 = vector.shape_cast %83 : vector<1x1x128xf32> to vector<1x128xf32>
    %c16_i32 = arith.constant 16 : i32
    %85 = tpu.dynamic_rotate %80 by %c16_i32 dim 1 : vector<32x128xf32>, i32 -> vector<32x128xf32>
    %86 = vector.broadcast %82 : vector<1x128xf32> to vector<32x128xf32>
    %87 = arith.mulf %85, %86 : vector<32x128xf32>
    %c112_i32 = arith.constant 112 : i32
    %88 = tpu.dynamic_rotate %80 by %c112_i32 dim 1 : vector<32x128xf32>, i32 -> vector<32x128xf32>
    %89 = vector.broadcast %84 : vector<1x128xf32> to vector<32x128xf32>
    %90 = arith.mulf %88, %89 : vector<32x128xf32>
    %91 = arith.maximumf %87, %90 : vector<32x128xf32>
    %92 = arith.maximumf %80, %91 : vector<32x128xf32>
    %93 = arith.truncf %92 : vector<32x128xf32> to vector<32x128xbf16>
    %c0_46 = arith.constant 0 : index
    %c0_47 = arith.constant 0 : index
    %94 = vector.load %arg11[%c0_46, %c0_47] : memref<128x384xbf16, #tpu.memory_space<vmem>>, vector<128x384xbf16>
    %cst_48 = arith.constant dense<0.000000e+00> : vector<32x384xf32>
    %95 = tpu.matmul %93, %94, %cst_48 {dimension_numbers = #tpu.dot_dimension_numbers<[1], [0], [0], [1], [0, 0, 1, 1], [], []>} : vector<32x128xbf16>, vector<128x384xbf16>, vector<32x384xf32> -> vector<32x384xf32>
    %96 = vector.extract_strided_slice %95 {offsets = [0, 0], sizes = [32, 128], strides = [1, 1]} : vector<32x384xf32> to vector<32x128xf32>
    %97 = vector.extract_strided_slice %95 {offsets = [0, 128], sizes = [32, 128], strides = [1, 1]} : vector<32x384xf32> to vector<32x128xf32>
    %98 = vector.extract_strided_slice %95 {offsets = [0, 256], sizes = [32, 128], strides = [1, 1]} : vector<32x384xf32> to vector<32x128xf32>
    %c0_49 = arith.constant 0 : index
    %c0_50 = arith.constant 0 : index
    %c0_51 = arith.constant 0 : index
    %99 = vector.load %arg13[%c0_49, %c0_50, %c0_51] : memref<2x32x1xf32, #tpu.memory_space<vmem>>, vector<1x32x1xf32>
    %100 = vector.shape_cast %99 : vector<1x32x1xf32> to vector<32x1xf32>
    %c1_52 = arith.constant 1 : index
    %c0_53 = arith.constant 0 : index
    %c0_54 = arith.constant 0 : index
    %101 = vector.load %arg13[%c1_52, %c0_53, %c0_54] : memref<2x32x1xf32, #tpu.memory_space<vmem>>, vector<1x32x1xf32>
    %102 = vector.shape_cast %101 : vector<1x32x1xf32> to vector<32x1xf32>
    %c1_i32_55 = arith.constant 1 : i32
    %103 = tpu.dynamic_rotate %96 by %c1_i32_55 dim 0 : vector<32x128xf32>, i32 -> vector<32x128xf32>
    %104 = vector.broadcast %100 : vector<32x1xf32> to vector<32x128xf32>
    %105 = arith.mulf %103, %104 : vector<32x128xf32>
    %106 = arith.addf %97, %105 : vector<32x128xf32>
    %c31_i32 = arith.constant 31 : i32
    %107 = tpu.dynamic_rotate %98 by %c31_i32 dim 0 : vector<32x128xf32>, i32 -> vector<32x128xf32>
    %108 = vector.broadcast %102 : vector<32x1xf32> to vector<32x128xf32>
    %109 = arith.mulf %107, %108 : vector<32x128xf32>
    %110 = arith.addf %106, %109 : vector<32x128xf32>
    %c0_56 = arith.constant 0 : index
    %c0_57 = arith.constant 0 : index
    %111 = vector.load %arg12[%c0_56, %c0_57] : memref<1x128xf32, #tpu.memory_space<vmem>>, vector<1x128xf32>
    %112 = vector.broadcast %111 : vector<1x128xf32> to vector<32x128xf32>
    %113 = arith.addf %110, %112 : vector<32x128xf32>
    %cst_58 = arith.constant 0.000000e+00 : f32
    %114 = vector.broadcast %cst_58 : f32 to vector<32x128xf32>
    %115 = arith.maximumf %113, %114 : vector<32x128xf32>
    %c1_i32_59 = arith.constant 1 : i32
    %116 = tpu.dynamic_rotate %115 by %c1_i32_59 dim 0 : vector<32x128xf32>, i32 -> vector<32x128xf32>
    %117 = vector.broadcast %100 : vector<32x1xf32> to vector<32x128xf32>
    %118 = arith.mulf %116, %117 : vector<32x128xf32>
    %c31_i32_60 = arith.constant 31 : i32
    %119 = tpu.dynamic_rotate %115 by %c31_i32_60 dim 0 : vector<32x128xf32>, i32 -> vector<32x128xf32>
    %120 = vector.broadcast %102 : vector<32x1xf32> to vector<32x128xf32>
    %121 = arith.mulf %119, %120 : vector<32x128xf32>
    %122 = arith.maximumf %118, %121 : vector<32x128xf32>
    %123 = arith.maximumf %115, %122 : vector<32x128xf32>
    %c0_61 = arith.constant 0 : index
    %c0_62 = arith.constant 0 : index
    %124 = vector.load %arg15[%c0_61, %c0_62] : memref<16x32xbf16, #tpu.memory_space<vmem>>, vector<16x32xbf16>
    %125 = arith.truncf %123 : vector<32x128xf32> to vector<32x128xbf16>
    %cst_63 = arith.constant dense<0.000000e+00> : vector<16x128xf32>
    %126 = tpu.matmul %124, %125, %cst_63 {dimension_numbers = #tpu.dot_dimension_numbers<[1], [0], [0], [1], [0, 0, 1, 1], [], []>} : vector<16x32xbf16>, vector<32x128xbf16>, vector<16x128xf32> -> vector<16x128xf32>
    %c0_64 = arith.constant 0 : index
    %c0_65 = arith.constant 0 : index
    %c0_66 = arith.constant 0 : index
    %127 = vector.load %arg14[%c0_64, %c0_65, %c0_66] : memref<2x1x128xf32, #tpu.memory_space<vmem>>, vector<1x1x128xf32>
    %128 = vector.shape_cast %127 : vector<1x1x128xf32> to vector<1x128xf32>
    %c1_67 = arith.constant 1 : index
    %c0_68 = arith.constant 0 : index
    %c0_69 = arith.constant 0 : index
    %129 = vector.load %arg14[%c1_67, %c0_68, %c0_69] : memref<2x1x128xf32, #tpu.memory_space<vmem>>, vector<1x1x128xf32>
    %130 = vector.shape_cast %129 : vector<1x1x128xf32> to vector<1x128xf32>
    %c32_i32 = arith.constant 32 : i32
    %131 = tpu.dynamic_rotate %126 by %c32_i32 dim 1 : vector<16x128xf32>, i32 -> vector<16x128xf32>
    %132 = vector.broadcast %128 : vector<1x128xf32> to vector<16x128xf32>
    %133 = arith.mulf %131, %132 : vector<16x128xf32>
    %c96_i32 = arith.constant 96 : i32
    %134 = tpu.dynamic_rotate %126 by %c96_i32 dim 1 : vector<16x128xf32>, i32 -> vector<16x128xf32>
    %135 = vector.broadcast %130 : vector<1x128xf32> to vector<16x128xf32>
    %136 = arith.mulf %134, %135 : vector<16x128xf32>
    %137 = arith.maximumf %133, %136 : vector<16x128xf32>
    %138 = arith.maximumf %126, %137 : vector<16x128xf32>
    %139 = arith.truncf %138 : vector<16x128xf32> to vector<16x128xbf16>
    %c0_70 = arith.constant 0 : index
    %c0_71 = arith.constant 0 : index
    %140 = vector.load %arg16[%c0_70, %c0_71] : memref<128x384xbf16, #tpu.memory_space<vmem>>, vector<128x384xbf16>
    %cst_72 = arith.constant dense<0.000000e+00> : vector<16x384xf32>
    %141 = tpu.matmul %139, %140, %cst_72 {dimension_numbers = #tpu.dot_dimension_numbers<[1], [0], [0], [1], [0, 0, 1, 1], [], []>} : vector<16x128xbf16>, vector<128x384xbf16>, vector<16x384xf32> -> vector<16x384xf32>
    %142 = vector.extract_strided_slice %141 {offsets = [0, 0], sizes = [16, 128], strides = [1, 1]} : vector<16x384xf32> to vector<16x128xf32>
    %143 = vector.extract_strided_slice %141 {offsets = [0, 128], sizes = [16, 128], strides = [1, 1]} : vector<16x384xf32> to vector<16x128xf32>
    %144 = vector.extract_strided_slice %141 {offsets = [0, 256], sizes = [16, 128], strides = [1, 1]} : vector<16x384xf32> to vector<16x128xf32>
    %c0_73 = arith.constant 0 : index
    %c0_74 = arith.constant 0 : index
    %c0_75 = arith.constant 0 : index
    %145 = vector.load %arg18[%c0_73, %c0_74, %c0_75] : memref<2x16x1xf32, #tpu.memory_space<vmem>>, vector<1x16x1xf32>
    %146 = vector.shape_cast %145 : vector<1x16x1xf32> to vector<16x1xf32>
    %c1_76 = arith.constant 1 : index
    %c0_77 = arith.constant 0 : index
    %c0_78 = arith.constant 0 : index
    %147 = vector.load %arg18[%c1_76, %c0_77, %c0_78] : memref<2x16x1xf32, #tpu.memory_space<vmem>>, vector<1x16x1xf32>
    %148 = vector.shape_cast %147 : vector<1x16x1xf32> to vector<16x1xf32>
    %c1_i32_79 = arith.constant 1 : i32
    %149 = tpu.dynamic_rotate %142 by %c1_i32_79 dim 0 : vector<16x128xf32>, i32 -> vector<16x128xf32>
    %150 = vector.broadcast %146 : vector<16x1xf32> to vector<16x128xf32>
    %151 = arith.mulf %149, %150 : vector<16x128xf32>
    %152 = arith.addf %143, %151 : vector<16x128xf32>
    %c15_i32 = arith.constant 15 : i32
    %153 = tpu.dynamic_rotate %144 by %c15_i32 dim 0 : vector<16x128xf32>, i32 -> vector<16x128xf32>
    %154 = vector.broadcast %148 : vector<16x1xf32> to vector<16x128xf32>
    %155 = arith.mulf %153, %154 : vector<16x128xf32>
    %156 = arith.addf %152, %155 : vector<16x128xf32>
    %c0_80 = arith.constant 0 : index
    %c0_81 = arith.constant 0 : index
    %157 = vector.load %arg17[%c0_80, %c0_81] : memref<1x128xf32, #tpu.memory_space<vmem>>, vector<1x128xf32>
    %158 = vector.broadcast %157 : vector<1x128xf32> to vector<16x128xf32>
    %159 = arith.addf %156, %158 : vector<16x128xf32>
    %cst_82 = arith.constant 0.000000e+00 : f32
    %160 = vector.broadcast %cst_82 : f32 to vector<16x128xf32>
    %161 = arith.maximumf %159, %160 : vector<16x128xf32>
    %c1_i32_83 = arith.constant 1 : i32
    %162 = tpu.dynamic_rotate %161 by %c1_i32_83 dim 0 : vector<16x128xf32>, i32 -> vector<16x128xf32>
    %163 = vector.broadcast %146 : vector<16x1xf32> to vector<16x128xf32>
    %164 = arith.mulf %162, %163 : vector<16x128xf32>
    %c15_i32_84 = arith.constant 15 : i32
    %165 = tpu.dynamic_rotate %161 by %c15_i32_84 dim 0 : vector<16x128xf32>, i32 -> vector<16x128xf32>
    %166 = vector.broadcast %148 : vector<16x1xf32> to vector<16x128xf32>
    %167 = arith.mulf %165, %166 : vector<16x128xf32>
    %168 = arith.maximumf %164, %167 : vector<16x128xf32>
    %169 = arith.maximumf %161, %168 : vector<16x128xf32>
    %c0_85 = arith.constant 0 : index
    %c0_86 = arith.constant 0 : index
    %170 = vector.load %arg20[%c0_85, %c0_86] : memref<8x16xbf16, #tpu.memory_space<vmem>>, vector<8x16xbf16>
    %171 = arith.truncf %169 : vector<16x128xf32> to vector<16x128xbf16>
    %cst_87 = arith.constant dense<0.000000e+00> : vector<8x128xf32>
    %172 = tpu.matmul %170, %171, %cst_87 {dimension_numbers = #tpu.dot_dimension_numbers<[1], [0], [0], [1], [0, 0, 1, 1], [], []>} : vector<8x16xbf16>, vector<16x128xbf16>, vector<8x128xf32> -> vector<8x128xf32>
    %c0_88 = arith.constant 0 : index
    %c0_89 = arith.constant 0 : index
    %c0_90 = arith.constant 0 : index
    %173 = vector.load %arg19[%c0_88, %c0_89, %c0_90] : memref<2x1x128xf32, #tpu.memory_space<vmem>>, vector<1x1x128xf32>
    %174 = vector.shape_cast %173 : vector<1x1x128xf32> to vector<1x128xf32>
    %c1_91 = arith.constant 1 : index
    %c0_92 = arith.constant 0 : index
    %c0_93 = arith.constant 0 : index
    %175 = vector.load %arg19[%c1_91, %c0_92, %c0_93] : memref<2x1x128xf32, #tpu.memory_space<vmem>>, vector<1x1x128xf32>
    %176 = vector.shape_cast %175 : vector<1x1x128xf32> to vector<1x128xf32>
    %c64_i32 = arith.constant 64 : i32
    %177 = tpu.dynamic_rotate %172 by %c64_i32 dim 1 : vector<8x128xf32>, i32 -> vector<8x128xf32>
    %178 = vector.broadcast %174 : vector<1x128xf32> to vector<8x128xf32>
    %179 = arith.mulf %177, %178 : vector<8x128xf32>
    %c64_i32_94 = arith.constant 64 : i32
    %180 = tpu.dynamic_rotate %172 by %c64_i32_94 dim 1 : vector<8x128xf32>, i32 -> vector<8x128xf32>
    %181 = vector.broadcast %176 : vector<1x128xf32> to vector<8x128xf32>
    %182 = arith.mulf %180, %181 : vector<8x128xf32>
    %183 = arith.maximumf %179, %182 : vector<8x128xf32>
    %184 = arith.maximumf %172, %183 : vector<8x128xf32>
    %185 = arith.truncf %184 : vector<8x128xf32> to vector<8x128xbf16>
    %c0_95 = arith.constant 0 : index
    %c0_96 = arith.constant 0 : index
    %186 = vector.load %arg21[%c0_95, %c0_96] : memref<128x128xbf16, #tpu.memory_space<vmem>>, vector<128x128xbf16>
    %cst_97 = arith.constant dense<0.000000e+00> : vector<8x128xf32>
    %187 = tpu.matmul %185, %186, %cst_97 {dimension_numbers = #tpu.dot_dimension_numbers<[1], [0], [0], [1], [0, 0, 1, 1], [], []>} : vector<8x128xbf16>, vector<128x128xbf16>, vector<8x128xf32> -> vector<8x128xf32>
    %c0_98 = arith.constant 0 : index
    %c0_99 = arith.constant 0 : index
    %188 = vector.load %arg22[%c0_98, %c0_99] : memref<1x128xf32, #tpu.memory_space<vmem>>, vector<1x128xf32>
    %189 = vector.broadcast %188 : vector<1x128xf32> to vector<8x128xf32>
    %190 = arith.addf %187, %189 : vector<8x128xf32>
    %cst_100 = arith.constant 0.000000e+00 : f32
    %191 = vector.broadcast %cst_100 : f32 to vector<8x128xf32>
    %192 = arith.maximumf %190, %191 : vector<8x128xf32>
    %193 = arith.truncf %192 : vector<8x128xf32> to vector<8x128xbf16>
    %c0_101 = arith.constant 0 : index
    %c0_102 = arith.constant 0 : index
    %194 = vector.load %arg23[%c0_101, %c0_102] : memref<128x1024xbf16, #tpu.memory_space<vmem>>, vector<128x1024xbf16>
    %cst_103 = arith.constant dense<0.000000e+00> : vector<8x1024xf32>
    %195 = tpu.matmul %193, %194, %cst_103 {dimension_numbers = #tpu.dot_dimension_numbers<[1], [0], [0], [1], [0, 0, 1, 1], [], []>} : vector<8x128xbf16>, vector<128x1024xbf16>, vector<8x1024xf32> -> vector<8x1024xf32>
    %c0_104 = arith.constant 0 : index
    %c0_105 = arith.constant 0 : index
    %196 = vector.load %arg24[%c0_104, %c0_105] : memref<1x1024xf32, #tpu.memory_space<vmem>>, vector<1x1024xf32>
    %197 = vector.broadcast %196 : vector<1x1024xf32> to vector<8x1024xf32>
    %198 = arith.addf %195, %197 : vector<8x1024xf32>
    %cst_106 = arith.constant 0.000000e+00 : f32
    %199 = vector.broadcast %cst_106 : f32 to vector<8x1024xf32>
    %200 = arith.maximumf %198, %199 : vector<8x1024xf32>
    %201 = arith.truncf %200 : vector<8x1024xf32> to vector<8x1024xbf16>
    %c0_107 = arith.constant 0 : index
    %c0_108 = arith.constant 0 : index
    %202 = vector.load %arg25[%c0_107, %c0_108] : memref<1024x128xbf16, #tpu.memory_space<vmem>>, vector<1024x128xbf16>
    %cst_109 = arith.constant dense<0.000000e+00> : vector<8x128xf32>
    %203 = tpu.matmul %201, %202, %cst_109 {dimension_numbers = #tpu.dot_dimension_numbers<[1], [0], [0], [1], [0, 0, 1, 1], [], []>} : vector<8x1024xbf16>, vector<1024x128xbf16>, vector<8x128xf32> -> vector<8x128xf32>
    %c0_110 = arith.constant 0 : index
    %c0_111 = arith.constant 0 : index
    %204 = vector.load %arg26[%c0_110, %c0_111] : memref<1x128xf32, #tpu.memory_space<vmem>>, vector<1x128xf32>
    %205 = vector.broadcast %204 : vector<1x128xf32> to vector<8x128xf32>
    %206 = arith.addf %203, %205 : vector<8x128xf32>
    %c0_112 = arith.constant 0 : index
    %c0_113 = arith.constant 0 : index
    %207 = vector.load %arg27[%c0_112, %c0_113] : memref<8x128xf32, #tpu.memory_space<vmem>>, vector<8x128xf32>
    tpu.vector_store %arg27[%c0_112, %c0_113], %206 {strides = array<i32>} : memref<8x128xf32, #tpu.memory_space<vmem>>, vector<8x128xf32>,
    %c4_i32 = arith.constant 4 : i32
    %208 = tpu.dynamic_rotate %206 by %c4_i32 dim 0 : vector<8x128xf32>, i32 -> vector<8x128xf32>
    %209 = arith.mulf %206, %208 : vector<8x128xf32>
    %cst_114 = arith.constant dense<0.000000e+00> : vector<8xf32>
    %210 = vector.multi_reduction <add>, %209, %cst_114 [1] : vector<8x128xf32> to vector<8xf32>
    %211 = vector.shape_cast %210 : vector<8xf32> to vector<8x1xf32>
    %212 = arith.mulf %206, %206 : vector<8x128xf32>
    %cst_115 = arith.constant dense<0.000000e+00> : vector<8xf32>
    %213 = vector.multi_reduction <add>, %212, %cst_115 [1] : vector<8x128xf32> to vector<8xf32>
    %214 = vector.shape_cast %213 : vector<8xf32> to vector<8x1xf32>
    %215 = arith.mulf %208, %208 : vector<8x128xf32>
    %cst_116 = arith.constant dense<0.000000e+00> : vector<8xf32>
    %216 = vector.multi_reduction <add>, %215, %cst_116 [1] : vector<8x128xf32> to vector<8xf32>
    %217 = vector.shape_cast %216 : vector<8xf32> to vector<8x1xf32>
    %cst_117 = arith.constant 1.000000e-16 : f32
    %218 = vector.broadcast %cst_117 : f32 to vector<8x1xf32>
    %219 = arith.maximumf %214, %218 : vector<8x1xf32>
    %220 = math.rsqrt %219 : vector<8x1xf32>
    %cst_118 = arith.constant 1.000000e-16 : f32
    %221 = vector.broadcast %cst_118 : f32 to vector<8x1xf32>
    %222 = arith.maximumf %217, %221 : vector<8x1xf32>
    %223 = math.rsqrt %222 : vector<8x1xf32>
    %224 = arith.mulf %220, %223 : vector<8x1xf32>
    %225 = arith.mulf %211, %224 : vector<8x1xf32>
    %226 = vector.shape_cast %225 : vector<8x1xf32> to vector<8x1xf32>
    %227 = vector.broadcast %226 : vector<8x1xf32> to vector<8x128xf32>
    %c0_119 = arith.constant 0 : index
    %c0_120 = arith.constant 0 : index
    %228 = vector.load %arg28[%c0_119, %c0_120] : memref<8x128xf32, #tpu.memory_space<vmem>>, vector<8x128xf32>
    tpu.vector_store %arg28[%c0_119, %c0_120], %227 {strides = array<i32>} : memref<8x128xf32, #tpu.memory_space<vmem>>, vector<8x128xf32>,
    return
  }
}

</mosaic_0001>

<bundles_post_ra>
// kernel: forward.1
= control target key start
LH: loop header
LB: loop body
LE: loop exit
PB: predicated region body
PF: predicated region fallthrough
CT: control target
= control target key end

     0   :  { %s6888_s0 = inlined_call_operand.vmem [shape: f32[128,16], index: 0, kind: input, shape index: {}]   ;;  %s6889_s1 = inlined_call_operand.hbm [shape: bf16[16,384], index: 1, kind: input, shape index: {}]   ;;  %s6890_s2 = inlined_call_operand.hbm [shape: f32[1,128], index: 2, kind: input, shape index: {}]   ;;  %s6891_s3 = inlined_call_operand.vmem [shape: f32[2,128,1], index: 3, kind: input, shape index: {}]   ;;  %s6892_s4 = inlined_call_operand.vmem [shape: f32[2,1,128], index: 4, kind: input, shape index: {}]   ;;  %s6893_s5 = inlined_call_operand.vmem [shape: bf16[64,128], index: 5, kind: input, shape index: {}]   ;;  %s6894_s6 = inlined_call_operand.vmem [shape: bf16[128,384], index: 6, kind: input, shape index: {}]   ;;  %s6895_s7 = inlined_call_operand.vmem [shape: f32[1,128], index: 7, kind: input, shape index: {}]   ;;  %s6896_s8 = inlined_call_operand.vmem [shape: f32[2,64,1], index: 8, kind: input, shape index: {}]   ;;  %s6897_s9 = inlined_call_operand.hbm [shape: f32[2,1,128], index: 9, kind: input, shape index: {}]   ;;  %s6898_s10 = inlined_call_operand.hbm [shape: bf16[32,64], index: 10, kind: input, shape index: {}]   ;;  %s6899_s11 = inlined_call_operand.vmem [shape: bf16[128,384], index: 11, kind: input, shape index: {}]   ;;  %s6900_s12 = inlined_call_operand.hbm [shape: f32[1,128], index: 12, kind: input, shape index: {}]   ;;  %s6901_s13 = inlined_call_operand.vmem [shape: f32[2,32,1], index: 13, kind: input, shape index: {}]   ;;  %s6902_s14 = inlined_call_operand.hbm [shape: f32[2,1,128], index: 14, kind: input, shape index: {}]   ;;  %s6903_s15 = inlined_call_operand.vmem [shape: bf16[16,32], index: 15, kind: input, shape index: {}]   ;;  %s6904_s16 = inlined_call_operand.vmem [shape: bf16[128,384], index: 16, kind: input, shape index: {}]   ;;  %s6905_s17 = inlined_call_operand.hbm [shape: f32[1,128], index: 17, kind: input, shape index: {}]   ;;  %s6906_s18 = inlined_call_operand.vmem [shape: f32[2,16,1], index: 18, kind: input, shape index: {}]   ;;  %s6907_s19 = inlined_call_operand.hbm [shape: f32[2,1,128], index: 19, kind: input, shape index: {}]   ;;  %s6908_s20 = inlined_call_operand.vmem [shape: bf16[8,16], index: 20, kind: input, shape index: {}]   ;;  %s6909_s21 = inlined_call_operand.hbm [shape: bf16[128,128], index: 21, kind: input, shape index: {}]   ;;  %s6910_s22 = inlined_call_operand.hbm [shape: f32[1,128], index: 22, kind: input, shape index: {}]   ;;  %s6911_s23 = inlined_call_operand.hbm [shape: bf16[128,1024], index: 23, kind: input, shape index: {}]   ;;  %s6912_s24 = inlined_call_operand.vmem [shape: f32[1,1024], index: 24, kind: input, shape index: {}]   ;;  %s6913_s25 = inlined_call_operand.hbm [shape: bf16[1024,128], index: 25, kind: input, shape index: {}]   ;;  %s6914_s26 = inlined_call_operand.hbm [shape: f32[1,128], index: 26, kind: input, shape index: {}]   ;;  %s6915_s27 = inlined_call_operand.vmem [shape: f32[8,128], index: 27, kind: output, shape index: {0}]   ;;  %s6916_s28 = inlined_call_operand.vmem [shape: f32[8,128], index: 28, kind: output, shape index: {1}]  }
   0x1   :  { %6938 = sst [smem:[#allocation35_spill]] %s6888_s0 }
   0x2   :  { %6939 = sst [smem:[#allocation36_spill]] %s6889_s1 }
   0x3   :  { %6940 = sst [smem:[#allocation37_spill]] %s6890_s2 }
   0x4   :  { %6941 = sst [smem:[#allocation38_spill]] %s6891_s3 }
   0x5   :  { %6942 = sst [smem:[#allocation39_spill]] %s6892_s4 }
   0x6   :  { %6943 = sst [smem:[#allocation40_spill]] %s6893_s5 }
   0x7   :  { %6944 = sst [smem:[#allocation41_spill]] %s6894_s6 }
   0x8   :  { %6945 = sst [smem:[#allocation42_spill]] %s6895_s7 }
   0x9   :  { %6946 = sst [smem:[#allocation43_spill]] %s6896_s8 }
   0xa   :  { %6947 = sst [smem:[#allocation44_spill]] %s6897_s9 }
   0xb   :  { %6948 = sst [smem:[#allocation45_spill]] %s6898_s10 }
   0xc   :  { %6949 = sst [smem:[#allocation46_spill]] %s6899_s11 }
   0xd   :  { %6950 = sst [smem:[#allocation47_spill]] %s6900_s12 }
   0xe   :  { %34 = vsyncpa [#allocation3], 0 }
   0xf   :  { %35 = vsyncpa [#allocation5], 0 }
  0x10   :  { %36 = vsyncpa [#allocation8], 0 }
  0x11   :  { %37 = vsyncpa [#allocation11], 0 }
  0x12   :  { %38 = vsyncpa [#allocation14], 0 }
  0x13   :  { %39 = vsyncpa [#allocation17], 0  ;;  %s6951_s9 = sld [smem:[#allocation37_spill]] }
  0x19   :  { %s61_s30 = sshll.u32 %s6951_s9, 4  ;;  %s62_s30 = int_to_ptr.hbm [resolvable:$true] %s61_s30 }
  0x1a   :  { %40 = vsyncpa [#allocation20], 0  ;;  %s5205_s3 = smov [#allocation4]   ;;  %s6952_s11 = sld [smem:[#allocation45_spill]] }
  0x1b   :  { %s63_s6 = sshll.u32 %s5205_s3, 4  ;;  %s5206_s2 = smov [#allocation7]   ;;  %s64_s6 = int_to_ptr.vmem [resolvable:$true] %s63_s6 }
  0x1c   :  { %66 = dma.hbm_to_vmem [thread:$0]  %s62_s30, 16, %s64_s6, [#allocation5]  }
  0x1d   :  { %s98_s7 = sshll.u32 %s5206_s2, 4  ;;  %s6927_s12 = smov 64   ;;  %s99_s7 = int_to_ptr.vmem [resolvable:$true] %s98_s7 }
  0x1e   :  { %s5208_s1 = smov 4   ;;  %s124_s5 = sshll.u32 %s6902_s14, 4  ;;  %s125_s5 = int_to_ptr.hbm [resolvable:$true] %s124_s5 }
  0x1f   :  { %s5209_s9 = smov [#allocation10]   ;;  %s154_s6 = sshll.u32 %s6907_s19, 4  ;;  %s155_s6 = int_to_ptr.hbm [resolvable:$true] %s154_s6 }
  0x20   :  { %s96_s29 = sshll.u32 %s6952_s11, 4  ;;  %s126_s3 = sshll.u32 %s5209_s9, 4  ;;  %s97_s29 = int_to_ptr.hbm [resolvable:$true] %s96_s29  ;;  %s127_s3 = int_to_ptr.vmem [resolvable:$true] %s126_s3 }
  0x21   :  { %104 = dma.hbm_to_vmem [thread:$0]  %s97_s29, 256, %s99_s7, [#allocation8], %s6927_s12, %s6927_s12, %s5208_s1  }
  0x22   :  { %s6924_s0 = smov 16   ;;  %s6926_s11 = smov 1  }
  0x23   :  { %132 = dma.hbm_to_vmem [thread:$0]  %s125_s5, 32, %s127_s3, [#allocation11], %s6924_s0, %s6924_s0, %s6926_s11  }
  0x24   :  { %s5212_s29 = smov [#allocation13]   ;;  %s183_s14 = sshll.u32 %s6910_s22, 4  ;;  %s184_s14 = int_to_ptr.hbm [resolvable:$true] %s183_s14 }
  0x25   :  { %s156_s2 = sshll.u32 %s5212_s29, 4  ;;  %s208_s9 = sshll.u32 %s6913_s25, 4  ;;  %s157_s2 = int_to_ptr.vmem [resolvable:$true] %s156_s2  ;;  %s209_s9 = int_to_ptr.hbm [resolvable:$true] %s208_s9 }
  0x26   :  { %162 = dma.hbm_to_vmem [thread:$0]  %s155_s6, 32, %s157_s2, [#allocation14], %s6924_s0, %s6924_s0, %s6926_s11  }
  0x27   :  { %s5213_s10 = smov [#allocation16]   ;;  %s5214_s5 = smov [#allocation19]  }
  0x28   :  { %s185_s30 = sshll.u32 %s5213_s10, 4  ;;  %s210_s3 = sshll.u32 %s5214_s5, 4  ;;  %s186_s30 = int_to_ptr.vmem [resolvable:$true] %s185_s30  ;;  %s211_s3 = int_to_ptr.vmem [resolvable:$true] %s210_s3 }
  0x29   :  { %188 = dma.hbm_to_vmem [thread:$0]  %s184_s14, 16, %s186_s30, [#allocation17]  }
  0x2a   :  { %s6953_s22 = sld [smem:[#allocation36_spill]]  ;;  %s5215_s6 = smov [#allocation2]  }
  0x2b   :  { %216 = dma.hbm_to_vmem [thread:$0]  %s209_s9, 8192, %s211_s3, [#allocation20], %s6927_s12, %s6927_s12, %s5208_s1  }
  0x2c   :  { %s49_s2 = sshll.u32 %s5215_s6, 4  ;;  %s6954_s8 = sld [smem:[#allocation44_spill]]  ;;  %s50_s2 = int_to_ptr.vmem [resolvable:$true] %s49_s2 }
  0x2d   :  { %s5216_s14 = smov 192   ;;  %s5217_s30 = smov 12  }
  0x2e   :  { %s5218_s5 = smov [#allocation6]   ;;  %s6955_s0 = sld [smem:[#allocation47_spill]] }
  0x2f   :  { %s85_s29 = sshll.u32 %s5218_s5, 4  ;;  %s6956_s9 = smov 1   ;;  %s86_s29 = int_to_ptr.vmem [resolvable:$true] %s85_s29 }
  0x30   :  { %s47_s4 = sshll.u32 %s6953_s22, 4  ;;  %s6957_s3 = smov 16   ;;  %s48_s4 = int_to_ptr.hbm [resolvable:$true] %s47_s4 }
  0x31   :  { %55 = dma.hbm_to_vmem [thread:$0]  %s48_s4, 384, %s50_s2, [#allocation3], %s5216_s14, %s5216_s14, %s5217_s30  }
  0x32   :  { %s83_s10 = sshll.u32 %s6954_s8, 4  ;;  %s142_s25 = sshll.u32 %s6905_s17, 4  ;;  %s84_s10 = int_to_ptr.hbm [resolvable:$true] %s83_s10  ;;  %s143_s25 = int_to_ptr.hbm [resolvable:$true] %s142_s25 }
  0x33   :  { %91 = dma.hbm_to_vmem [thread:$0]  %s84_s10, 32, %s86_s29, [#allocation5], %s6957_s3, %s6957_s3, %s6956_s9  }
  0x34   :  { %s112_s11 = sshll.u32 %s6955_s0, 4  ;;  %s5219_s19 = smov [#allocation9]   ;;  %s113_s11 = int_to_ptr.hbm [resolvable:$true] %s112_s11 }
  0x35   :  { %s114_s8 = sshll.u32 %s5219_s19, 4  ;;  %s5220_s4 = smov [#allocation12]   ;;  %s115_s8 = int_to_ptr.vmem [resolvable:$true] %s114_s8 }
  0x36   :  { %117 = dma.hbm_to_vmem [thread:$0]  %s113_s11, 16, %s115_s8, [#allocation8]  }
  0x37   :  { %s144_s2 = sshll.u32 %s5220_s4, 4  ;;  %s169_s0 = sshll.u32 %s6909_s21, 4  ;;  %s145_s2 = int_to_ptr.vmem [resolvable:$true] %s144_s2  ;;  %s170_s0 = int_to_ptr.hbm [resolvable:$true] %s169_s0 }
  0x38   :  { %147 = dma.hbm_to_vmem [thread:$0]  %s143_s25, 16, %s145_s2, [#allocation11]  }
  0x39   :  { %s193_s29 = sshll.u32 %s6911_s23, 4  ;;  %s5221_s12 = smov [#allocation15]   ;;  %s194_s29 = int_to_ptr.hbm [resolvable:$true] %s193_s29 }
  0x3a   :  { %s171_s17 = sshll.u32 %s5221_s12, 4  ;;  %s6958_s7 = smov 64   ;;  %s172_s17 = int_to_ptr.vmem [resolvable:$true] %s171_s17 }
  0x3b   :  { %177 = dma.hbm_to_vmem [thread:$0]  %s170_s0, 1024, %s172_s17, [#allocation14], %s6958_s7, %s6958_s7, %s5208_s1  }
  0x3c   :  { %s5222_s11 = smov [#allocation18]   ;;  %s5223_s9 = smov 512  }
  0x3d   :  { %s195_s22 = sshll.u32 %s5222_s11, 4  ;;  %s5224_s21 = smov 32   ;;  %s196_s22 = int_to_ptr.vmem [resolvable:$true] %s195_s22 }
  0x3e   :  { %201 = dma.hbm_to_vmem [thread:$0]  %s194_s29, 8192, %s196_s22, [#allocation17], %s5223_s9, %s5223_s9, %s5224_s21  }
  0x3f   :  { %s222_s19 = sshll.u32 %s6914_s26, 4  ;;  %s5225_s23 = smov [#allocation21]   ;;  %s223_s19 = int_to_ptr.hbm [resolvable:$true] %s222_s19 }
  0x40   :  { %s224_s8 = sshll.u32 %s5225_s23, 4  ;;  %s225_s8 = int_to_ptr.vmem [resolvable:$true] %s224_s8 }
  0x41   :  { %227 = dma.hbm_to_vmem [thread:$0]  %s223_s19, 16, %s225_s8, [#allocation20]  }
  0x42   :  { %5191 = dma.done.wait [#allocation3], 384  }
  0x43   :  { %5192 = vsyncadd [#allocation3], 4294966912 }
  0x44   :  { %5193 = dma.done.wait [#allocation5], 48  }
  0x45   :  { %5194 = vsyncadd [#allocation5], 4294967248 }
  0x46   :  { %5195 = dma.done.wait [#allocation8], 272  }
  0x47   :  { %5196 = vsyncadd [#allocation8], 4294967024 }
  0x48   :  { %5197 = dma.done.wait [#allocation11], 48  }
  0x49   :  { %5198 = vsyncadd [#allocation11], 4294967248 }
  0x4a   :  { %5199 = dma.done.wait [#allocation14], 1056  }
  0x4b   :  { %5200 = vsyncadd [#allocation14], 4294966240 }
  0x4c   :  { %5201 = dma.done.wait [#allocation17], 8208  }
  0x4d   :  { %5202 = vsyncadd [#allocation17], 4294959088 }
  0x4e   :  { %5203 = dma.done.wait [#allocation20], 8208  }
  0x4f   :  { %5204 = vsyncadd [#allocation20], 4294959088  ;;  %v5226_v0 = vmov 0   ;;  %s6959_s4 = sld [smem:[#allocation38_spill]]  ;;  %v3685_v4 = vld [vmem:[#allocation2] sm:$0xf] }
  0x50   :  { %4860 = vset.pattern.permute.xlu2 %v5226_v0  ;;  %4859 = vset.pattern.permute.xlu1 %v5226_v0  ;;  %v4615_v5 = vld [vmem:[#allocation2 + $0x8] sm:$0xf0]  ;;  %v3693_v6 = vld [vmem:[#allocation2 + $0x8] sm:$0xf]  ;;  %v4616_v8 = vld [vmem:[#allocation2 + $0x10] sm:$0xf0] }
  0x51   :  { %4858 = vset.pattern.permute.xlu0 %v5226_v0  ;;  %v3686_v7 = vor.u32 %v4615_v5, %v3685_v4  ;;  %v4614_v9 = vld [vmem:[#allocation2 + $0x4] sm:$0xf]  ;;  %v3687_v10 = vld [vmem:[#allocation2 + $0xc] sm:$0xf0]  ;;  %v3694_v11 = vor.u32 %v4616_v8, %v3693_v6  ;;  %s6960_s29 = sld [smem:[#allocation35_spill]]  ;;  %vm325_vm0 = vcmask 130048  }
  0x52   :  { %v3690_v12 = vor.u32 %v4614_v9, %v3687_v10  ;;  %s6979_s5 = sld [smem:[#allocation40_spill]]  ;;  %s5227_s6 = smov 120   ;;  %vm1642_vm3 = vcmask 523264   ;;  %vm2062_vm4 = vcmask 261120  }
  0x53   :  { %357 = vmatpush.bf16.msra.mxu0 %v3686_v7  ;;  %455 = vmatpush.bf16.msra.mxu2 %v3694_v11  ;;  %s5228_s25 = smov 8   ;;  %s6980_s23 = sld [smem:[#allocation43_spill]] }
  0x54   :  { %406 = vmatpush.bf16.msra.mxu1 %v3690_v12  ;;  %s6981_s11 = sld [smem:[#allocation41_spill]] }
  0x55   :  { %v3719_v1 = vld [vmem:[%s6959_s4 + $0x80] sm:$0xff]  ;;  %v511_v2 = vld [vmem:[%s6959_s4 + $0x70] sm:$0xff]  ;;  %v3732_v16 = vld [vmem:[%s6959_s4 + $0xe8] sm:$0xff]  ;;  %s6983_s30 = sld [smem:[#allocation42_spill]] }
  0x56   :  { %v497_v3 = vld [vmem:[%s6959_s4] sm:$0xff]  ;;  %712 = vperm.xlu2 %4860, %v3719_v1   ;;  %637 = vperm.xlu1 %4859, %v511_v2   ;;  %v512_v17 = vld [vmem:[%s6959_s4 + $0x78] sm:$0xff]  ;;  %v510_v18 = vld [vmem:[%s6959_s4 + $0x68] sm:$0xff]  ;;  %s6984_s14 = sld [smem:[#allocation46_spill]] }
  0x57   :  { %567 = vperm.xlu0 %4858, %v497_v3   ;;  %v281_v13 = vld [vmem:[%s6960_s29] sm:$0xff]  ;;  %v282_v14 = vld [vmem:[%s6960_s29 + $0x8] sm:$0xff]  ;;  %v3734_v19 = vld [vmem:[%s6959_s4 + $0xf8] sm:$0xff] }
  0x58   :  { %v297_v15 = vpack.c.bf16 %v282_v14, %v281_v13  ;;  %v508_v20 = vld [vmem:[%s6959_s4 + $0x58] sm:$0xff]  ;;  %v3733_v21 = vld [vmem:[%s6959_s4 + $0xf0] sm:$0xff]  ;;  %v3731_v26 = vld [vmem:[%s6959_s4 + $0xe0] sm:$0xff] }
  0x59   :  { %v283_v22 = vld [vmem:[%s6960_s29 + $0x10] sm:$0xff]  ;;  %v284_v23 = vld [vmem:[%s6960_s29 + $0x18] sm:$0xff]  ;;  %v509_v27 = vld [vmem:[%s6959_s4 + $0x60] sm:$0xff] }
  0x5a   :  { %3695 = vmatmul.msk.bf16.vlgmr.msra.gmra.mxu0 %vm325_vm0, %v297_v15  ;;  %3711 = vmatmul.msk.bf16.vlgmr.msra.gmra.mxu2 %vm325_vm0, %v297_v15  ;;  %v298_v24 = vpack.c.bf16 %v284_v23, %v283_v22  ;;  %v3730_v25 = vld [vmem:[%s6959_s4 + $0xd8] sm:$0xff]  ;;  %v3728_v28 = vld [vmem:[%s6959_s4 + $0xc8] sm:$0xff]  ;;  %v507_v29 = vld [vmem:[%s6959_s4 + $0x50] sm:$0xff] }
  0x5b   :  { %3703 = vmatmul.msk.bf16.vlgmr.msra.gmra.mxu1 %vm325_vm0, %v297_v15  ;;  %v506_v30 = vld [vmem:[%s6959_s4 + $0x48] sm:$0xff]  ;;  %v285_v31 = vld [vmem:[%s6960_s29 + $0x20] sm:$0xff]  ;;  %v504_v35 = vld [vmem:[%s6959_s4 + $0x38] sm:$0xff] }
  0x5c   :  { %v286_v32 = vld [vmem:[%s6960_s29 + $0x28] sm:$0xff]  ;;  %v505_v34 = vld [vmem:[%s6959_s4 + $0x40] sm:$0xff]  ;;  %v3729_v36 = vld [vmem:[%s6959_s4 + $0xd0] sm:$0xff] }
  0x5d   :  { %v299_v33 = vpack.c.bf16 %v286_v32, %v285_v31  ;;  %v3727_v37 = vld [vmem:[%s6959_s4 + $0xc0] sm:$0xff]  ;;  %v502_v38 = vld [vmem:[%s6959_s4 + $0x28] sm:$0xff]  ;;  %v3726_v39 = vld [vmem:[%s6959_s4 + $0xb8] sm:$0xff] }
  0x5e   :  { %777 = vperm.xlu2 %4860, %v3732_v16   ;;  %642 = vperm.xlu1 %4859, %v512_v17   ;;  %v287_v40 = vld [vmem:[%s6960_s29 + $0x30] sm:$0xff]  ;;  %v288_v41 = vld [vmem:[%s6960_s29 + $0x38] sm:$0xff]  ;;  %v3724_v43 = vld [vmem:[%s6959_s4 + $0xa8] sm:$0xff] }
  0x5f   :  { %632 = vperm.xlu0 %4858, %v510_v18   ;;  %v300_v42 = vpack.c.bf16 %v288_v41, %v287_v40  ;;  %v3725_v44 = vld [vmem:[%s6959_s4 + $0xb0] sm:$0xff]  ;;  %v3722_v46 = vld [vmem:[%s6959_s4 + $0x98] sm:$0xff]  ;;  %v501_v47 = vld [vmem:[%s6959_s4 + $0x20] sm:$0xff] }
  0x60   :  { %v503_v45 = vld [vmem:[%s6959_s4 + $0x30] sm:$0xff]  ;;  %v500_v48 = vld [vmem:[%s6959_s4 + $0x18] sm:$0xff]  ;;  %v289_v49 = vld [vmem:[%s6960_s29 + $0x40] sm:$0xff] }
  0x61   :  { %v290_v50 = vld [vmem:[%s6960_s29 + $0x48] sm:$0xff]  ;;  %v499_v52 = vld [vmem:[%s6959_s4 + $0x10] sm:$0xff]  ;;  %v3723_v54 = vld [vmem:[%s6959_s4 + $0xa0] sm:$0xff] }
  0x62   :  { %v301_v51 = vpack.c.bf16 %v290_v50, %v289_v49  ;;  %v498_v53 = vld [vmem:[%s6959_s4 + $0x8] sm:$0xff]  ;;  %v3721_v55 = vld [vmem:[%s6959_s4 + $0x90] sm:$0xff]  ;;  %v292_v58 = vld [vmem:[%s6960_s29 + $0x58] sm:$0xff] }
  0x63   :  { %v3720_v56 = vld [vmem:[%s6959_s4 + $0x88] sm:$0xff]  ;;  %v291_v57 = vld [vmem:[%s6960_s29 + $0x50] sm:$0xff]  ;;  %v293_v61 = vld [vmem:[%s6960_s29 + $0x60] sm:$0xff] }
  0x64   :  { %v302_v59 = vpack.c.bf16 %v292_v58, %v291_v57  ;;  %v294_v62 = vld [vmem:[%s6960_s29 + $0x68] sm:$0xff]  ;;  %v295_v2 = vld [vmem:[%s6960_s29 + $0x70] sm:$0xff]  ;;  %v296_v3 = vld [vmem:[%s6960_s29 + $0x78] sm:$0xff]  ;;  %s5229_s29 = smov 112  }
  0x65   :  { %v303_v0 = vpack.c.bf16 %v294_v62, %v293_v61  ;;  %v304_v6 = vpack.c.bf16 %v296_v3, %v295_v2 }
  0x66   :  { %787 = vperm.xlu1 %4859, %v3734_v19   ;;  %622 = vperm.xlu2 %4860, %v508_v20  }
  0x67   :  { %782 = vperm.xlu0 %4858, %v3733_v21  }
  0x6a   :  { %3696 = vmatmul.msk.bf16.gmra.mxu0 %vm325_vm0, %v298_v24  ;;  %3712 = vmatmul.msk.bf16.gmra.mxu2 %vm325_vm0, %v298_v24 }
  0x6b   :  { %3704 = vmatmul.msk.bf16.gmra.mxu1 %vm325_vm0, %v298_v24 }
  0x6e   :  { %767 = vperm.xlu1 %4859, %v3730_v25   ;;  %772 = vperm.xlu2 %4860, %v3731_v26  }
  0x6f   :  { %627 = vperm.xlu0 %4858, %v509_v27  }
  0x76   :  { %757 = vperm.xlu2 %4860, %v3728_v28   ;;  %617 = vperm.xlu1 %4859, %v507_v29   ;;  %v546_v28 = vlaneseq }
  0x77   :  { %612 = vperm.xlu0 %4858, %v506_v30  }
  0x7a   :  { %3697 = vmatmul.msk.bf16.gmra.mxu0 %vm325_vm0, %v299_v33  ;;  %3713 = vmatmul.msk.bf16.gmra.mxu2 %vm325_vm0, %v299_v33 }
  0x7b   :  { %3705 = vmatmul.msk.bf16.gmra.mxu1 %vm325_vm0, %v299_v33 }
  0x7e   :  { %607 = vperm.xlu2 %4860, %v505_v34   ;;  %602 = vperm.xlu1 %4859, %v504_v35   ;;  %v5658_v35 = vshrl.u32 %v546_v28, 7 }
  0x7f   :  { %762 = vperm.xlu0 %4858, %v3729_v36  }
  0x80   :  { %vm548_vm1 = vcmp.lt.s32.totalorder %v5658_v35, 1  ;;  %vm693_vm2 = vcmp.lt.s32.totalorder %v5658_v35, 7  ;;  %v4702_v35 = vld [vmem:[#allocation15 + $0x30] sm:$0xff] }
  0x86   :  { %752 = vperm.xlu1 %4859, %v3727_v37   ;;  %592 = vperm.xlu2 %4860, %v502_v38  }
  0x87   :  { %747 = vperm.xlu0 %4858, %v3726_v39  }
  0x8a   :  { %3698 = vmatmul.msk.bf16.gmra.mxu0 %vm325_vm0, %v300_v42  ;;  %3714 = vmatmul.msk.bf16.gmra.mxu2 %vm325_vm0, %v300_v42 }
  0x8b   :  { %3706 = vmatmul.msk.bf16.gmra.mxu1 %vm325_vm0, %v300_v42 }
  0x8e   :  { %737 = vperm.xlu1 %4859, %v3724_v43   ;;  %742 = vperm.xlu2 %4860, %v3725_v44  }
  0x8f   :  { %597 = vperm.xlu0 %4858, %v503_v45  }
  0x96   :  { %727 = vperm.xlu2 %4860, %v3722_v46   ;;  %587 = vperm.xlu1 %4859, %v501_v47  }
  0x97   :  { %582 = vperm.xlu0 %4858, %v500_v48  }
  0x9a   :  { %3699 = vmatmul.msk.bf16.gmra.mxu0 %vm325_vm0, %v301_v51  ;;  %3715 = vmatmul.msk.bf16.gmra.mxu2 %vm325_vm0, %v301_v51 }
  0x9b   :  { %3707 = vmatmul.msk.bf16.gmra.mxu1 %vm325_vm0, %v301_v51 }
  0x9e   :  { %577 = vperm.xlu2 %4860, %v499_v52   ;;  %572 = vperm.xlu1 %4859, %v498_v53  }
  0x9f   :  { %732 = vperm.xlu0 %4858, %v3723_v54  }
  0xa6   :  { %722 = vperm.xlu1 %4859, %v3721_v55  }
  0xa7   :  { %717 = vperm.xlu0 %4858, %v3720_v56  }
  0xaa   :  { %3700 = vmatmul.msk.bf16.gmra.mxu0 %vm325_vm0, %v302_v59  ;;  %3716 = vmatmul.msk.bf16.gmra.mxu2 %vm325_vm0, %v302_v59 }
  0xab   :  { %3708 = vmatmul.msk.bf16.gmra.mxu1 %vm325_vm0, %v302_v59 }
  0xb0   :  { %v5584_v60 = vpop.permute.xlu2 %712 }
  0xb8   :  { %v5592_v63 = vpop.permute.xlu2 %777 }
  0xba   :  { %3701 = vmatmul.msk.bf16.gmra.mxu0 %vm325_vm0, %v303_v0  ;;  %3717 = vmatmul.msk.bf16.gmra.mxu2 %vm325_vm0, %v303_v0 }
  0xbb   :  { %3709 = vmatmul.msk.bf16.gmra.mxu1 %vm325_vm0, %v303_v0 }
  0xc0   :  { %v5597_v1 = vpop.permute.xlu2 %622 }
  0xc8   :  { %v5605_v4 = vpop.permute.xlu1 %637  ;;  %v5607_v5 = vpop.permute.xlu2 %772 }
  0xc9   :  { %v5609_v7 = vpop.permute.xlu0 %567 }
  0xca   :  { %3702 = vmatmul.msk.bf16.gmra.mxu0 %vm325_vm0, %v304_v6  ;;  %3718 = vmatmul.msk.bf16.gmra.mxu2 %vm325_vm0, %v304_v6 }
  0xcb   :  { %3710 = vmatmul.msk.bf16.gmra.mxu1 %vm325_vm0, %v304_v6 }
  0xd0   :  { %v5614_v8 = vpop.permute.xlu1 %642  ;;  %v5616_v9 = vpop.permute.xlu2 %757 }
  0xd1   :  { %6961 = vst [vmem:[#allocation29_spill] sm:$0xff] %v5614_v8  ;;  %v5618_v10 = vpop.permute.xlu0 %632 }
  0xd7   :  { %v5626_v14 = vpop.f32.mrf.mxu0 }
  0xd8   :  { %v5620_v11 = vpop.permute.xlu1 %787  ;;  %v5622_v12 = vpop.permute.xlu2 %607 }
  0xd9   :  { %6962 = vst [vmem:[#allocation30_spill] sm:$0xff] %v5620_v11  ;;  %v5624_v13 = vpop.permute.xlu0 %782  ;;  %v5628_v15 = vpop.f32.mrf.mxu1 }
  0xda   :  { %6963 = vst [vmem:[#allocation31_spill] sm:$0xff] %v5624_v13 }
  0xdb   :  { %6964 = vst [vmem:[#allocation32_spill] sm:$0xff] %v5628_v15 }
  0xdd   :  { %v5630_v16 = vpop.f32.mrf.mxu2 }
  0xdf   :  { %v5638_v20 = vpop.f32.mrf.mxu0 }
  0xe0   :  { %v5632_v17 = vpop.permute.xlu1 %767  ;;  %v5634_v18 = vpop.permute.xlu2 %592  ;;  %v531_v37 = vrot.slane %v5638_v20, 7 }
  0xe1   :  { %v5636_v19 = vpop.permute.xlu0 %627  ;;  %v5640_v21 = vpop.f32.mrf.mxu1 }
  0xe5   :  { %v5642_v22 = vpop.f32.mrf.mxu2 }
  0xe7   :  { %v364_v26 = vpop.f32.mrf.mxu0 }
  0xe8   :  { %v5644_v23 = vpop.permute.xlu1 %617  ;;  %v5646_v24 = vpop.permute.xlu2 %742  ;;  %v532_v36 = vrot.slane %v364_v26, 7 }
  0xe9   :  { %v5648_v25 = vpop.permute.xlu0 %612  ;;  %v413_v27 = vpop.f32.mrf.mxu1 }
  0xea   :  { %v562_v41 = vsel %vm548_vm1, %v531_v37, %v532_v36 }
  0xed   :  { %v5650_v29 = vpop.f32.mrf.mxu2 }
  0xef   :  { %v366_v33 = vpop.f32.mrf.mxu0 }
  0xf0   :  { %v5652_v30 = vpop.permute.xlu1 %602  ;;  %v5654_v31 = vpop.permute.xlu2 %727  ;;  %v533_v53 = vrot.slane %v366_v33, 7 }
  0xf1   :  { %v5656_v32 = vpop.permute.xlu0 %762  ;;  %v415_v34 = vpop.f32.mrf.mxu1 }
  0xf2   :  { %v561_v2 = vsel %vm548_vm1, %v532_v36, %v533_v53 }
  0xf5   :  { %v5661_v38 = vpop.f32.mrf.mxu2 }
  0xf6   :  { %v680_v55 = vrot.slane %v5661_v38, 1 }
  0xf7   :  { %v369_v44 = vpop.f32.mrf.mxu0 }
  0xf8   :  { %v5663_v39 = vpop.permute.xlu1 %752  ;;  %v5666_v40 = vpop.permute.xlu2 %577  ;;  %v534_v52 = vrot.slane %v369_v44, 7 }
  0xf9   :  { %v5670_v42 = vpop.permute.xlu0 %747  ;;  %v647_v43 = vmul.f32 %v5666_v40, %v562_v41  ;;  %v418_v45 = vpop.f32.mrf.mxu1 }
  0xfa   :  { %v560_v58 = vsel %vm548_vm1, %v533_v53, %v534_v52 }
  0xfb   :  { %v5673_v46 = vadd.f32 %v647_v43, %v413_v27  ;;  %v5696_v43 = vld [vmem:[#allocation4] ss:$0 sm:$0xff] }
  0xfd   :  { %v467_v47 = vpop.f32.mrf.mxu2 }
  0xfe   :  { %v681_v54 = vrot.slane %v467_v47, 1 }
  0xff   :  { %v371_v50 = vpop.f32.mrf.mxu0 }
 0x100   :  { %v5675_v48 = vpop.permute.xlu1 %737  ;;  %v705_v59 = vsel %vm693_vm2, %v680_v55, %v681_v54  ;;  %v535_v61 = vrot.slane %v371_v50, 7 }
 0x101   :  { %v5677_v49 = vpop.permute.xlu0 %597  ;;  %v420_v51 = vpop.f32.mrf.mxu1  ;;  %v793_v28 = vmul.f32 %v5654_v31, %v705_v59 }
 0x102   :  { %v559_v38 = vsel %vm548_vm1, %v534_v52, %v535_v61 }
 0x103   :  { %v650_v50 = vmul.f32 %v5634_v18, %v559_v38 }
 0x105   :  { %v469_v56 = vpop.f32.mrf.mxu2 }
 0x106   :  { %v682_v41 = vrot.slane %v469_v56, 1 }
 0x107   :  { %v374_v6 = vpop.f32.mrf.mxu0 }
 0x108   :  { %v5681_v57 = vpop.permute.xlu1 %587  ;;  %v536_v27 = vrot.slane %v374_v6, 7  ;;  %v679_v6 = vrot.slane %v5650_v29, 1 }
 0x109   :  { %v649_v62 = vmul.f32 %v5681_v57, %v560_v58  ;;  %v5688_v0 = vpop.permute.xlu0 %582  ;;  %v423_v20 = vpop.f32.mrf.mxu1 }
 0x10a   :  { %v648_v3 = vmul.f32 %v5688_v0, %v561_v2  ;;  %v558_v44 = vsel %vm548_vm1, %v535_v61, %v536_v27 }
 0x10b   :  { %v665_v26 = vadd.f32 %v649_v62, %v418_v45  ;;  %v651_v36 = vmul.f32 %v5677_v49, %v558_v44  ;;  %v704_v62 = vsel %vm693_vm2, %v681_v54, %v682_v41 }
 0x10c   :  { %v664_v33 = vadd.f32 %v648_v3, %v415_v34  ;;  %v6929_v34 = vrot.slane %v5626_v14, 7 }
 0x10d   :  { %v667_v53 = vadd.f32 %v651_v36, %v423_v20  ;;  %v472_v45 = vpop.f32.mrf.mxu2 }
 0x10e   :  { %v809_v47 = vadd.f32 %v793_v28, %v664_v33  ;;  %v683_v52 = vrot.slane %v472_v45, 1  ;;  %v563_v28 = vsel %vm548_vm1, %v6929_v34, %v531_v37  ;;  %v666_v33 = vadd.f32 %v650_v50, %v420_v51 }
 0x10f   :  { %v376_v61 = vpop.f32.mrf.mxu0 }
 0x110   :  { %v5702_v58 = vpop.permute.xlu1 %572  ;;  %v829_v59 = vadd.f32 %v5696_v43, %v809_v47  ;;  %v703_v20 = vsel %vm693_vm2, %v682_v41, %v683_v52  ;;  %v6930_v47 = vrot.slane %v5642_v22, 1 }
 0x111   :  { %6965 = vst [vmem:[#allocation33_spill] sm:$0xff] %v5702_v58  ;;  %v733_v56 = vpop.permute.xlu0 %732  ;;  %v5708_v3 = vpop.f32.mrf.mxu1  ;;  %v795_v38 = vmul.f32 %v5675_v48, %v703_v20  ;;  %v646_v44 = vmul.f32 %v5702_v58, %v563_v28 }
 0x112   :  { %v794_v2 = vmul.f32 %v733_v56, %v704_v62  ;;  %v5720_v36 = vmax.f32 %v829_v59, 0.0  ;;  %v537_v62 = vrot.slane %v376_v61, 7  ;;  %v707_v41 = vsel %vm693_vm2, %v6930_v47, %v679_v6 }
 0x113   :  { %v811_v45 = vadd.f32 %v795_v38, %v666_v33  ;;  %v662_v51 = vadd.f32 %v646_v44, %v5640_v21  ;;  %v706_v59 = vsel %vm693_vm2, %v679_v6, %v680_v55 }
 0x114   :  { %v810_v54 = vadd.f32 %v794_v2, %v665_v26  ;;  %v861_v2 = vrot.slane %v5720_v36, 7  ;;  %v909_v61 = vrot.slane %v5720_v36, 1  ;;  %v557_v55 = vsel %vm548_vm1, %v536_v27, %v537_v62 }
 0x115   :  { %v831_v37 = vadd.f32 %v5696_v43, %v811_v45  ;;  %v474_v20 = vpop.f32.mrf.mxu2 }
 0x116   :  { %v830_v29 = vadd.f32 %v5696_v43, %v810_v54  ;;  %v684_v28 = vrot.slane %v474_v20, 1 }
 0x117   :  { %v5735_v54 = vmax.f32 %v831_v37, 0.0  ;;  %v5738_v44 = vpop.f32.mrf.mxu0 }
 0x118   :  { %v846_v50 = vmax.f32 %v830_v29, 0.0  ;;  %v723_v26 = vpop.permute.xlu1 %722  ;;  %v702_v6 = vsel %vm693_vm2, %v683_v52, %v684_v28 }
 0x119   :  { %v792_v33 = vmul.f32 %v723_v26, %v706_v59  ;;  %v5733_v38 = vpop.permute.xlu0 %717  ;;  %v428_v29 = vpop.f32.mrf.mxu1  ;;  %v6935_v59 = vrot.slane %v5738_v44, 7  ;;  %v911_v47 = vrot.slane %v5735_v54, 1 }
 0x11a   :  { %6966 = vst [vmem:[#allocation34_spill] sm:$0xff] %v5733_v38  ;;  %v862_v34 = vrot.slane %v846_v50, 7  ;;  %v910_v45 = vrot.slane %v846_v50, 1  ;;  %v791_v21 = vmul.f32 %v5733_v38, %v707_v41  ;;  %v796_v41 = vmul.f32 %v5646_v24, %v702_v6 }
 0x11b   :  { %v808_v20 = vadd.f32 %v792_v33, %v5673_v46  ;;  %v556_v27 = vsel %vm548_vm1, %v537_v62, %v6935_v59  ;;  %v863_v46 = vrot.slane %v5735_v54, 7  ;;  %v652_v62 = vmul.f32 %v5652_v30, %v557_v55 }
 0x11c   :  { %v885_v37 = vsel %vm548_vm1, %v861_v2, %v862_v34  ;;  %v807_v58 = vadd.f32 %v791_v21, %v662_v51  ;;  %v932_v52 = vsel %vm693_vm2, %v910_v45, %v911_v47  ;;  %v812_v33 = vadd.f32 %v796_v41, %v667_v53 }
 0x11d   :  { %v894_v38 = vmul.f32 %v885_v37, %v5681_v57  ;;  %v828_v11 = vadd.f32 %v5696_v43, %v808_v20  ;;  %v653_v6 = vmul.f32 %v5622_v12, %v556_v27  ;;  %v942_v51 = vmul.f32 %v932_v52, %v733_v56  ;;  %v477_v8 = vpop.f32.mrf.mxu2 }
 0x11e   :  { %v827_v13 = vadd.f32 %v5696_v43, %v807_v58  ;;  %v884_v57 = vsel %vm548_vm1, %v862_v34, %v863_v46  ;;  %v933_v20 = vsel %vm693_vm2, %v909_v61, %v910_v45  ;;  %v832_v53 = vadd.f32 %v5696_v43, %v812_v33 }
 0x11f   :  { %v844_v21 = vmax.f32 %v828_v11, 0.0  ;;  %v669_v59 = vadd.f32 %v653_v6, %v428_v29  ;;  %v958_v41 = vmax.f32 %v894_v38, %v942_v51  ;;  %v685_v27 = vrot.slane %v477_v8, 1  ;;  %v5771_v34 = vpop.f32.mrf.mxu0 }
 0x120   :  { %v5766_v37 = vmax.f32 %v827_v13, 0.0  ;;  %v848_v45 = vmax.f32 %v832_v53, 0.0  ;;  %v668_v38 = vadd.f32 %v652_v62, %v5708_v3 }
 0x121   :  { %v860_v58 = vrot.slane %v844_v21, 7  ;;  %v908_v15 = vrot.slane %v844_v21, 1  ;;  %v430_v52 = vpop.f32.mrf.mxu1  ;;  %v701_v29 = vsel %vm693_vm2, %v684_v28, %v685_v27  ;;  %v5777_v55 = vmax.f32 %v846_v50, %v958_v41 }
 0x122   :  { %v6937_v56 = vrot.slane %v5766_v37, 1  ;;  %v797_v33 = vmul.f32 %v5670_v42, %v701_v29  ;;  %v864_v6 = vrot.slane %v848_v45, 7  ;;  %v912_v53 = vrot.slane %v848_v45, 1 }
 0x123   :  { %v934_v13 = vsel %vm693_vm2, %v908_v15, %v909_v61  ;;  %v886_v61 = vsel %vm548_vm1, %v860_v58, %v861_v2  ;;  %v6967_v3 = vrot.slane %v5766_v37, 7  ;;  %v941_v41 = vmul.f32 %v933_v20, %v5654_v31 }
 0x124   :  { %v5784_v8 = vsel %vm693_vm2, %v6937_v56, %v908_v15  ;;  %v940_v51 = vmul.f32 %v934_v13, %v723_v26  ;;  %v813_v11 = vadd.f32 %v797_v33, %v668_v38  ;;  %v883_v50 = vsel %vm548_vm1, %v863_v46, %v864_v6 }
 0x125   :  { %v887_v28 = vsel %vm548_vm1, %v6967_v3, %v860_v58  ;;  %v931_v15 = vsel %vm693_vm2, %v911_v47, %v912_v53  ;;  %v893_v26 = vmul.f32 %v886_v61, %v5688_v0  ;;  %v479_v13 = vpop.f32.mrf.mxu2  ;;  %v895_v29 = vmul.f32 %v884_v57, %v5634_v18 }
 0x126   :  { %v892_v62 = vmul.f32 %v887_v28, %v5666_v40  ;;  %v833_v2 = vadd.f32 %v5696_v43, %v813_v11  ;;  %v943_v46 = vmul.f32 %v931_v15, %v5675_v48  ;;  %v539_v38 = vrot.slane %v5771_v34, 7 }
 0x127   :  { %v686_v33 = vrot.slane %v479_v13, 1  ;;  %v957_v3 = vmax.f32 %v893_v26, %v941_v41  ;;  %v5804_v47 = vpop.f32.mrf.mxu0  ;;  %v6968_v34 = vrot.slane %v5738_v44, 7  ;;  %v896_v15 = vmul.f32 %v883_v50, %v5677_v49 }
 0x128   :  { %v956_v58 = vmax.f32 %v892_v62, %v940_v51  ;;  %v849_v56 = vmax.f32 %v833_v2, 0.0  ;;  %v959_v28 = vmax.f32 %v895_v29, %v943_v46 }
 0x129   :  { %v433_v40 = vpop.f32.mrf.mxu1  ;;  %v700_v31 = vsel %vm693_vm2, %v685_v27, %v686_v33  ;;  %v5811_v20 = vmax.f32 %v5720_v36, %v957_v3  ;;  %v555_v51 = vsel %vm548_vm1, %v6968_v34, %v539_v38 }
 0x12a   :  { %v5808_v0 = vmax.f32 %v844_v21, %v956_v58  ;;  %v798_v18 = vmul.f32 %v5663_v39, %v700_v31  ;;  %v865_v48 = vrot.slane %v849_v56, 7  ;;  %v913_v57 = vrot.slane %v849_v56, 1 }
 0x12b   :  { %v5815_v11 = vmax.f32 %v5735_v54, %v959_v28  ;;  %v654_v62 = vmul.f32 %v5648_v25, %v555_v51 }
 0x12c   :  { %v995_v27 = vpack.c.bf16 %v5811_v20, %v5808_v0  ;;  %v814_v21 = vadd.f32 %v798_v18, %v669_v59  ;;  %v882_v36 = vsel %vm548_vm1, %v864_v6, %v865_v48  ;;  %v930_v61 = vsel %vm693_vm2, %v912_v53, %v913_v57  ;;  %v4620_v0 = vld [vmem:[%s6979_s5 + $0x18] sm:$0xff] }
 0x12d   :  { %v944_v54 = vmul.f32 %v930_v61, %v5646_v24  ;;  %v996_v44 = vpack.c.bf16 %v5815_v11, %v5777_v55  ;;  %v482_v26 = vpop.f32.mrf.mxu2  ;;  %v540_v59 = vrot.slane %v5804_v47, 7  ;;  %v670_v50 = vadd.f32 %v654_v62, %v430_v52  ;;  %v4619_v55 = vld [vmem:[%s6979_s5 + $0x10] sm:$0xff] }
 0x12e   :  { %v834_v41 = vadd.f32 %v5696_v43, %v814_v21  ;;  %v687_v2 = vrot.slane %v482_v26, 1 }
 0x12f   :  { %v960_v13 = vmax.f32 %v896_v15, %v944_v54  ;;  %v386_v6 = vpop.f32.mrf.mxu0  ;;  %v554_v28 = vsel %vm548_vm1, %v539_v38, %v540_v59 }
 0x130   :  { %v850_v29 = vmax.f32 %v834_v41, 0.0  ;;  %v699_v53 = vsel %vm693_vm2, %v686_v33, %v687_v2  ;;  %v897_v33 = vmul.f32 %v882_v36, %v5652_v30  ;;  %v655_v52 = vmul.f32 %v5644_v23, %v554_v28 }
 0x131   :  { %v5836_v49 = vpop.f32.mrf.mxu1  ;;  %v5838_v24 = vmax.f32 %v848_v45, %v960_v13  ;;  %v799_v46 = vmul.f32 %v5616_v9, %v699_v53 }
 0x132   :  { %v866_v58 = vrot.slane %v850_v29, 7  ;;  %v914_v3 = vrot.slane %v850_v29, 1 }
 0x133   :  { %v815_v47 = vadd.f32 %v799_v46, %v670_v50 }
 0x134   :  { %v881_v31 = vsel %vm548_vm1, %v865_v48, %v866_v58  ;;  %v929_v18 = vsel %vm693_vm2, %v913_v57, %v914_v3  ;;  %v671_v57 = vadd.f32 %v655_v52, %v433_v40 }
 0x135   :  { %v945_v45 = vmul.f32 %v929_v18, %v5670_v42  ;;  %v835_v34 = vadd.f32 %v5696_v43, %v815_v47  ;;  %v484_v51 = vpop.f32.mrf.mxu2  ;;  %v898_v40 = vmul.f32 %v881_v31, %v5622_v12 }
 0x136   :  { %v688_v21 = vrot.slane %v484_v51, 1 }
 0x137   :  { %v961_v61 = vmax.f32 %v897_v33, %v945_v45  ;;  %v5851_v15 = vmax.f32 %v835_v34, 0.0  ;;  %v389_v38 = vpop.f32.mrf.mxu0  ;;  %v541_v45 = vrot.slane %v386_v6, 7 }
 0x138   :  { %v698_v48 = vsel %vm693_vm2, %v687_v2, %v688_v21  ;;  %v542_v28 = vrot.slane %v389_v38, 7 }
 0x139   :  { %v5855_v54 = vmax.f32 %v849_v56, %v961_v61  ;;  %v800_v30 = vmul.f32 %v5656_v32, %v698_v48  ;;  %v867_v42 = vrot.slane %v5851_v15, 7  ;;  %v915_v36 = vrot.slane %v5851_v15, 1  ;;  %v438_v62 = vpop.f32.mrf.mxu1 }
 0x13b   :  { %v997_v26 = vpack.c.bf16 %v5855_v54, %v5838_v24  ;;  %v816_v41 = vadd.f32 %v800_v30, %v671_v57  ;;  %v880_v13 = vsel %vm548_vm1, %v866_v58, %v867_v42  ;;  %v928_v56 = vsel %vm693_vm2, %v914_v3, %v915_v36 }
 0x13c   :  { %v946_v2 = vmul.f32 %v928_v56, %v5663_v39  ;;  %v552_v3 = vsel %vm548_vm1, %v541_v45, %v542_v28  ;;  %v899_v31 = vmul.f32 %v880_v13, %v5648_v25 }
 0x13d   :  { %v487_v53 = vpop.f32.mrf.mxu2  ;;  %v836_v50 = vadd.f32 %v5696_v43, %v816_v41  ;;  %v657_v51 = vmul.f32 %v5636_v19, %v552_v3 }
 0x13e   :  { %v962_v46 = vmax.f32 %v898_v40, %v946_v2  ;;  %v689_v52 = vrot.slane %v487_v53, 1 }
 0x13f   :  { %v391_v47 = vpop.f32.mrf.mxu0  ;;  %v5871_v18 = vmax.f32 %v836_v50, 0.0  ;;  %v673_v41 = vadd.f32 %v657_v51, %v438_v62  ;;  %v677_v62 = vrot.slane %v5630_v16, 1  ;;  %v6970_v16 = vrot.slane %v5626_v14, 7  ;;  %v6972_v14 = vld [vmem:[#allocation29_spill] sm:$0xff] }
 0x140   :  { %v5873_v33 = vmax.f32 %v850_v29, %v962_v46  ;;  %v553_v29 = vsel %vm548_vm1, %v540_v59, %v541_v45  ;;  %v543_v61 = vrot.slane %v391_v47, 7  ;;  %v697_v57 = vsel %vm693_vm2, %v688_v21, %v689_v52 }
 0x141   :  { %v916_v58 = vrot.slane %v5871_v18, 1  ;;  %v440_v39 = vpop.f32.mrf.mxu1  ;;  %v801_v13 = vmul.f32 %v5632_v17, %v697_v57 }
 0x142   :  { %v551_v56 = vsel %vm548_vm1, %v542_v28, %v543_v61 }
 0x143   :  { %v927_v12 = vsel %vm693_vm2, %v915_v36, %v916_v58  ;;  %v656_v36 = vmul.f32 %v5597_v1, %v553_v29  ;;  %v658_v53 = vmul.f32 %v5618_v10, %v551_v56 }
 0x144   :  { %v947_v34 = vmul.f32 %v927_v12, %v5616_v9 }
 0x145   :  { %v489_v6 = vpop.f32.mrf.mxu2  ;;  %v672_v40 = vadd.f32 %v656_v36, %v5836_v49 }
 0x146   :  { %v690_v38 = vrot.slane %v489_v6, 1  ;;  %v963_v48 = vmax.f32 %v899_v31, %v947_v34  ;;  %v674_v34 = vadd.f32 %v658_v53, %v440_v39  ;;  %v6969_v6 = vrot.slane %v5642_v22, 1 }
 0x147   :  { %v394_v30 = vpop.f32.mrf.mxu0  ;;  %v817_v47 = vadd.f32 %v801_v13, %v672_v40 }
 0x148   :  { %v696_v25 = vsel %vm693_vm2, %v689_v52, %v690_v38  ;;  %v5893_v9 = vmax.f32 %v5851_v15, %v963_v48  ;;  %v544_v50 = vrot.slane %v394_v30, 7  ;;  %v708_v51 = vsel %vm693_vm2, %v677_v62, %v6969_v6  ;;  %v6974_v6 = vld [vmem:[#allocation30_spill] sm:$0xff] }
 0x149   :  { %v802_v59 = vmul.f32 %v5607_v5, %v696_v25  ;;  %v443_v45 = vpop.f32.mrf.mxu1  ;;  %v837_v48 = vadd.f32 %v5696_v43, %v817_v47  ;;  %v790_v22 = vmul.f32 %v5584_v60, %v708_v51 }
 0x14a   :  { %v998_v21 = vpack.c.bf16 %v5893_v9, %v5873_v33  ;;  %v550_v49 = vsel %vm548_vm1, %v543_v61, %v544_v50  ;;  %v1384_v33 = vld [vmem:[%s6980_s23 + $0x28] sm:$0xff] }
 0x14b   :  { %v818_v2 = vadd.f32 %v802_v59, %v673_v41  ;;  %v659_v30 = vmul.f32 %v5605_v4, %v550_v49  ;;  %v6971_v59 = vld [vmem:[#allocation32_spill] sm:$0xff]  ;;  %v5929_v40 = vmax.f32 %v837_v48, 0.0  ;;  %v6973_v49 = vld [vmem:[#allocation31_spill] sm:$0xff] }
 0x14d   :  { %v492_v46 = vpop.f32.mrf.mxu2  ;;  %v838_v31 = vadd.f32 %v5696_v43, %v818_v2 }
 0x14e   :  { %v691_v3 = vrot.slane %v492_v46, 1  ;;  %v675_v46 = vadd.f32 %v659_v30, %v443_v45  ;;  %v869_v45 = vrot.slane %v5929_v40, 7 }
 0x14f   :  { %v396_v52 = vpop.f32.mrf.mxu0  ;;  %v5923_v36 = vmax.f32 %v838_v31, 0.0 }
 0x150   :  { %v695_v12 = vsel %vm693_vm2, %v690_v38, %v691_v3  ;;  %v545_v28 = vrot.slane %v396_v52, 7 }
 0x151   :  { %v803_v29 = vmul.f32 %v5592_v63, %v695_v12  ;;  %v445_v47 = vpop.f32.mrf.mxu1 }
 0x152   :  { %v564_v38 = vsel %vm548_vm1, %v545_v28, %v6970_v16  ;;  %v549_v39 = vsel %vm548_vm1, %v544_v50, %v545_v28  ;;  %v870_v28 = vrot.slane %v5923_v36, 7  ;;  %v918_v16 = vrot.slane %v5923_v36, 1 }
 0x153   :  { %v819_v57 = vadd.f32 %v803_v29, %v674_v34  ;;  %v645_v61 = vmul.f32 %v5609_v7, %v564_v38  ;;  %v660_v13 = vmul.f32 %v6972_v14, %v549_v39 }
 0x155   :  { %v839_v25 = vadd.f32 %v5696_v43, %v819_v57  ;;  %v661_v41 = vadd.f32 %v645_v61, %v6971_v59  ;;  %v494_v56 = vpop.f32.mrf.mxu2  ;;  %v676_v34 = vadd.f32 %v660_v13, %v445_v47  ;;  %v6975_v61 = vld [vmem:[#allocation34_spill] sm:$0xff]  ;;  %v877_v13 = vsel %vm548_vm1, %v869_v45, %v870_v28 }
 0x156   :  { %v692_v2 = vrot.slane %v494_v56, 1  ;;  %v939_v30 = vmul.f32 %v5784_v8, %v6975_v61 }
 0x157   :  { %v5931_v53 = vmax.f32 %v839_v25, 0.0  ;;  %v806_v50 = vadd.f32 %v790_v22, %v661_v41  ;;  %v917_v22 = vrot.slane %v5929_v40, 1 }
 0x158   :  { %v694_v52 = vsel %vm693_vm2, %v691_v3, %v692_v2  ;;  %v709_v12 = vsel %vm693_vm2, %v692_v2, %v677_v62  ;;  %v868_v3 = vrot.slane %v5871_v18, 7 }
 0x159   :  { %v826_v31 = vadd.f32 %v5696_v43, %v806_v50  ;;  %v804_v29 = vmul.f32 %v6973_v49, %v694_v52  ;;  %v805_v51 = vmul.f32 %v6974_v6, %v709_v12  ;;  %v871_v48 = vrot.slane %v5931_v53, 7 }
 0x15a   :  { %v919_v57 = vrot.slane %v5931_v53, 1  ;;  %v879_v2 = vsel %vm548_vm1, %v867_v42, %v868_v3  ;;  %v925_v8 = vsel %vm693_vm2, %v917_v22, %v918_v16  ;;  %v6976_v52 = vrot.slane %v5766_v37, 1 }
 0x15b   :  { %v842_v38 = vmax.f32 %v826_v31, 0.0  ;;  %v820_v39 = vadd.f32 %v804_v29, %v675_v46  ;;  %v821_v62 = vadd.f32 %v805_v51, %v676_v34  ;;  %v876_v56 = vsel %vm548_vm1, %v870_v28, %v871_v48 }
 0x15c   :  { %v902_v28 = vmul.f32 %v877_v13, %v5636_v19  ;;  %v878_v15 = vsel %vm548_vm1, %v868_v3, %v869_v45  ;;  %v926_v42 = vsel %vm693_vm2, %v916_v58, %v917_v22  ;;  %v6977_v31 = vrot.slane %v5766_v37, 7  ;;  %v6978_v3 = vld [vmem:[#allocation33_spill] sm:$0xff] }
 0x15d   :  { %v840_v25 = vadd.f32 %v5696_v43, %v820_v39  ;;  %v841_v59 = vadd.f32 %v5696_v43, %v821_v62  ;;  %v906_v41 = vrot.slane %v842_v38, 1  ;;  %v858_v50 = vrot.slane %v842_v38, 7 }
 0x15e   :  { %v924_v43 = vsel %vm693_vm2, %v918_v16, %v919_v57  ;;  %v903_v62 = vmul.f32 %v876_v56, %v5618_v10  ;;  %v949_v45 = vmul.f32 %v925_v8, %v5632_v17 }
 0x15f   :  { %v856_v46 = vmax.f32 %v840_v25, 0.0  ;;  %v857_v47 = vmax.f32 %v841_v59, 0.0  ;;  %v936_v12 = vsel %vm693_vm2, %v906_v41, %v6976_v52  ;;  %v888_v34 = vsel %vm548_vm1, %v858_v50, %v6977_v31 }
 0x160   :  { %v950_v19 = vmul.f32 %v924_v43, %v5607_v5  ;;  %v891_v61 = vmul.f32 %v888_v34, %v6978_v3  ;;  %v938_v8 = vmul.f32 %v936_v12, %v5584_v60  ;;  %v900_v60 = vmul.f32 %v879_v2, %v5644_v23  ;;  %v4617_v23 = vld [vmem:[%s6979_s5] sm:$0xff]  ;;  %v3838_v2 = vld [vmem:[%s6981_s11 + $0xa8] sm:$0xf]  ;;  %v4644_v3 = vld [vmem:[%s6981_s11 + $0xb8] sm:$0xf0] }
 0x161   :  { %v872_v29 = vrot.slane %v856_v46, 7  ;;  %v873_v51 = vrot.slane %v857_v47, 7  ;;  %v920_v16 = vrot.slane %v856_v46, 1  ;;  %v921_v39 = vrot.slane %v857_v47, 1 }
 0x162   :  { %v955_v43 = vmax.f32 %v891_v61, %v939_v30 }
 0x163   :  { %v874_v58 = vsel %vm548_vm1, %v872_v29, %v873_v51  ;;  %v875_v22 = vsel %vm548_vm1, %v871_v48, %v872_v29  ;;  %v922_v25 = vsel %vm693_vm2, %v920_v16, %v921_v39  ;;  %v937_v59 = vsel %vm693_vm2, %v921_v39, %v906_v41  ;;  %v1386_v39 = vld [vmem:[%s6980_s23 + $0x38] sm:$0xff] }
 0x164   :  { %v904_v10 = vmul.f32 %v875_v22, %v5605_v4  ;;  %v905_v5 = vmul.f32 %v874_v58, %v6972_v14  ;;  %v952_v17 = vmul.f32 %v922_v25, %v6973_v49  ;;  %v953_v13 = vmul.f32 %v937_v59, %v6974_v6  ;;  %v3826_v22 = vld [vmem:[%s6981_s11 + $0x90] sm:$0xf]  ;;  %v4640_v25 = vld [vmem:[%s6981_s11 + $0x98] sm:$0xf0]  ;;  %v4639_v59 = vld [vmem:[%s6981_s11 + $0x94] sm:$0xf] }
 0x165   :  { %v923_v56 = vsel %vm693_vm2, %v919_v57, %v920_v16  ;;  %v889_v48 = vsel %vm548_vm1, %v873_v51, %v858_v50  ;;  %v966_v14 = vmax.f32 %v902_v28, %v950_v19  ;;  %v901_v49 = vmul.f32 %v878_v15, %v5597_v1  ;;  %v3840_v19 = vld [vmem:[%s6981_s11 + $0xb4] sm:$0xf0] }
 0x166   :  { %v968_v52 = vmax.f32 %v904_v10, %v952_v17  ;;  %v969_v31 = vmax.f32 %v905_v5, %v953_v13  ;;  %v951_v41 = vmul.f32 %v923_v56, %v5592_v63  ;;  %v890_v4 = vmul.f32 %v889_v48, %v5609_v7  ;;  %v3828_v5 = vld [vmem:[%s6981_s11 + $0x9c] sm:$0xf0]  ;;  %v3834_v17 = vld [vmem:[%s6981_s11 + $0x98] sm:$0xf]  ;;  %v4641_v13 = vld [vmem:[%s6981_s11 + $0xa0] sm:$0xf0] }
 0x167   :  { %v948_v6 = vmul.f32 %v926_v42, %v5656_v32  ;;  %v971_v34 = vmax.f32 %v5766_v37, %v955_v43  ;;  %v965_v51 = vmax.f32 %v901_v49, %v949_v45  ;;  %v982_v7 = vmax.f32 %v5923_v36, %v966_v14  ;;  %v1385_v36 = vld [vmem:[%s6980_s23 + $0x30] sm:$0xff]  ;;  %v4642_v42 = vld [vmem:[%s6981_s11 + $0xac] sm:$0xf]  ;;  %v1382_v43 = vld [vmem:[%s6980_s23 + $0x18] sm:$0xff] }
 0x168   :  { %v984_v57 = vmax.f32 %v856_v46, %v968_v52  ;;  %v985_v29 = vmax.f32 %v857_v47, %v969_v31  ;;  %v967_v16 = vmax.f32 %v903_v62, %v951_v41  ;;  %v954_v50 = vmax.f32 %v890_v4, %v938_v8  ;;  %v4643_v47 = vld [vmem:[%s6981_s11 + $0xb0] sm:$0xf0]  ;;  %v3846_v45 = vld [vmem:[%s6981_s11 + $0xb0] sm:$0xf]  ;;  %v3851_v8 = vld [vmem:[%s6980_s23 + $0x58] sm:$0xff] }
 0x169   :  { %v964_v28 = vmax.f32 %v900_v60, %v948_v6  ;;  %v981_v32 = vmax.f32 %v5929_v40, %v965_v51  ;;  %v1379_v40 = vld [vmem:[%s6980_s23] sm:$0xff]  ;;  %v3839_v62 = vor.u32 %v4643_v47, %v3838_v2  ;;  %v3843_v61 = vor.u32 %v4642_v42, %v3840_v19  ;;  %v3814_v52 = vld [vmem:[%s6981_s11 + $0x78] sm:$0xf]  ;;  %v4636_v41 = vld [vmem:[%s6981_s11 + $0x7c] sm:$0xf] }
 0x16a   :  { %v1001_v30 = vpack.c.bf16 %v985_v29, %v984_v57  ;;  %v983_v12 = vmax.f32 %v5931_v53, %v967_v16  ;;  %v970_v63 = vmax.f32 %v842_v38, %v954_v50  ;;  %v3855_v53 = vld [vmem:[%s6980_s23 + $0x78] sm:$0xff]  ;;  %v3853_v38 = vld [vmem:[%s6980_s23 + $0x68] sm:$0xff]  ;;  %v3847_v58 = vor.u32 %v4644_v3, %v3846_v45  ;;  %v4637_v31 = vld [vmem:[%s6981_s11 + $0x80] sm:$0xf0] }
 0x16b   :  { %v980_v37 = vmax.f32 %v5871_v18, %v964_v28  ;;  %v4618_v18 = vld [vmem:[%s6979_s5 + $0x8] sm:$0xff]  ;;  %v3827_v10 = vor.u32 %v4640_v25, %v3826_v22  ;;  %1321 = vmatpush.bf16.msrb.mxu0 %v3843_v61  ;;  %v3831_v56 = vor.u32 %v4639_v59, %v3828_v5  ;;  %v3835_v48 = vor.u32 %v4641_v13, %v3834_v17  ;;  %v3854_v4 = vld [vmem:[%s6980_s23 + $0x70] sm:$0xff]  ;;  %v3822_v6 = vld [vmem:[%s6981_s11 + $0x80] sm:$0xf] }
 0x16c   :  { %1026 = vmatpush.bf16.msra.mxu3 %v1001_v30  ;;  %v994_v1 = vpack.c.bf16 %v971_v34, %v970_v63  ;;  %v1000_v15 = vpack.c.bf16 %v983_v12, %v982_v7  ;;  %1350 = vmatpush.bf16.msrb.mxu1 %v3847_v58  ;;  %v3815_v14 = vor.u32 %v4637_v31, %v3814_v52  ;;  %v3816_v49 = vld [vmem:[%s6981_s11 + $0x84] sm:$0xf0]  ;;  %v4638_v34 = vld [vmem:[%s6981_s11 + $0x88] sm:$0xf0]  ;;  %v3802_v16 = vld [vmem:[%s6981_s11 + $0x60] sm:$0xf] }
 0x16d   :  { %v999_v46 = vpack.c.bf16 %v981_v32, %v980_v37  ;;  %v3819_v57 = vor.u32 %v4636_v41, %v3816_v49  ;;  %v3823_v29 = vor.u32 %v4638_v34, %v3822_v6  ;;  %v4634_v50 = vld [vmem:[%s6981_s11 + $0x68] sm:$0xf0]  ;;  %v4633_v60 = vld [vmem:[%s6981_s11 + $0x64] sm:$0xf]  ;;  %v3804_v12 = vld [vmem:[%s6981_s11 + $0x6c] sm:$0xf0] }
 0x16e   :  { %v3803_v30 = vor.u32 %v4634_v50, %v3802_v16  ;;  %v3810_v51 = vld [vmem:[%s6981_s11 + $0x68] sm:$0xf]  ;;  %v4635_v63 = vld [vmem:[%s6981_s11 + $0x70] sm:$0xf0]  ;;  %v3807_v7 = vor.u32 %v4633_v60, %v3804_v12  ;;  %v1383_v32 = vld [vmem:[%s6980_s23 + $0x20] sm:$0xff] }
 0x16f   :  { %1322 = vmatpush.bf16.msrb.mxu0 %v3831_v56  ;;  %v3811_v28 = vor.u32 %v4635_v63, %v3810_v51  ;;  %v3790_v37 = vld [vmem:[%s6981_s11 + $0x48] sm:$0xf]  ;;  %v3780_v2 = vld [vmem:[%s6981_s11 + $0x3c] sm:$0xf0]  ;;  %v3786_v47 = vld [vmem:[%s6981_s11 + $0x38] sm:$0xf] }
 0x170   :  { %1027 = vmatpush.bf16.msra.mxu3 %v1000_v15  ;;  %1351 = vmatpush.bf16.msrb.mxu1 %v3835_v48  ;;  %v3852_v15 = vld [vmem:[%s6980_s23 + $0x60] sm:$0xff]  ;;  %v3849_v45 = vld [vmem:[%s6980_s23 + $0x48] sm:$0xff]  ;;  %v3766_v61 = vld [vmem:[%s6981_s11 + $0x18] sm:$0xf] }
 0x171   :  { %v4629_v42 = vld [vmem:[%s6981_s11 + $0x40] sm:$0xf0]  ;;  %v1380_v3 = vld [vmem:[%s6980_s23 + $0x8] sm:$0xff]  ;;  %v4624_v22 = vld [vmem:[%s6981_s11 + $0x1c] sm:$0xf] }
 0x172   :  { %v3787_v19 = vor.u32 %v4629_v42, %v3786_v47  ;;  %v4625_v58 = vld [vmem:[%s6981_s11 + $0x20] sm:$0xf0]  ;;  %v3768_v59 = vld [vmem:[%s6981_s11 + $0x24] sm:$0xf0]  ;;  %v4626_v5 = vld [vmem:[%s6981_s11 + $0x28] sm:$0xf0] }
 0x173   :  { %1323 = vmatpush.bf16.msrb.mxu0 %v3819_v57  ;;  %v3767_v25 = vor.u32 %v4625_v58, %v3766_v61  ;;  %v3771_v17 = vor.u32 %v4624_v22, %v3768_v59  ;;  %v3754_v56 = vld [vmem:[%s6981_s11] sm:$0xf]  ;;  %v4622_v48 = vld [vmem:[%s6981_s11 + $0x8] sm:$0xf0]  ;;  %v3762_v52 = vld [vmem:[%s6981_s11 + $0x8] sm:$0xf] }
 0x174   :  { %1028 = vmatpush.bf16.msra.mxu3 %v999_v46  ;;  %1352 = vmatpush.bf16.msrb.mxu1 %v3823_v29  ;;  %v4631_v46 = vld [vmem:[%s6981_s11 + $0x50] sm:$0xf0]  ;;  %v3755_v41 = vor.u32 %v4622_v48, %v3754_v56 }
 0x175   :  { %v4623_v31 = vld [vmem:[%s6981_s11 + $0x10] sm:$0xf0] }
 0x176   :  { %v3850_v49 = vld [vmem:[%s6980_s23 + $0x50] sm:$0xff] }
 0x177   :  { %1324 = vmatpush.bf16.msrb.mxu0 %v3807_v7 }
 0x178   :  { %1029 = vmatpush.bf16.msra.mxu3 %v998_v21  ;;  %v3848_v21 = vld [vmem:[%s6980_s23 + $0x40] sm:$0xff]  ;;  %1353 = vmatpush.bf16.msrb.mxu1 %v3811_v28 }
 0x17c   :  { %1030 = vmatpush.bf16.msra.mxu3 %v997_v26 }
 0x180   :  { %1031 = vmatpush.bf16.msra.mxu3 %v996_v44 }
 0x184   :  { %1032 = vmatpush.bf16.msra.mxu3 %v995_v27 }
 0x188   :  { %1033 = vmatpush.bf16.msra.mxu3 %v994_v1  ;;  %v1381_v1 = vld [vmem:[%s6980_s23 + $0x10] sm:$0xff] }
 0x18b   :  { %1034 = vmatmul.bf16.vlgmr.msra.gmra.mxu3 %v4617_v23  ;;  %v4630_v23 = vld [vmem:[%s6981_s11 + $0x4c] sm:$0xf] }
 0x18c   :  { %1292 = vmatpush.bf16.msrb.mxu3 %v3839_v62 }
 0x190   :  { %1293 = vmatpush.bf16.msrb.mxu3 %v3827_v10  ;;  %v3774_v10 = vld [vmem:[%s6981_s11 + $0x20] sm:$0xf] }
 0x191   :  { %v3775_v13 = vor.u32 %v4626_v5, %v3774_v10 }
 0x194   :  { %1294 = vmatpush.bf16.msrb.mxu3 %v3815_v14  ;;  %v3763_v14 = vor.u32 %v4623_v31, %v3762_v52 }
 0x198   :  { %1295 = vmatpush.bf16.msrb.mxu3 %v3803_v30 }
 0x19b   :  { %1039 = vmatmul.bf16.gmra.mxu3 %v4618_v18  ;;  %v3791_v18 = vor.u32 %v4631_v46, %v3790_v37 }
 0x19d   :  { %1296 = vmatpush.bf16.msrb.mxu3 %v3791_v18 }
 0x1ab   :  { %1044 = vmatmul.bf16.gmra.mxu3 %v4619_v55  ;;  %v3792_v55 = vld [vmem:[%s6981_s11 + $0x54] sm:$0xf0] }
 0x1bb   :  { %1049 = vmatmul.bf16.gmra.mxu3 %v4620_v0  ;;  %v3798_v0 = vld [vmem:[%s6981_s11 + $0x50] sm:$0xf] }
 0x20e   :  { %v6033_v20 = vpop.f32.mrf.mxu3 }
 0x20f   :  { %1085 = vrot.lane.b32.xlu1 %v6033_v20, %s5227_s6  ;;  %1058 = vrot.lane.b32.xlu2 %v6033_v20, %s5228_s25 }
 0x216   :  { %v6037_v11 = vpop.f32.mrf.mxu3 }
 0x217   :  { %1087 = vrot.lane.b32.xlu2 %v6037_v11, %s5227_s6  ;;  %1060 = vrot.lane.b32.xlu0 %v6037_v11, %s5228_s25 }
 0x21e   :  { %v6041_v27 = vpop.f32.mrf.mxu3 }
 0x21f   :  { %1089 = vrot.lane.b32.xlu2 %v6041_v27, %s5227_s6  ;;  %1062 = vrot.lane.b32.xlu0 %v6041_v27, %s5228_s25 }
 0x226   :  { %v6045_v44 = vpop.f32.mrf.mxu3 }
 0x227   :  { %1091 = vrot.lane.b32.xlu0 %v6045_v44, %s5227_s6  ;;  %1064 = vrot.lane.b32.xlu1 %v6045_v44, %s5228_s25 }
 0x22e   :  { %v6049_v24 = vpop.f32.mrf.mxu3 }
 0x22f   :  { %1093 = vrot.lane.b32.xlu0 %v6049_v24, %s5227_s6  ;;  %1066 = vrot.lane.b32.xlu1 %v6049_v24, %s5228_s25 }
 0x236   :  { %v6053_v54 = vpop.f32.mrf.mxu3 }
 0x237   :  { %1095 = vrot.lane.b32.xlu1 %v6053_v54, %s5227_s6  ;;  %1068 = vrot.lane.b32.xlu2 %v6053_v54, %s5228_s25 }
 0x23e   :  { %v6057_v26 = vpop.f32.mrf.mxu3 }
 0x23f   :  { %1097 = vrot.lane.b32.xlu1 %v6057_v26, %s5227_s6  ;;  %1070 = vrot.lane.b32.xlu2 %v6057_v26, %s5228_s25 }
 0x246   :  { %v6064_v9 = vpop.f32.mrf.mxu3 }
 0x247   :  { %1439 = vperm.xlu1 %4859, %v1384_v33   ;;  %1099 = vrot.lane.b32.xlu2 %v6064_v9, %s5227_s6  ;;  %v4632_v33 = vld [vmem:[%s6981_s11 + $0x58] sm:$0xf0] }
 0x248   :  { %1072 = vrot.lane.b32.xlu0 %v6064_v9, %s5228_s25  ;;  %s5230_s25 = smov 96  }
 0x24f   :  { %1486 = vperm.xlu1 %4859, %v3848_v21   ;;  %1444 = vperm.xlu2 %4860, %v1385_v36   ;;  %v3795_v21 = vor.u32 %v4630_v23, %v3792_v55  ;;  %v3799_v36 = vor.u32 %v4632_v33, %v3798_v0 }
 0x250   :  { %1414 = vperm.xlu0 %4858, %v1379_v40   ;;  %v3778_v40 = vld [vmem:[%s6981_s11 + $0x30] sm:$0xf] }
 0x251   :  { %1325 = vmatpush.bf16.msrb.mxu0 %v3795_v21  ;;  %1354 = vmatpush.bf16.msrb.mxu1 %v3799_v36 }
 0x255   :  { %1355 = vmatpush.bf16.msrb.mxu1 %v3787_v19 }
 0x257   :  { %1521 = vperm.xlu1 %4859, %v3855_v53   ;;  %1511 = vperm.xlu2 %4860, %v3853_v38   ;;  %v4628_v53 = vld [vmem:[%s6981_s11 + $0x38] sm:$0xf0]  ;;  %v4627_v38 = vld [vmem:[%s6981_s11 + $0x34] sm:$0xf] }
 0x258   :  { %1449 = vperm.xlu0 %4858, %v1386_v39   ;;  %v3779_v39 = vor.u32 %v4628_v53, %v3778_v40  ;;  %v3783_v62 = vor.u32 %v4627_v38, %v3780_v2 }
 0x259   :  { %1356 = vmatpush.bf16.msrb.mxu1 %v3775_v13 }
 0x25a   :  { %1297 = vmatpush.bf16.msrb.mxu3 %v3779_v39  ;;  %1326 = vmatpush.bf16.msrb.mxu0 %v3783_v62 }
 0x25d   :  { %1357 = vmatpush.bf16.msrb.mxu1 %v3763_v14 }
 0x25e   :  { %1298 = vmatpush.bf16.msrb.mxu3 %v3767_v25  ;;  %1327 = vmatpush.bf16.msrb.mxu0 %v3771_v17 }
 0x25f   :  { %1501 = vperm.xlu1 %4859, %v3851_v8   ;;  %1429 = vperm.xlu2 %4860, %v1382_v43   ;;  %v4621_v8 = vld [vmem:[%s6981_s11 + $0x4] sm:$0xf]  ;;  %v3756_v43 = vld [vmem:[%s6981_s11 + $0xc] sm:$0xf0]  ;;  %s6982_s11 = sld [smem:[#allocation39_spill]] }
 0x260   :  { %1516 = vperm.xlu0 %4858, %v3854_v4   ;;  %v3759_v4 = vor.u32 %v4621_v8, %v3756_v43 }
 0x262   :  { %1299 = vmatpush.bf16.msrb.mxu3 %v3755_v41  ;;  %1328 = vmatpush.bf16.msrb.mxu0 %v3759_v4 }
 0x265   :  { %v4862_v57 = vld [vmem:[%s6982_s11] ss:$0 sm:$0xff]  ;;  %v4863_v29 = vld [vmem:[%s6982_s11 + $0x1] ss:$0 sm:$0xff] }
 0x267   :  { %1424 = vperm.xlu1 %4859, %v1381_v1   ;;  %1506 = vperm.xlu2 %4860, %v3852_v15  }
 0x268   :  { %1434 = vperm.xlu0 %4858, %v1383_v32  }
 0x269   :  { %v1059_v6 = vpop.permute.xlu2 %1058 }
 0x26a   :  { %v1077_v60 = vmul.f32 %v4862_v57, %v1059_v6 }
 0x26f   :  { %1491 = vperm.xlu2 %4860, %v3849_v45  }
 0x270   :  { %1419 = vperm.xlu0 %4858, %v1380_v3  }
 0x271   :  { %v1088_v50 = vpop.permute.xlu2 %1087 }
 0x272   :  { %v1105_v12 = vmul.f32 %v4863_v29, %v1088_v50 }
 0x278   :  { %1496 = vperm.xlu0 %4858, %v3850_v49  }
 0x279   :  { %v1090_v37 = vpop.permute.xlu2 %1089 }
 0x27a   :  { %v1106_v23 = vmul.f32 %v4863_v29, %v1090_v37 }
 0x281   :  { %v1086_v34 = vpop.permute.xlu1 %1085 }
 0x282   :  { %v1104_v16 = vmul.f32 %v4863_v29, %v1086_v34 }
 0x284   :  { %v1112_v51 = vmax.f32 %v1077_v60, %v1104_v16 }
 0x286   :  { %v1120_v28 = vmax.f32 %v6033_v20, %v1112_v51 }
 0x289   :  { %v1061_v30 = vpop.permute.xlu0 %1060 }
 0x28a   :  { %v1078_v63 = vmul.f32 %v4862_v57, %v1061_v30 }
 0x28c   :  { %v1113_v7 = vmax.f32 %v1078_v63, %v1105_v12 }
 0x28e   :  { %v1121_v1 = vmax.f32 %v6037_v11, %v1113_v7 }
 0x290   :  { %v1128_v15 = vpack.c.bf16 %v1121_v1, %v1120_v28 }
 0x291   :  { %v1063_v32 = vpop.permute.xlu0 %1062  ;;  %v1069_v2 = vpop.permute.xlu2 %1068 }
 0x292   :  { %1300 = vmatmul.bf16.vlgmr.msrb.gmra.mxu3 %v1128_v15  ;;  %1329 = vmatmul.bf16.vlgmr.msrb.gmra.mxu0 %v1128_v15  ;;  %v1079_v46 = vmul.f32 %v4862_v57, %v1063_v32  ;;  %v1082_v62 = vmul.f32 %v4862_v57, %v1069_v2 }
 0x293   :  { %1358 = vmatmul.bf16.vlgmr.msrb.gmra.mxu1 %v1128_v15 }
 0x294   :  { %v1114_v0 = vmax.f32 %v1079_v46, %v1106_v23 }
 0x296   :  { %v1122_v40 = vmax.f32 %v6041_v27, %v1114_v0 }
 0x299   :  { %v1092_v18 = vpop.permute.xlu0 %1091  ;;  %v1065_v55 = vpop.permute.xlu1 %1064 }
 0x29a   :  { %v1107_v33 = vmul.f32 %v4863_v29, %v1092_v18  ;;  %v1080_v21 = vmul.f32 %v4862_v57, %v1065_v55  ;;  %v1071_v61 = vpop.permute.xlu2 %1070 }
 0x29b   :  { %v1083_v10 = vmul.f32 %v4862_v57, %v1071_v61 }
 0x29c   :  { %v1115_v36 = vmax.f32 %v1080_v21, %v1107_v33 }
 0x29e   :  { %v1123_v20 = vmax.f32 %v6045_v44, %v1115_v36 }
 0x2a0   :  { %v1129_v53 = vpack.c.bf16 %v1123_v20, %v1122_v40 }
 0x2a1   :  { %v1067_v11 = vpop.permute.xlu1 %1066  ;;  %v1094_v38 = vpop.permute.xlu0 %1093 }
 0x2a2   :  { %1305 = vmatmul.bf16.gmra.mxu3 %v1129_v53  ;;  %1334 = vmatmul.bf16.gmra.mxu0 %v1129_v53  ;;  %v1108_v47 = vmul.f32 %v4863_v29, %v1094_v38  ;;  %v1081_v42 = vmul.f32 %v4862_v57, %v1067_v11  ;;  %v1100_v59 = vpop.permute.xlu2 %1099 }
 0x2a3   :  { %1363 = vmatmul.bf16.gmra.mxu1 %v1129_v53  ;;  %v1111_v17 = vmul.f32 %v4863_v29, %v1100_v59 }
 0x2a4   :  { %v1116_v19 = vmax.f32 %v1081_v42, %v1108_v47 }
 0x2a6   :  { %v1124_v58 = vmax.f32 %v6049_v24, %v1116_v19 }
 0x2a9   :  { %v1096_v39 = vpop.permute.xlu1 %1095 }
 0x2aa   :  { %v1109_v45 = vmul.f32 %v4863_v29, %v1096_v39  ;;  %v6283_v6 = vpop.permute.xlu2 %1444 }
 0x2ac   :  { %v1117_v3 = vmax.f32 %v1082_v62, %v1109_v45 }
 0x2ae   :  { %v1125_v27 = vmax.f32 %v6053_v54, %v1117_v3 }
 0x2b0   :  { %v1130_v44 = vpack.c.bf16 %v1125_v27, %v1124_v58 }
 0x2b1   :  { %v1098_v22 = vpop.permute.xlu1 %1097 }
 0x2b2   :  { %1310 = vmatmul.bf16.gmra.mxu3 %v1130_v44  ;;  %1339 = vmatmul.bf16.gmra.mxu0 %v1130_v44  ;;  %v1110_v25 = vmul.f32 %v4863_v29, %v1098_v22  ;;  %v6289_v50 = vpop.permute.xlu2 %1511 }
 0x2b3   :  { %1368 = vmatmul.bf16.gmra.mxu1 %v1130_v44 }
 0x2b4   :  { %v1118_v13 = vmax.f32 %v1083_v10, %v1110_v25 }
 0x2b6   :  { %v1126_v8 = vmax.f32 %v6057_v26, %v1118_v13 }
 0x2b9   :  { %v6281_v49 = vpop.permute.xlu1 %1439 }
 0x2ba   :  { %v1073_v5 = vpop.permute.xlu0 %1072  ;;  %v6295_v28 = vpop.permute.xlu2 %1429 }
 0x2bb   :  { %v1084_v56 = vmul.f32 %v4862_v57, %v1073_v5 }
 0x2bd   :  { %v1119_v48 = vmax.f32 %v1084_v56, %v1111_v17 }
 0x2bf   :  { %v1127_v43 = vmax.f32 %v6064_v9, %v1119_v48 }
 0x2c1   :  { %v1131_v24 = vpack.c.bf16 %v1127_v43, %v1126_v8  ;;  %v6287_v29 = vpop.permute.xlu1 %1486 }
 0x2c2   :  { %v6275_v31 = vpop.permute.xlu0 %1414  ;;  %v6301_v18 = vpop.permute.xlu2 %1506 }
 0x2c3   :  { %1315 = vmatmul.bf16.gmra.mxu3 %v1131_v24  ;;  %1344 = vmatmul.bf16.gmra.mxu0 %v1131_v24 }
 0x2c4   :  { %1373 = vmatmul.bf16.gmra.mxu1 %v1131_v24 }
 0x2c9   :  { %v6293_v63 = vpop.permute.xlu1 %1521 }
 0x2ca   :  { %v6285_v9 = vpop.permute.xlu0 %1449  ;;  %v6336_v8 = vpop.permute.xlu2 %1491 }
 0x2d1   :  { %v6299_v46 = vpop.permute.xlu1 %1501 }
 0x2d2   :  { %v6291_v30 = vpop.permute.xlu0 %1516 }
 0x2d9   :  { %v6321_v22 = vpop.permute.xlu1 %1424 }
 0x2da   :  { %v6297_v1 = vpop.permute.xlu0 %1434 }
 0x2e2   :  { %v6303_v0 = vpop.permute.xlu0 %1419 }
 0x30f   :  { %v6271_v54 = vpop.f32.mrf.mxu0 }
 0x310   :  { %v6273_v52 = vpop.f32.mrf.mxu1 }
 0x315   :  { %v6277_v41 = vpop.f32.mrf.mxu3 }
 0x316   :  { %v1396_v33 = vrot.slane %v6277_v41, 7 }
 0x317   :  { %v1332_v4 = vpop.f32.mrf.mxu0 }
 0x318   :  { %v6279_v14 = vpop.f32.mrf.mxu1 }
 0x319   :  { %v1469_v2 = vrot.slane %v6279_v14, 1 }
 0x31d   :  { %v1303_v26 = vpop.f32.mrf.mxu3 }
 0x31e   :  { %v1397_v23 = vrot.slane %v1303_v26, 7 }
 0x31f   :  { %v1335_v57 = vpop.f32.mrf.mxu0 }
 0x320   :  { %v1364_v34 = vpop.f32.mrf.mxu1  ;;  %v1410_v53 = vsel %vm548_vm1, %v1396_v33, %v1397_v23 }
 0x321   :  { %v1470_v11 = vrot.slane %v1364_v34, 1  ;;  %v1453_v58 = vmul.f32 %v6303_v0, %v1410_v53  ;;  %v6339_v34 = vpop.permute.xlu0 %1496 }
 0x323   :  { %v1481_v25 = vsel %vm693_vm2, %v1469_v2, %v1470_v11  ;;  %v1461_v43 = vadd.f32 %v1453_v58, %v1332_v4 }
 0x325   :  { %v1306_v16 = vpop.f32.mrf.mxu3 }
 0x326   :  { %v1398_v21 = vrot.slane %v1306_v16, 7  ;;  %v1525_v16 = vmul.f32 %v6336_v8, %v1481_v25 }
 0x327   :  { %v1337_v12 = vpop.f32.mrf.mxu0 }
 0x328   :  { %v1366_v60 = vpop.f32.mrf.mxu1  ;;  %v1409_v62 = vsel %vm548_vm1, %v1397_v23, %v1398_v21 }
 0x329   :  { %v1471_v19 = vrot.slane %v1366_v60, 1  ;;  %v1454_v10 = vmul.f32 %v6321_v22, %v1409_v62 }
 0x32b   :  { %v1480_v56 = vsel %vm693_vm2, %v1470_v11, %v1471_v19 }
 0x32d   :  { %v1308_v51 = vpop.f32.mrf.mxu3 }
 0x32e   :  { %v1399_v55 = vrot.slane %v1308_v51, 7 }
 0x32f   :  { %v1340_v15 = vpop.f32.mrf.mxu0 }
 0x330   :  { %v1369_v7 = vpop.f32.mrf.mxu1  ;;  %v1408_v47 = vsel %vm548_vm1, %v1398_v21, %v1399_v55 }
 0x331   :  { %v1472_v42 = vrot.slane %v1369_v7, 1  ;;  %v1455_v59 = vmul.f32 %v6295_v28, %v1408_v47 }
 0x333   :  { %v1479_v5 = vsel %vm693_vm2, %v1471_v19, %v1472_v42  ;;  %v1463_v60 = vadd.f32 %v1455_v59, %v1337_v12 }
 0x334   :  { %v1527_v51 = vmul.f32 %v6299_v46, %v1479_v5 }
 0x335   :  { %v1311_v32 = vpop.f32.mrf.mxu3 }
 0x336   :  { %v1400_v36 = vrot.slane %v1311_v32, 7  ;;  %v1462_v32 = vadd.f32 %v1454_v10, %v1335_v57  ;;  %v1535_v12 = vadd.f32 %v1527_v51, %v1463_v60  ;;  %v4864_v57 = vld [vmem:[%s6983_s30] ss:$0 sm:$0xff] }
 0x337   :  { %v1342_v38 = vpop.f32.mrf.mxu0 }
 0x338   :  { %v1371_v37 = vpop.f32.mrf.mxu1  ;;  %v1407_v45 = vsel %vm548_vm1, %v1399_v55, %v1400_v36 }
 0x339   :  { %v1473_v3 = vrot.slane %v1371_v37, 1  ;;  %v1456_v17 = vmul.f32 %v6297_v1, %v1407_v45  ;;  %v1526_v37 = vmul.f32 %v6339_v34, %v1480_v56 }
 0x33b   :  { %v1478_v48 = vsel %vm693_vm2, %v1472_v42, %v1473_v3  ;;  %v1464_v23 = vadd.f32 %v1456_v17, %v1340_v15  ;;  %v1534_v47 = vadd.f32 %v1526_v37, %v1462_v32 }
 0x33c   :  { %v1528_v55 = vmul.f32 %v6301_v18, %v1478_v48 }
 0x33d   :  { %v1313_v40 = vpop.f32.mrf.mxu3  ;;  %v1546_v10 = vadd.f32 %v4864_v57, %v1534_v47 }
 0x33e   :  { %v1401_v20 = vrot.slane %v1313_v40, 7  ;;  %v1536_v42 = vadd.f32 %v1528_v55, %v1464_v23 }
 0x340   :  { %v1406_v39 = vsel %vm548_vm1, %v1400_v36, %v1401_v20  ;;  %v1345_v21 = vpop.f32.mrf.mxu0  ;;  %v1548_v59 = vadd.f32 %v4864_v57, %v1536_v42 }
 0x341   :  { %v1374_v61 = vpop.f32.mrf.mxu1  ;;  %v1457_v27 = vmul.f32 %v6281_v49, %v1406_v39 }
 0x342   :  { %v1474_v44 = vrot.slane %v1374_v61, 1  ;;  %v6374_v60 = vmax.f32 %v1548_v59, 0.0 }
 0x343   :  { %v1465_v24 = vadd.f32 %v1457_v27, %v1342_v38  ;;  %v1533_v38 = vadd.f32 %v1525_v16, %v1461_v43 }
 0x344   :  { %v1477_v13 = vsel %vm693_vm2, %v1473_v3, %v1474_v44  ;;  %v1547_v3 = vadd.f32 %v4864_v57, %v1535_v12 }
 0x345   :  { %v1529_v14 = vmul.f32 %v6289_v50, %v1477_v13  ;;  %v1545_v25 = vadd.f32 %v4864_v57, %v1533_v38 }
 0x346   :  { %v1316_v26 = vpop.f32.mrf.mxu3  ;;  %v6370_v43 = vmax.f32 %v1547_v3, 0.0 }
 0x347   :  { %v1402_v7 = vrot.slane %v1316_v26, 7  ;;  %v1537_v40 = vadd.f32 %v1529_v14, %v1465_v24 }
 0x348   :  { %v1347_v24 = vpop.f32.mrf.mxu0 }
 0x349   :  { %v1405_v4 = vsel %vm548_vm1, %v1401_v20, %v1402_v7  ;;  %v1376_v36 = vpop.f32.mrf.mxu1  ;;  %v1468_v20 = vrot.slane %v6273_v52, 1  ;;  %v1549_v19 = vadd.f32 %v4864_v57, %v1537_v40 }
 0x34a   :  { %v1458_v53 = vmul.f32 %v6283_v6, %v1405_v4  ;;  %v1475_v11 = vrot.slane %v1376_v36, 1  ;;  %v1563_v4 = vrot.slane %v6370_v43, 7 }
 0x34b   :  { %v1482_v27 = vsel %vm693_vm2, %v1468_v20, %v1469_v2  ;;  %v6365_v13 = vmax.f32 %v1549_v19, 0.0  ;;  %v1587_v19 = vrot.slane %v6370_v43, 1 }
 0x34c   :  { %v1466_v15 = vadd.f32 %v1458_v53, %v1345_v21  ;;  %v1476_v39 = vsel %vm693_vm2, %v1474_v44, %v1475_v11  ;;  %v1483_v5 = vsel %vm693_vm2, %v1475_v11, %v1468_v20  ;;  %v1524_v48 = vmul.f32 %v6287_v29, %v1482_v27 }
 0x34d   :  { %v1530_v62 = vmul.f32 %v6291_v30, %v1476_v39  ;;  %v1531_v26 = vmul.f32 %v6293_v63, %v1483_v5  ;;  %v1565_v23 = vrot.slane %v6365_v13, 7  ;;  %v1589_v55 = vrot.slane %v6365_v13, 1 }
 0x34e   :  { %v1318_v45 = vpop.f32.mrf.mxu3  ;;  %v1588_v53 = vrot.slane %v6374_v60, 1 }
 0x34f   :  { %v1538_v61 = vadd.f32 %v1530_v62, %v1466_v15  ;;  %v1403_v58 = vrot.slane %v1318_v45, 7 }
 0x350   :  { %v1594_v39 = vsel %vm693_vm2, %v1588_v53, %v1589_v55 }
 0x351   :  { %v1404_v44 = vsel %vm548_vm1, %v1402_v7, %v1403_v58  ;;  %v1411_v52 = vsel %vm548_vm1, %v1403_v58, %v1396_v33  ;;  %v1550_v17 = vadd.f32 %v4864_v57, %v1538_v61  ;;  %v6376_v33 = vmax.f32 %v1545_v25, 0.0 }
 0x352   :  { %v1452_v56 = vmul.f32 %v6275_v31, %v1411_v52  ;;  %v1459_v2 = vmul.f32 %v6285_v9, %v1404_v44  ;;  %v6378_v7 = vmax.f32 %v1546_v10, 0.0  ;;  %v1604_v59 = vmul.f32 %v1594_v39, %v6301_v18  ;;  %v4645_v39 = vld [vmem:[#allocation7] sm:$0xff] }
 0x353   :  { %v1558_v14 = vmax.f32 %v1550_v17, 0.0  ;;  %v1561_v38 = vrot.slane %v6376_v33, 7  ;;  %v1595_v10 = vsel %vm693_vm2, %v1587_v19, %v1588_v53 }
 0x354   :  { %v1460_v41 = vadd.f32 %v1452_v56, %v6271_v54  ;;  %v1467_v16 = vadd.f32 %v1459_v2, %v1347_v24  ;;  %v1564_v54 = vrot.slane %v6374_v60, 7  ;;  %v1562_v12 = vrot.slane %v6378_v7, 7 }
 0x355   :  { %v1590_v51 = vrot.slane %v1558_v14, 1  ;;  %v1566_v21 = vrot.slane %v1558_v14, 7  ;;  %v1586_v20 = vrot.slane %v6378_v7, 1  ;;  %v1603_v24 = vmul.f32 %v1595_v10, %v6299_v46  ;;  %v3954_v10 = vld [vmem:[%s6984_s14 + $0xb4] sm:$0xf0] }
 0x356   :  { %v1532_v32 = vadd.f32 %v1524_v48, %v1460_v41  ;;  %v1539_v37 = vadd.f32 %v1531_v26, %v1467_v16  ;;  %v1570_v15 = vsel %vm548_vm1, %v1564_v54, %v1565_v23  ;;  %v1572_v62 = vsel %vm548_vm1, %v1562_v12, %v1563_v4 }
 0x357   :  { %v1593_v11 = vsel %vm693_vm2, %v1589_v55, %v1590_v51  ;;  %v1571_v27 = vsel %vm548_vm1, %v1563_v4, %v1564_v54  ;;  %v1581_v25 = vmul.f32 %v1570_v15, %v6281_v49  ;;  %v1596_v48 = vsel %vm693_vm2, %v1586_v20, %v1587_v19  ;;  %v3965_v19 = vld [vmem:[%s6901_s13 + $0x38] sm:$0xff] }
 0x358   :  { %v1544_v36 = vadd.f32 %v4864_v57, %v1532_v32  ;;  %v1551_v40 = vadd.f32 %v4864_v57, %v1539_v37  ;;  %v1569_v57 = vsel %vm548_vm1, %v1565_v23, %v1566_v21  ;;  %v1605_v58 = vmul.f32 %v1593_v11, %v6289_v50 }
 0x359   :  { %v1582_v17 = vmul.f32 %v1569_v57, %v6283_v6  ;;  %v1585_v26 = vrot.slane %v6376_v33, 1  ;;  %v1573_v6 = vsel %vm548_vm1, %v1561_v38, %v1562_v12  ;;  %v1602_v55 = vmul.f32 %v1596_v48, %v6339_v34  ;;  %v3962_v57 = vld [vmem:[%s6901_s13 + $0x20] sm:$0xff]  ;;  %v4662_v48 = vld [vmem:[%s6984_s14 + $0x7c] sm:$0xf] }
 0x35a   :  { %v1552_v47 = vmax.f32 %v1544_v36, 0.0  ;;  %v1559_v42 = vmax.f32 %v1551_v40, 0.0  ;;  %v1613_v2 = vmax.f32 %v1581_v25, %v1605_v58  ;;  %v3952_v58 = vld [vmem:[%s6984_s14 + $0xa8] sm:$0xf]  ;;  %v4668_v25 = vld [vmem:[%s6984_s14 + $0xac] sm:$0xf] }
 0x35c   :  { %v1567_v45 = vrot.slane %v1559_v42, 7  ;;  %v1584_v3 = vrot.slane %v1552_v47, 1  ;;  %v1591_v61 = vrot.slane %v1559_v42, 1  ;;  %v1560_v50 = vrot.slane %v1552_v47, 7 }
 0x35e   :  { %v1568_v5 = vsel %vm548_vm1, %v1566_v21, %v1567_v45  ;;  %v1592_v44 = vsel %vm693_vm2, %v1590_v51, %v1591_v61  ;;  %v1599_v52 = vsel %vm693_vm2, %v1591_v61, %v1584_v3  ;;  %v1580_v51 = vmul.f32 %v1571_v27, %v6297_v1  ;;  %v3964_v61 = vld [vmem:[%s6901_s13 + $0x30] sm:$0xff] }
 0x35f   :  { %v1583_v56 = vmul.f32 %v1568_v5, %v6285_v9  ;;  %v1606_v49 = vmul.f32 %v1592_v44, %v6291_v30  ;;  %v1607_v18 = vmul.f32 %v1599_v52, %v6293_v63  ;;  %v1579_v9 = vmul.f32 %v1572_v62, %v6295_v28  ;;  %v1930_v62 = vld [vmem:[%s6901_s13 + $0x10] sm:$0xff]  ;;  %v4666_v44 = vld [vmem:[%s6984_s14 + $0x98] sm:$0xf0] }
 0x360   :  { %v1574_v30 = vsel %vm548_vm1, %v1560_v50, %v1561_v38  ;;  %v1575_v63 = vsel %vm548_vm1, %v1567_v45, %v1560_v50  ;;  %v1598_v46 = vsel %vm693_vm2, %v1584_v3, %v1585_v26  ;;  %v1612_v23 = vmax.f32 %v1580_v51, %v1604_v59  ;;  %v3963_v45 = vld [vmem:[%s6901_s13 + $0x28] sm:$0xff]  ;;  %v1931_v3 = vld [vmem:[%s6901_s13 + $0x18] sm:$0xff]  ;;  %v4669_v27 = vld [vmem:[%s6984_s14 + $0xb0] sm:$0xf0] }
 0x361   :  { %v1614_v41 = vmax.f32 %v1582_v17, %v1606_v49  ;;  %v1615_v16 = vmax.f32 %v1583_v56, %v1607_v18  ;;  %v1621_v1 = vmax.f32 %v6365_v13, %v1613_v2  ;;  %v1578_v21 = vmul.f32 %v1573_v6, %v6321_v22  ;;  %v3940_v5 = vld [vmem:[%s6984_s14 + $0x90] sm:$0xf]  ;;  %v4665_v50 = vld [vmem:[%s6984_s14 + $0x94] sm:$0xf]  ;;  %v3942_v17 = vld [vmem:[%s6984_s14 + $0x9c] sm:$0xf0] }
 0x362   :  { %v1611_v4 = vmax.f32 %v1579_v9, %v1603_v24  ;;  %v1597_v28 = vsel %vm693_vm2, %v1585_v26, %v1586_v20  ;;  %v1576_v40 = vmul.f32 %v1575_v63, %v6275_v31  ;;  %v1577_v54 = vmul.f32 %v1574_v30, %v6303_v0  ;;  %v1928_v20 = vld [vmem:[%s6901_s13] sm:$0xff]  ;;  %v3928_v18 = vld [vmem:[%s6984_s14 + $0x78] sm:$0xf]  ;;  %v3930_v26 = vld [vmem:[%s6984_s14 + $0x84] sm:$0xf0] }
 0x363   :  { %v1622_v32 = vmax.f32 %v1558_v14, %v1614_v41  ;;  %v1623_v37 = vmax.f32 %v1559_v42, %v1615_v16  ;;  %v1600_v53 = vmul.f32 %v1598_v46, %v6287_v29  ;;  %v1620_v14 = vmax.f32 %v6374_v60, %v1612_v23  ;;  %v4646_v60 = vld [vmem:[#allocation7 + $0x8] sm:$0xff]  ;;  %v3916_v41 = vld [vmem:[%s6984_s14 + $0x60] sm:$0xf]  ;;  %v4660_v16 = vld [vmem:[%s6984_s14 + $0x68] sm:$0xf0] }
 0x364   :  { %v1610_v11 = vmax.f32 %v1578_v21, %v1602_v55  ;;  %v1601_v34 = vmul.f32 %v1597_v28, %v6336_v8  ;;  %v1619_v22 = vmax.f32 %v6370_v43, %v1611_v4  ;;  %v3953_v59 = vor.u32 %v4669_v27, %v3952_v58  ;;  %v4663_v2 = vld [vmem:[%s6984_s14 + $0x80] sm:$0xf0]  ;;  %v3918_v9 = vld [vmem:[%s6984_s14 + $0x6c] sm:$0xf0]  ;;  %v3904_v46 = vld [vmem:[%s6984_s14 + $0x48] sm:$0xf] }
 0x365   :  { %v1631_v36 = vpack.c.bf16 %v1623_v37, %v1622_v32  ;;  %v1630_v13 = vpack.c.bf16 %v1621_v1, %v1620_v14  ;;  %v1608_v38 = vmax.f32 %v1576_v40, %v1600_v53  ;;  %v3957_v52 = vor.u32 %v4668_v25, %v3954_v10  ;;  %v4659_v6 = vld [vmem:[%s6984_s14 + $0x64] sm:$0xf]  ;;  %v4657_v32 = vld [vmem:[%s6984_s14 + $0x50] sm:$0xf0]  ;;  %v4656_v37 = vld [vmem:[%s6984_s14 + $0x4c] sm:$0xf] }
 0x366   :  { %v1609_v12 = vmax.f32 %v1577_v54, %v1601_v34  ;;  %v1618_v42 = vmax.f32 %v6378_v7, %v1610_v11  ;;  %v1929_v7 = vld [vmem:[%s6901_s13 + $0x8] sm:$0xff]  ;;  %1871 = vmatpush.bf16.msra.mxu3 %v3953_v59  ;;  %v3941_v56 = vor.u32 %v4666_v44, %v3940_v5  ;;  %v3945_v49 = vor.u32 %v4665_v50, %v3942_v17  ;;  %v3906_v55 = vld [vmem:[%s6984_s14 + $0x54] sm:$0xf0]  ;;  %v3892_v21 = vld [vmem:[%s6984_s14 + $0x30] sm:$0xf] }
 0x367   :  { %1653 = vmatpush.bf16.msrb.mxu2 %v1631_v36  ;;  %v1616_v31 = vmax.f32 %v1552_v47, %v1608_v38  ;;  %v3929_v24 = vor.u32 %v4663_v2, %v3928_v18  ;;  %v3933_v51 = vor.u32 %v4662_v48, %v3930_v26  ;;  %v3917_v30 = vor.u32 %v4660_v16, %v3916_v41  ;;  %v4654_v4 = vld [vmem:[%s6984_s14 + $0x38] sm:$0xf0]  ;;  %v4653_v28 = vld [vmem:[%s6984_s14 + $0x34] sm:$0xf]  ;;  %v3894_v40 = vld [vmem:[%s6984_s14 + $0x3c] sm:$0xf0] }
 0x368   :  { %v1629_v15 = vpack.c.bf16 %v1619_v22, %v1618_v42  ;;  %v1617_v0 = vmax.f32 %v6376_v33, %v1609_v12  ;;  %v3921_v63 = vor.u32 %v4659_v6, %v3918_v9  ;;  %v3905_v23 = vor.u32 %v4657_v32, %v3904_v46  ;;  %v3880_v53 = vld [vmem:[%s6984_s14 + $0x18] sm:$0xf]  ;;  %v4651_v14 = vld [vmem:[%s6984_s14 + $0x20] sm:$0xf0]  ;;  %v4650_v11 = vld [vmem:[%s6984_s14 + $0x1c] sm:$0xf] }
 0x369   :  { %v3909_v1 = vor.u32 %v4656_v37, %v3906_v55  ;;  %v3893_v36 = vor.u32 %v4654_v4, %v3892_v21  ;;  %v3897_v54 = vor.u32 %v4653_v28, %v3894_v40  ;;  %v3881_v34 = vor.u32 %v4651_v14, %v3880_v53  ;;  %v3868_v38 = vld [vmem:[%s6984_s14] sm:$0xf]  ;;  %v4648_v12 = vld [vmem:[%s6984_s14 + $0x8] sm:$0xf0]  ;;  %v4647_v42 = vld [vmem:[%s6984_s14 + $0x4] sm:$0xf] }
 0x36a   :  { %v1628_v29 = vpack.c.bf16 %v1617_v0, %v1616_v31  ;;  %1872 = vmatpush.bf16.msra.mxu3 %v3941_v56  ;;  %v3870_v31 = vld [vmem:[%s6984_s14 + $0xc] sm:$0xf0]  ;;  %v4866_v25 = vld [vmem:[#allocation6 + $0x1] ss:$0 sm:$0xff]  ;;  %v4658_v5 = vld [vmem:[%s6984_s14 + $0x58] sm:$0xf0] }
 0x36b   :  { %1654 = vmatpush.bf16.msrb.mxu2 %v1630_v13  ;;  %v3882_v13 = vld [vmem:[%s6984_s14 + $0x24] sm:$0xf0]  ;;  %v3873_v0 = vor.u32 %v4647_v42, %v3870_v31  ;;  %v3912_v10 = vld [vmem:[%s6984_s14 + $0x50] sm:$0xf]  ;;  %v3900_v44 = vld [vmem:[%s6984_s14 + $0x38] sm:$0xf] }
 0x36c   :  { %v3885_v22 = vor.u32 %v4650_v11, %v3882_v13  ;;  %v3913_v17 = vor.u32 %v4658_v5, %v3912_v10  ;;  %v4655_v56 = vld [vmem:[%s6984_s14 + $0x40] sm:$0xf0]  ;;  %v3888_v16 = vld [vmem:[%s6984_s14 + $0x20] sm:$0xf] }
 0x36d   :  { %v3901_v2 = vor.u32 %v4655_v56, %v3900_v44 }
 0x36e   :  { %1873 = vmatpush.bf16.msra.mxu3 %v3929_v24 }
 0x36f   :  { %1655 = vmatpush.bf16.msrb.mxu2 %v1629_v15  ;;  %v3869_v15 = vor.u32 %v4648_v12, %v3868_v38 }
 0x372   :  { %1874 = vmatpush.bf16.msra.mxu3 %v3917_v30  ;;  %v3876_v30 = vld [vmem:[%s6984_s14 + $0x8] sm:$0xf] }
 0x373   :  { %1656 = vmatpush.bf16.msrb.mxu2 %v1628_v29  ;;  %v3960_v29 = vld [vmem:[%s6984_s14 + $0xb0] sm:$0xf] }
 0x376   :  { %3864 = vmatmul.msk.bf16.vlgmr.msrb.gmra.mxu2 %vm1642_vm3, %v4645_v39  ;;  %1875 = vmatpush.bf16.msra.mxu3 %v3905_v23  ;;  %v4670_v39 = vld [vmem:[%s6984_s14 + $0xb8] sm:$0xf0] }
 0x377   :  { %1890 = vmatpush.bf16.msra.mxu2 %v3957_v52  ;;  %v4865_v52 = vld [vmem:[#allocation6] ss:$0 sm:$0xff] }
 0x37a   :  { %1876 = vmatpush.bf16.msra.mxu3 %v3893_v36 }
 0x37b   :  { %1891 = vmatpush.bf16.msra.mxu2 %v3945_v49 }
 0x37e   :  { %1877 = vmatpush.bf16.msra.mxu3 %v3881_v34 }
 0x37f   :  { %1892 = vmatpush.bf16.msra.mxu2 %v3933_v51  ;;  %v4652_v51 = vld [vmem:[%s6984_s14 + $0x28] sm:$0xf0] }
 0x380   :  { %v3889_v6 = vor.u32 %v4652_v51, %v3888_v16 }
 0x382   :  { %1878 = vmatpush.bf16.msra.mxu3 %v3869_v15 }
 0x383   :  { %1893 = vmatpush.bf16.msra.mxu2 %v3921_v63  ;;  %v4649_v63 = vld [vmem:[%s6984_s14 + $0x10] sm:$0xf0] }
 0x384   :  { %v3877_v23 = vor.u32 %v4649_v63, %v3876_v30 }
 0x386   :  { %3865 = vmatmul.msk.bf16.gmra.mxu2 %vm1642_vm3, %v4646_v60  ;;  %v3961_v60 = vor.u32 %v4670_v39, %v3960_v29 }
 0x387   :  { %1894 = vmatpush.bf16.msra.mxu2 %v3909_v1 }
 0x388   :  { %1909 = vmatpush.bf16.msrb.mxu3 %v3961_v60 }
 0x38b   :  { %1895 = vmatpush.bf16.msra.mxu2 %v3897_v54 }
 0x38f   :  { %1896 = vmatpush.bf16.msra.mxu2 %v3885_v22 }
 0x393   :  { %1897 = vmatpush.bf16.msra.mxu2 %v3873_v0 }
 0x3f9   :  { %v6443_v8 = vpop.f32.mrf.mxu2 }
 0x3fa   :  { %1686 = vrot.lane.b32.xlu0 %v6443_v8, %s5229_s29  ;;  %1671 = vrot.lane.b32.xlu1 %v6443_v8, %s6957_s3 }
 0x401   :  { %v6448_v43 = vpop.f32.mrf.mxu2 }
 0x402   :  { %1688 = vrot.lane.b32.xlu1 %v6448_v43, %s5229_s29  ;;  %1673 = vrot.lane.b32.xlu2 %v6448_v43, %s6957_s3 }
 0x409   :  { %v6453_v33 = vpop.f32.mrf.mxu2 }
 0x40a   :  { %1690 = vrot.lane.b32.xlu1 %v6453_v33, %s5229_s29  ;;  %1675 = vrot.lane.b32.xlu2 %v6453_v33, %s6957_s3 }
 0x411   :  { %v6461_v47 = vpop.f32.mrf.mxu2 }
 0x412   :  { %1952 = vperm.xlu1 %4859, %v1929_v7   ;;  %1692 = vrot.lane.b32.xlu2 %v6461_v47, %s5229_s29  ;;  %v3948_v7 = vld [vmem:[%s6984_s14 + $0x98] sm:$0xf] }
 0x413   :  { %1677 = vrot.lane.b32.xlu0 %v6461_v47, %s6957_s3 }
 0x41a   :  { %1983 = vperm.xlu1 %4859, %v3962_v57   ;;  %1957 = vperm.xlu2 %4860, %v1930_v62   ;;  %v4667_v57 = vld [vmem:[%s6984_s14 + $0xa0] sm:$0xf0] }
 0x41b   :  { %1947 = vperm.xlu0 %4858, %v1928_v20   ;;  %v3949_v62 = vor.u32 %v4667_v57, %v3948_v7  ;;  %v3936_v20 = vld [vmem:[%s6984_s14 + $0x80] sm:$0xf] }
 0x41d   :  { %1910 = vmatpush.bf16.msrb.mxu3 %v3949_v62 }
 0x422   :  { %1998 = vperm.xlu1 %4859, %v3965_v19   ;;  %1988 = vperm.xlu2 %4860, %v3963_v45   ;;  %v4664_v19 = vld [vmem:[%s6984_s14 + $0x88] sm:$0xf0] }
 0x423   :  { %1962 = vperm.xlu0 %4858, %v1931_v3   ;;  %v3937_v45 = vor.u32 %v4664_v19, %v3936_v20  ;;  %v3924_v3 = vld [vmem:[%s6984_s14 + $0x68] sm:$0xf] }
 0x425   :  { %1911 = vmatpush.bf16.msrb.mxu3 %v3937_v45 }
 0x42b   :  { %1993 = vperm.xlu0 %4858, %v3964_v61   ;;  %v4661_v61 = vld [vmem:[%s6984_s14 + $0x70] sm:$0xf0] }
 0x42c   :  { %v3925_v58 = vor.u32 %v4661_v61, %v3924_v3 }
 0x42e   :  { %1912 = vmatpush.bf16.msrb.mxu3 %v3925_v58 }
 0x432   :  { %1913 = vmatpush.bf16.msrb.mxu3 %v3913_v17 }
 0x436   :  { %1914 = vmatpush.bf16.msrb.mxu3 %v3901_v2 }
 0x43a   :  { %1915 = vmatpush.bf16.msrb.mxu3 %v3889_v6 }
 0x43e   :  { %1916 = vmatpush.bf16.msrb.mxu3 %v3877_v23 }
 0x45c   :  { %v1674_v50 = vpop.permute.xlu2 %1673 }
 0x45d   :  { %v1683_v24 = vmul.f32 %v4865_v52, %v1674_v50 }
 0x464   :  { %v1676_v46 = vpop.permute.xlu2 %1675 }
 0x465   :  { %v1684_v28 = vmul.f32 %v4865_v52, %v1676_v46 }
 0x46c   :  { %v1672_v27 = vpop.permute.xlu1 %1671  ;;  %v1687_v59 = vpop.permute.xlu0 %1686 }
 0x46d   :  { %v1697_v49 = vmul.f32 %v4866_v25, %v1687_v59  ;;  %v1682_v18 = vmul.f32 %v4865_v52, %v1672_v27  ;;  %v1693_v4 = vpop.permute.xlu2 %1692 }
 0x46e   :  { %v1700_v40 = vmul.f32 %v4866_v25, %v1693_v4 }
 0x46f   :  { %v1701_v26 = vmax.f32 %v1682_v18, %v1697_v49 }
 0x471   :  { %v1705_v32 = vmax.f32 %v6443_v8, %v1701_v26 }
 0x474   :  { %v1689_v48 = vpop.permute.xlu1 %1688 }
 0x475   :  { %v1698_v41 = vmul.f32 %v4866_v25, %v1689_v48 }
 0x477   :  { %v1702_v9 = vmax.f32 %v1683_v24, %v1698_v41  ;;  %v4867_v24 = vld [vmem:[#allocation9] ss:$0 sm:$0xff] }
 0x479   :  { %v1706_v37 = vmax.f32 %v6448_v43, %v1702_v9 }
 0x47b   :  { %v1709_v55 = vpack.c.bf16 %v1706_v37, %v1705_v32 }
 0x47c   :  { %v1691_v1 = vpop.permute.xlu1 %1690 }
 0x47d   :  { %1879 = vmatmul.bf16.vlgmr.msra.gmra.mxu3 %v1709_v55  ;;  %1898 = vmatmul.bf16.vlgmr.msra.gmra.mxu2 %v1709_v55  ;;  %v1699_v21 = vmul.f32 %v4866_v25, %v1691_v1 }
 0x47f   :  { %v1703_v54 = vmax.f32 %v1684_v28, %v1699_v21 }
 0x481   :  { %v1707_v11 = vmax.f32 %v6453_v33, %v1703_v54  ;;  %v6639_v33 = vpop.permute.xlu2 %1957 }
 0x484   :  { %v6635_v15 = vpop.permute.xlu1 %1952 }
 0x485   :  { %v1678_v36 = vpop.permute.xlu0 %1677 }
 0x486   :  { %v1685_v53 = vmul.f32 %v4865_v52, %v1678_v36 }
 0x488   :  { %v1704_v14 = vmax.f32 %v1685_v53, %v1700_v40 }
 0x489   :  { %v1989_v5 = vpop.permute.xlu2 %1988 }
 0x48a   :  { %v1708_v8 = vmax.f32 %v6461_v47, %v1704_v14 }
 0x48c   :  { %v1710_v43 = vpack.c.bf16 %v1708_v8, %v1707_v11  ;;  %v6645_v19 = vpop.permute.xlu1 %1983 }
 0x48d   :  { %v6637_v31 = vpop.permute.xlu0 %1947 }
 0x48e   :  { %1884 = vmatmul.bf16.gmra.mxu3 %v1710_v43  ;;  %1903 = vmatmul.bf16.gmra.mxu2 %v1710_v43 }
 0x494   :  { %v1999_v9 = vpop.permute.xlu1 %1998 }
 0x495   :  { %v1963_v58 = vpop.permute.xlu0 %1962 }
 0x49d   :  { %v1994_v30 = vpop.permute.xlu0 %1993 }
 0x49e   :  { %1917 = vmatmul.bf16.vlgmr.msrb.gmra.mxu3 %v1709_v55 }
 0x4ae   :  { %1922 = vmatmul.bf16.gmra.mxu3 %v1710_v43 }
 0x500   :  { %v1880_v34 = vpop.f32.mrf.mxu3  ;;  %v1899_v12 = vpop.f32.mrf.mxu2 }
 0x501   :  { %v1937_v60 = vrot.slane %v1880_v34, 7 }
 0x508   :  { %v1882_v13 = vpop.f32.mrf.mxu3  ;;  %v1901_v0 = vpop.f32.mrf.mxu2 }
 0x509   :  { %v1938_v47 = vrot.slane %v1882_v13, 7 }
 0x50b   :  { %v1943_v57 = vsel %vm548_vm1, %v1937_v60, %v1938_v47 }
 0x50c   :  { %v1966_v45 = vmul.f32 %v6635_v15, %v1943_v57 }
 0x50e   :  { %v1970_v50 = vadd.f32 %v1966_v45, %v1901_v0 }
 0x511   :  { %v1885_v22 = vpop.f32.mrf.mxu3  ;;  %v1904_v25 = vpop.f32.mrf.mxu2 }
 0x512   :  { %v1939_v27 = vrot.slane %v1885_v22, 7 }
 0x514   :  { %v1942_v56 = vsel %vm548_vm1, %v1938_v47, %v1939_v27 }
 0x515   :  { %v1967_v26 = vmul.f32 %v6639_v33, %v1942_v56 }
 0x517   :  { %v1971_v23 = vadd.f32 %v1967_v26, %v1904_v25  ;;  %v4068_v26 = vld [vmem:[%s6906_s18 + $0x18] sm:$0xff] }
 0x519   :  { %v1887_v38 = vpop.f32.mrf.mxu3  ;;  %v1906_v63 = vpop.f32.mrf.mxu2 }
 0x51a   :  { %v1940_v39 = vrot.slane %v1887_v38, 7 }
 0x51c   :  { %v1944_v62 = vsel %vm548_vm1, %v1940_v39, %v1937_v60  ;;  %v1941_v18 = vsel %vm548_vm1, %v1939_v27, %v1940_v39 }
 0x51d   :  { %v1965_v59 = vmul.f32 %v6637_v31, %v1944_v62  ;;  %v1968_v41 = vmul.f32 %v1963_v58, %v1941_v18 }
 0x51f   :  { %v1969_v49 = vadd.f32 %v1965_v59, %v1899_v12  ;;  %v1972_v55 = vadd.f32 %v1968_v41, %v1906_v63  ;;  %v4057_v41 = vld [vmem:[%s6904_s16 + $0xa8] sm:$0xf]  ;;  %v4695_v63 = vld [vmem:[%s6904_s16 + $0xb8] sm:$0xf0] }
 0x521   :  { %v1918_v42 = vpop.f32.mrf.mxu3 }
 0x522   :  { %v1973_v20 = vrot.slane %v1918_v42, 1 }
 0x529   :  { %v1920_v29 = vpop.f32.mrf.mxu3 }
 0x52a   :  { %v1974_v7 = vrot.slane %v1920_v29, 1 }
 0x52c   :  { %v1979_v3 = vsel %vm693_vm2, %v1973_v20, %v1974_v7 }
 0x52d   :  { %v2001_v44 = vmul.f32 %v6645_v19, %v1979_v3 }
 0x52f   :  { %v2005_v48 = vadd.f32 %v2001_v44, %v1969_v49 }
 0x531   :  { %v1923_v61 = vpop.f32.mrf.mxu3  ;;  %v2013_v46 = vadd.f32 %v4867_v24, %v2005_v48  ;;  %v4067_v48 = vld [vmem:[%s6906_s18 + $0x10] sm:$0xff] }
 0x532   :  { %v1975_v10 = vrot.slane %v1923_v61, 1 }
 0x533   :  { %v2017_v40 = vmax.f32 %v2013_v46, 0.0 }
 0x534   :  { %v1978_v52 = vsel %vm693_vm2, %v1974_v7, %v1975_v10 }
 0x535   :  { %v2002_v17 = vmul.f32 %v1989_v5, %v1978_v52  ;;  %v2021_v34 = vrot.slane %v2017_v40, 7  ;;  %v2033_v13 = vrot.slane %v2017_v40, 1 }
 0x537   :  { %v2006_v2 = vadd.f32 %v2002_v17, %v1970_v50 }
 0x539   :  { %v1925_v16 = vpop.f32.mrf.mxu3  ;;  %v2014_v51 = vadd.f32 %v4867_v24, %v2006_v2 }
 0x53a   :  { %v1976_v6 = vrot.slane %v1925_v16, 1  ;;  %v4694_v16 = vld [vmem:[%s6904_s16 + $0xb0] sm:$0xf0] }
 0x53b   :  { %v2018_v4 = vmax.f32 %v2014_v51, 0.0  ;;  %v4693_v51 = vld [vmem:[%s6904_s16 + $0xac] sm:$0xf] }
 0x53c   :  { %v1977_v32 = vsel %vm693_vm2, %v1975_v10, %v1976_v6  ;;  %v1980_v37 = vsel %vm693_vm2, %v1976_v6, %v1973_v20  ;;  %v4058_v6 = vor.u32 %v4694_v16, %v4057_v41 }
 0x53d   :  { %v2003_v1 = vmul.f32 %v1994_v30, %v1977_v32  ;;  %v2004_v21 = vmul.f32 %v1999_v9, %v1980_v37  ;;  %v2022_v14 = vrot.slane %v2018_v4, 7  ;;  %v2034_v11 = vrot.slane %v2018_v4, 1  ;;  %v4045_v37 = vld [vmem:[%s6904_s16 + $0x90] sm:$0xf] }
 0x53e   :  { %2266 = vmatpush.bf16.msra.mxu1 %v4058_v6  ;;  %v4673_v6 = vld [vmem:[%s6904_s16 + $0x8] sm:$0xf0] }
 0x53f   :  { %v2007_v28 = vadd.f32 %v2003_v1, %v1971_v23  ;;  %v2008_v36 = vadd.f32 %v2004_v21, %v1972_v55  ;;  %v2027_v0 = vsel %vm548_vm1, %v2021_v34, %v2022_v14  ;;  %v2039_v29 = vsel %vm693_vm2, %v2033_v13, %v2034_v11  ;;  %v4691_v23 = vld [vmem:[%s6904_s16 + $0x98] sm:$0xf0]  ;;  %v4690_v55 = vld [vmem:[%s6904_s16 + $0x94] sm:$0xf]  ;;  %v4047_v21 = vld [vmem:[%s6904_s16 + $0x9c] sm:$0xf0] }
 0x540   :  { %v2030_v61 = vmul.f32 %v2027_v0, %v6635_v15  ;;  %v2041_v25 = vmul.f32 %v2039_v29, %v6645_v19  ;;  %v4671_v15 = vld [vmem:[%s6903_s15] sm:$0xff]  ;;  %v4046_v1 = vor.u32 %v4691_v23, %v4045_v37  ;;  %v4023_v0 = vld [vmem:[%s6904_s16 + $0x6c] sm:$0xf0]  ;;  %v4029_v29 = vld [vmem:[%s6904_s16 + $0x68] sm:$0xf] }
 0x541   :  { %v2015_v54 = vadd.f32 %v4867_v24, %v2007_v28  ;;  %v2016_v53 = vadd.f32 %v4867_v24, %v2008_v36  ;;  %v2308_v24 = vld [vmem:[%s6906_s18] sm:$0xff]  ;;  %v4050_v36 = vor.u32 %v4690_v55, %v4047_v21  ;;  %v4868_v21 = vld [vmem:[#allocation10] ss:$0 sm:$0xff] }
 0x542   :  { %v4692_v28 = vld [vmem:[%s6904_s16 + $0xa0] sm:$0xf0]  ;;  %2267 = vmatpush.bf16.msra.mxu1 %v4046_v1 }
 0x543   :  { %v2019_v8 = vmax.f32 %v2015_v54, 0.0  ;;  %v2020_v43 = vmax.f32 %v2016_v53, 0.0  ;;  %v4033_v54 = vld [vmem:[%s6904_s16 + $0x78] sm:$0xf]  ;;  %v4688_v53 = vld [vmem:[%s6904_s16 + $0x80] sm:$0xf0] }
 0x545   :  { %v2023_v22 = vrot.slane %v2019_v8, 7  ;;  %v2024_v38 = vrot.slane %v2020_v43, 7  ;;  %v2035_v12 = vrot.slane %v2019_v8, 1  ;;  %v2036_v42 = vrot.slane %v2020_v43, 1 }
 0x547   :  { %v2025_v47 = vsel %vm548_vm1, %v2023_v22, %v2024_v38  ;;  %v2026_v39 = vsel %vm548_vm1, %v2022_v14, %v2023_v22  ;;  %v2037_v60 = vsel %vm693_vm2, %v2035_v12, %v2036_v42  ;;  %v2040_v7 = vsel %vm693_vm2, %v2036_v42, %v2033_v13  ;;  %v4687_v14 = vld [vmem:[%s6904_s16 + $0x7c] sm:$0xf]  ;;  %v4684_v42 = vld [vmem:[%s6904_s16 + $0x64] sm:$0xf] }
 0x548   :  { %v2031_v57 = vmul.f32 %v2026_v39, %v6639_v33  ;;  %v2032_v62 = vmul.f32 %v2025_v47, %v1963_v58  ;;  %v2043_v20 = vmul.f32 %v2037_v60, %v1994_v30  ;;  %v2044_v45 = vmul.f32 %v2040_v7, %v1999_v9  ;;  %v4059_v9 = vld [vmem:[%s6904_s16 + $0xb4] sm:$0xf0]  ;;  %v4065_v30 = vld [vmem:[%s6904_s16 + $0xb0] sm:$0xf]  ;;  %v4686_v47 = vld [vmem:[%s6904_s16 + $0x70] sm:$0xf0] }
 0x549   :  { %v2028_v3 = vsel %vm548_vm1, %v2024_v38, %v2021_v34  ;;  %v2038_v27 = vsel %vm693_vm2, %v2034_v11, %v2035_v12  ;;  %v4062_v46 = vor.u32 %v4693_v51, %v4059_v9  ;;  %v4066_v32 = vor.u32 %v4695_v63, %v4065_v30  ;;  %v4689_v34 = vld [vmem:[%s6904_s16 + $0x88] sm:$0xf0]  ;;  %v4021_v38 = vld [vmem:[%s6904_s16 + $0x60] sm:$0xf]  ;;  %v4672_v9 = vld [vmem:[%s6904_s16 + $0x4] sm:$0xf] }
 0x54a   :  { %v2047_v59 = vmax.f32 %v2031_v57, %v2043_v20  ;;  %v2048_v10 = vmax.f32 %v2032_v62, %v2044_v45  ;;  %v2029_v44 = vmul.f32 %v2028_v3, %v6637_v31  ;;  %v2042_v52 = vmul.f32 %v2038_v27, %v1989_v5  ;;  %v2309_v31 = vld [vmem:[%s6906_s18 + $0x8] sm:$0xff]  ;;  %v4682_v62 = vld [vmem:[%s6904_s16 + $0x50] sm:$0xf0]  ;;  %v4011_v3 = vld [vmem:[%s6904_s16 + $0x54] sm:$0xf0] }
 0x54b   :  { %2280 = vmatpush.bf16.msrb.mxu2 %v4062_v46  ;;  %2294 = vmatpush.bf16.msra.mxu3 %v4066_v32  ;;  %v4034_v11 = vor.u32 %v4688_v53, %v4033_v54  ;;  %v4685_v12 = vld [vmem:[%s6904_s16 + $0x68] sm:$0xf0]  ;;  %v4026_v60 = vor.u32 %v4684_v42, %v4023_v0  ;;  %v4030_v7 = vor.u32 %v4686_v47, %v4029_v29  ;;  %v4009_v57 = vld [vmem:[%s6904_s16 + $0x48] sm:$0xf]  ;;  %v4683_v27 = vld [vmem:[%s6904_s16 + $0x58] sm:$0xf0] }
 0x54c   :  { %v2051_v50 = vmax.f32 %v2019_v8, %v2047_v59  ;;  %v2052_v33 = vmax.f32 %v2020_v43, %v2048_v10  ;;  %v2045_v58 = vmax.f32 %v2029_v44, %v2041_v25  ;;  %v2046_v17 = vmax.f32 %v2030_v61, %v2042_v52  ;;  %v4035_v8 = vld [vmem:[%s6904_s16 + $0x84] sm:$0xf0]  ;;  %v4041_v43 = vld [vmem:[%s6904_s16 + $0x80] sm:$0xf]  ;;  %v4681_v20 = vld [vmem:[%s6904_s16 + $0x4c] sm:$0xf] }
 0x54d   :  { %v4038_v13 = vor.u32 %v4687_v14, %v4035_v8  ;;  %v4042_v22 = vor.u32 %v4689_v34, %v4041_v43  ;;  %2268 = vmatpush.bf16.msra.mxu1 %v4034_v11  ;;  %v4022_v39 = vor.u32 %v4685_v12, %v4021_v38  ;;  %v4010_v45 = vor.u32 %v4682_v62, %v4009_v57  ;;  %v4017_v61 = vld [vmem:[%s6904_s16 + $0x50] sm:$0xf]  ;;  %v4679_v44 = vld [vmem:[%s6904_s16 + $0x38] sm:$0xf0]  ;;  %v4678_v52 = vld [vmem:[%s6904_s16 + $0x34] sm:$0xf] }
 0x54e   :  { %v2056_v56 = vpack.c.bf16 %v2052_v33, %v2051_v50  ;;  %v2049_v49 = vmax.f32 %v2017_v40, %v2045_v58  ;;  %v2050_v18 = vmax.f32 %v2018_v4, %v2046_v17  ;;  %v4053_v4 = vld [vmem:[%s6904_s16 + $0x98] sm:$0xf]  ;;  %v4014_v25 = vor.u32 %v4681_v20, %v4011_v3  ;;  %v3997_v10 = vld [vmem:[%s6904_s16 + $0x30] sm:$0xf]  ;;  %v3999_v33 = vld [vmem:[%s6904_s16 + $0x3c] sm:$0xf0] }
 0x54f   :  { %v4054_v40 = vor.u32 %v4692_v28, %v4053_v4  ;;  %2281 = vmatpush.bf16.msrb.mxu2 %v4050_v36  ;;  %v4018_v59 = vor.u32 %v4683_v27, %v4017_v61  ;;  %v3998_v50 = vor.u32 %v4679_v44, %v3997_v10  ;;  %v4005_v58 = vld [vmem:[%s6904_s16 + $0x38] sm:$0xf]  ;;  %v4680_v17 = vld [vmem:[%s6904_s16 + $0x40] sm:$0xf0]  ;;  %v3973_v51 = vld [vmem:[%s6904_s16] sm:$0xf] }
 0x550   :  { %2072 = vmatpush.bf16.msra.mxu0 %v2056_v56  ;;  %v2055_v2 = vpack.c.bf16 %v2050_v18, %v2049_v49  ;;  %v4002_v56 = vor.u32 %v4678_v52, %v3999_v33  ;;  %v4006_v49 = vor.u32 %v4680_v17, %v4005_v58  ;;  %v3985_v18 = vld [vmem:[%s6904_s16 + $0x18] sm:$0xf]  ;;  %v3974_v30 = vor.u32 %v4673_v6, %v3973_v51  ;;  %v3975_v63 = vld [vmem:[%s6904_s16 + $0xc] sm:$0xf0]  ;;  %v3981_v46 = vld [vmem:[%s6904_s16 + $0x8] sm:$0xf] }
 0x551   :  { %2295 = vmatpush.bf16.msra.mxu3 %v4054_v40  ;;  %2269 = vmatpush.bf16.msra.mxu1 %v4022_v39  ;;  %v4674_v32 = vld [vmem:[%s6904_s16 + $0x10] sm:$0xf0]  ;;  %v3978_v37 = vor.u32 %v4672_v9, %v3975_v63  ;;  %v4869_v4 = vld [vmem:[#allocation10 + $0x1] ss:$0 sm:$0xff] }
 0x552   :  { %v3982_v23 = vor.u32 %v4674_v32, %v3981_v46 }
 0x553   :  { %2282 = vmatpush.bf16.msrb.mxu2 %v4038_v13 }
 0x554   :  { %2073 = vmatpush.bf16.msra.mxu0 %v2055_v2  ;;  %v4676_v2 = vld [vmem:[%s6904_s16 + $0x20] sm:$0xf0] }
 0x555   :  { %2296 = vmatpush.bf16.msra.mxu3 %v4042_v22  ;;  %2270 = vmatpush.bf16.msra.mxu1 %v4010_v45 }
 0x557   :  { %3970 = vmatmul.msk.bf16.vlgmr.msra.gmra.mxu0 %vm2062_vm4, %v4671_v15  ;;  %2283 = vmatpush.bf16.msrb.mxu2 %v4026_v60  ;;  %v4675_v15 = vld [vmem:[%s6904_s16 + $0x1c] sm:$0xf] }
 0x559   :  { %2297 = vmatpush.bf16.msra.mxu3 %v4030_v7  ;;  %2271 = vmatpush.bf16.msra.mxu1 %v3998_v50  ;;  %v4870_v50 = vld [vmem:[#allocation12] ss:$0 sm:$0xff] }
 0x55b   :  { %2284 = vmatpush.bf16.msrb.mxu2 %v4014_v25 }
 0x55d   :  { %2298 = vmatpush.bf16.msra.mxu3 %v4018_v59 }
 0x55f   :  { %2285 = vmatpush.bf16.msrb.mxu2 %v4002_v56 }
 0x561   :  { %2299 = vmatpush.bf16.msra.mxu3 %v4006_v49 }
 0x5d4   :  { %v6686_v19 = vpop.f32.mrf.mxu0 }
 0x5d5   :  { %2092 = vrot.lane.b32.xlu1 %v6686_v19, %s5230_s25  ;;  %2083 = vrot.lane.b32.xlu2 %v6686_v19, %s5224_s21 }
 0x5dc   :  { %v6694_v5 = vpop.f32.mrf.mxu0 }
 0x5dd   :  { %2324 = vperm.xlu1 %4859, %v2309_v31   ;;  %2094 = vrot.lane.b32.xlu2 %v6694_v5, %s5230_s25  ;;  %v3986_v31 = vor.u32 %v4676_v2, %v3985_v18 }
 0x5de   :  { %2085 = vrot.lane.b32.xlu0 %v6694_v5, %s5224_s21 }
 0x5df   :  { %2272 = vmatpush.bf16.msra.mxu1 %v3986_v31 }
 0x5e3   :  { %2273 = vmatpush.bf16.msra.mxu1 %v3974_v30 }
 0x5e5   :  { %2337 = vperm.xlu2 %4860, %v4067_v48   ;;  %v3987_v48 = vld [vmem:[%s6904_s16 + $0x24] sm:$0xf0] }
 0x5e6   :  { %2319 = vperm.xlu0 %4858, %v2308_v24   ;;  %v3993_v24 = vld [vmem:[%s6904_s16 + $0x20] sm:$0xf]  ;;  %v3990_v41 = vor.u32 %v4675_v15, %v3987_v48 }
 0x5e8   :  { %2286 = vmatpush.bf16.msrb.mxu2 %v3990_v41 }
 0x5ec   :  { %2287 = vmatpush.bf16.msrb.mxu2 %v3978_v37 }
 0x5ee   :  { %2342 = vperm.xlu0 %4858, %v4068_v26   ;;  %v4677_v26 = vld [vmem:[%s6904_s16 + $0x28] sm:$0xf0] }
 0x5ef   :  { %v3994_v16 = vor.u32 %v4677_v26, %v3993_v24 }
 0x5f1   :  { %2300 = vmatpush.bf16.msra.mxu3 %v3994_v16 }
 0x5f5   :  { %2301 = vmatpush.bf16.msra.mxu3 %v3982_v23 }
 0x62f   :  { %v2084_v55 = vpop.permute.xlu2 %2083 }
 0x630   :  { %v2090_v40 = vmul.f32 %v4868_v21, %v2084_v55  ;;  %v2373_v55 = vld [vmem:[%s6908_s20] sm:$0xf] }
 0x637   :  { %v2095_v36 = vpop.permute.xlu2 %2094 }
 0x638   :  { %v2100_v53 = vmul.f32 %v4869_v4, %v2095_v36  ;;  %v4698_v36 = vld [vmem:[#allocation15 + $0x10] sm:$0xff] }
 0x63f   :  { %v2338_v3 = vpop.permute.xlu2 %2337 }
 0x647   :  { %v2093_v1 = vpop.permute.xlu1 %2092 }
 0x648   :  { %v2099_v28 = vmul.f32 %v4869_v4, %v2093_v1  ;;  %v4703_v1 = vld [vmem:[#allocation15 + $0x38] sm:$0xff]  ;;  %v4700_v4 = vld [vmem:[#allocation15 + $0x20] sm:$0xff] }
 0x649   :  { %2475 = vmatpush.bf16.msrb.mxu1 %v4703_v1  ;;  %v4729_v1 = vld [vmem:[#allocation18 + $0xcc] sm:$0xf] }
 0x64a   :  { %v2101_v14 = vmax.f32 %v2090_v40, %v2099_v28  ;;  %v4699_v28 = vld [vmem:[#allocation15 + $0x18] sm:$0xff] }
 0x64c   :  { %v2103_v43 = vmax.f32 %v6686_v19, %v2101_v14  ;;  %v4696_v14 = vld [vmem:[#allocation15] sm:$0xff] }
 0x64d   :  { %2476 = vmatpush.bf16.msrb.mxu1 %v4702_v35  ;;  %v4210_v35 = vld [vmem:[#allocation18 + $0xe8] sm:$0xf0] }
 0x64f   :  { %v2325_v19 = vpop.permute.xlu1 %2324 }
 0x650   :  { %v2086_v54 = vpop.permute.xlu0 %2085 }
 0x651   :  { %v2091_v11 = vmul.f32 %v4868_v21, %v2086_v54  ;;  %v4701_v21 = vld [vmem:[#allocation15 + $0x28] sm:$0xff] }
 0x652   :  { %2477 = vmatpush.bf16.msrb.mxu1 %v4701_v21 }
 0x653   :  { %v2102_v8 = vmax.f32 %v2091_v11, %v2100_v53  ;;  %v4697_v53 = vld [vmem:[#allocation15 + $0x8] sm:$0xff]  ;;  %v4328_v11 = vld [vmem:[#allocation18 + $0x1c0] sm:$0xf] }
 0x655   :  { %v2104_v34 = vmax.f32 %v6694_v5, %v2102_v8  ;;  %v4764_v8 = vld [vmem:[#allocation18 + $0x1dc] sm:$0xf0] }
 0x656   :  { %2478 = vmatpush.bf16.msrb.mxu1 %v4700_v4 }
 0x657   :  { %v2105_v13 = vpack.c.bf16 %v2104_v34, %v2103_v43  ;;  %v4760_v43 = vld [vmem:[#allocation18 + $0x1c4] sm:$0xf]  ;;  %v4329_v34 = vor.u32 %v4764_v8, %v4328_v11  ;;  %v4176_v8 = vld [vmem:[#allocation18 + $0x88] sm:$0xf] }
 0x658   :  { %v2320_v42 = vpop.permute.xlu0 %2319  ;;  %v4170_v11 = vld [vmem:[#allocation18 + $0xa0] sm:$0xf0] }
 0x659   :  { %2274 = vmatmul.bf16.vlgmr.msra.gmra.mxu1 %v2105_v13  ;;  %2288 = vmatmul.bf16.vlgmr.msrb.gmra.mxu2 %v2105_v13 }
 0x65a   :  { %2302 = vmatmul.bf16.vlgmr.msra.gmra.mxu3 %v2105_v13  ;;  %2479 = vmatpush.bf16.msrb.mxu1 %v4699_v28  ;;  %v4330_v13 = vld [vmem:[#allocation18 + $0x1e0] sm:$0xf0] }
 0x65b   :  { %2892 = vmatpush.bf16.msra.mxu2 %v4329_v34  ;;  %v4721_v34 = vld [vmem:[#allocation18 + $0x8c] sm:$0xf] }
 0x65e   :  { %2480 = vmatpush.bf16.msrb.mxu1 %v4698_v36  ;;  %v4168_v36 = vld [vmem:[#allocation18 + $0x80] sm:$0xf] }
 0x660   :  { %v2343_v61 = vpop.permute.xlu0 %2342 }
 0x662   :  { %2481 = vmatpush.bf16.msrb.mxu1 %v4697_v53  ;;  %v4720_v53 = vld [vmem:[#allocation18 + $0x84] sm:$0xf] }
 0x666   :  { %2482 = vmatpush.bf16.msrb.mxu1 %v4696_v14  ;;  %v4213_v14 = vor.u32 %v4729_v1, %v4210_v35  ;;  %v4754_v35 = vld [vmem:[#allocation18 + $0x194] sm:$0xf] }
 0x6d6   :  { %v2275_v22 = vpop.f32.mrf.mxu1 }
 0x6d7   :  { %v2313_v47 = vrot.slane %v2275_v22, 7  ;;  %v4336_v22 = vld [vmem:[#allocation18 + $0x1c8] sm:$0xf] }
 0x6dc   :  { %v2289_v38 = vpop.f32.mrf.mxu2 }
 0x6dd   :  { %v2303_v12 = vpop.f32.mrf.mxu3 }
 0x6de   :  { %v2277_v0 = vpop.f32.mrf.mxu1  ;;  %v2331_v62 = vrot.slane %v2303_v12, 1  ;;  %v4333_v12 = vor.u32 %v4760_v43, %v4330_v13  ;;  %v4725_v43 = vld [vmem:[#allocation18 + $0xa4] sm:$0xf0]  ;;  %v4178_v13 = vld [vmem:[#allocation18 + $0xa8] sm:$0xf0] }
 0x6df   :  { %v2314_v29 = vrot.slane %v2277_v0, 7  ;;  %v4761_v0 = vld [vmem:[#allocation18 + $0x1cc] sm:$0xf] }
 0x6e1   :  { %v2316_v39 = vsel %vm548_vm1, %v2314_v29, %v2313_v47  ;;  %v2315_v60 = vsel %vm548_vm1, %v2313_v47, %v2314_v29  ;;  %v4338_v29 = vld [vmem:[#allocation18 + $0x1e8] sm:$0xf0]  ;;  %v4296_v47 = vld [vmem:[#allocation18 + $0x180] sm:$0xf] }
 0x6e2   :  { %v2327_v7 = vmul.f32 %v2320_v42, %v2316_v39  ;;  %v2328_v5 = vmul.f32 %v2325_v19, %v2315_v60  ;;  %v4341_v39 = vor.u32 %v4761_v0, %v4338_v29  ;;  %v4756_v60 = vld [vmem:[#allocation18 + $0x19c] sm:$0xf0]  ;;  %v4173_v0 = vor.u32 %v4720_v53, %v4170_v11 }
 0x6e3   :  { %v4177_v29 = vor.u32 %v4725_v43, %v4176_v8  ;;  %v4280_v8 = vld [vmem:[#allocation18 + $0x150] sm:$0xf] }
 0x6e4   :  { %v2291_v20 = vpop.f32.mrf.mxu2  ;;  %v2329_v59 = vadd.f32 %v2327_v7, %v2289_v38  ;;  %v4765_v38 = vld [vmem:[#allocation18 + $0x1e4] sm:$0xf0]  ;;  %v4298_v7 = vld [vmem:[#allocation18 + $0x1a0] sm:$0xf0]  ;;  %2931 = vmatpush.bf16.msra.mxu1 %v4341_v39  ;;  %v4750_v43 = vld [vmem:[#allocation18 + $0x16c] sm:$0xf0] }
 0x6e5   :  { %v2305_v57 = vpop.f32.mrf.mxu3  ;;  %v2330_v10 = vadd.f32 %v2328_v5, %v2291_v20  ;;  %v4297_v5 = vor.u32 %v4756_v60, %v4296_v47  ;;  %v4757_v20 = vld [vmem:[#allocation18 + $0x1a4] sm:$0xf0]  ;;  %v4716_v47 = vld [vmem:[#allocation18 + $0x5c] sm:$0xf0]  ;;  %v4712_v39 = vld [vmem:[#allocation18 + $0x44] sm:$0xf] }
 0x6e6   :  { %v2332_v45 = vrot.slane %v2305_v57, 1  ;;  %v4138_v60 = vld [vmem:[#allocation18 + $0x60] sm:$0xf0] }
 0x6e7   :  { %2893 = vmatpush.bf16.msra.mxu2 %v4297_v5  ;;  %v4717_v5 = vld [vmem:[#allocation18 + $0x64] sm:$0xf0] }
 0x6e8   :  { %v2333_v27 = vsel %vm693_vm2, %v2331_v62, %v2332_v45  ;;  %v2334_v25 = vsel %vm693_vm2, %v2332_v45, %v2331_v62  ;;  %v4304_v62 = vld [vmem:[#allocation18 + $0x188] sm:$0xf]  ;;  %v4753_v45 = vld [vmem:[#allocation18 + $0x18c] sm:$0xf] }
 0x6e9   :  { %v2345_v44 = vmul.f32 %v2338_v3, %v2333_v27  ;;  %v2346_v52 = vmul.f32 %v2343_v61, %v2334_v25  ;;  %v4264_v27 = vld [vmem:[#allocation18 + $0x140] sm:$0xf] }
 0x6ea   :  { %v4748_v25 = vld [vmem:[#allocation18 + $0x15c] sm:$0xf0] }
 0x6eb   :  { %v2347_v33 = vadd.f32 %v2345_v44, %v2329_v59  ;;  %v2348_v58 = vadd.f32 %v2346_v52, %v2330_v10  ;;  %v4744_v10 = vld [vmem:[#allocation18 + $0x144] sm:$0xf]  ;;  %v4272_v52 = vld [vmem:[#allocation18 + $0x148] sm:$0xf] }
 0x6ec   :  { %v4266_v44 = vld [vmem:[#allocation18 + $0x160] sm:$0xf0] }
 0x6ed   :  { %v2353_v17 = vadd.f32 %v4870_v50, %v2347_v33  ;;  %v2354_v56 = vadd.f32 %v4870_v50, %v2348_v58  ;;  %v4265_v50 = vor.u32 %v4748_v25, %v4264_v27  ;;  %v4749_v33 = vld [vmem:[#allocation18 + $0x164] sm:$0xf0]  ;;  %v4745_v58 = vld [vmem:[#allocation18 + $0x14c] sm:$0xf] }
 0x6ef   :  { %v2355_v49 = vmax.f32 %v2353_v17, 0.0  ;;  %v2356_v18 = vmax.f32 %v2354_v56, 0.0  ;;  %v4274_v17 = vld [vmem:[#allocation18 + $0x168] sm:$0xf0]  ;;  %v4269_v56 = vor.u32 %v4744_v10, %v4266_v44  ;;  %2894 = vmatpush.bf16.msra.mxu2 %v4265_v50  ;;  %v4708_v10 = vld [vmem:[#allocation18 + $0x1c] sm:$0xf0] }
 0x6f0   :  { %v4704_v44 = vld [vmem:[#allocation18 + $0x4] sm:$0xf] }
 0x6f1   :  { %v2357_v2 = vrot.slane %v2355_v49, 7  ;;  %v2358_v15 = vrot.slane %v2356_v18, 7  ;;  %v2363_v31 = vrot.slane %v2355_v49, 1  ;;  %v2364_v48 = vrot.slane %v2356_v18, 1 }
 0x6f3   :  { %v2359_v24 = vsel %vm548_vm1, %v2357_v2, %v2358_v15  ;;  %v2360_v26 = vsel %vm548_vm1, %v2358_v15, %v2357_v2  ;;  %v2365_v41 = vsel %vm693_vm2, %v2363_v31, %v2364_v48  ;;  %v2366_v16 = vsel %vm693_vm2, %v2364_v48, %v2363_v31  ;;  %v4740_v2 = vld [vmem:[#allocation18 + $0x11c] sm:$0xf0]  ;;  %v4736_v15 = vld [vmem:[#allocation18 + $0x104] sm:$0xf] }
 0x6f4   :  { %v2361_v51 = vmul.f32 %v2360_v26, %v2320_v42  ;;  %v2362_v6 = vmul.f32 %v2359_v24, %v2325_v19  ;;  %v2367_v9 = vmul.f32 %v2365_v41, %v2338_v3  ;;  %v2368_v30 = vmul.f32 %v2366_v16, %v2343_v61  ;;  %v4752_v19 = vld [vmem:[#allocation18 + $0x184] sm:$0xf]  ;;  %v4306_v61 = vld [vmem:[#allocation18 + $0x1a8] sm:$0xf0]  ;;  %v4240_v24 = vld [vmem:[#allocation18 + $0x108] sm:$0xf] }
 0x6f5   :  { %v4337_v42 = vor.u32 %v4765_v38, %v4336_v22  ;;  %v4301_v57 = vor.u32 %v4752_v19, %v4298_v7  ;;  %v4305_v3 = vor.u32 %v4757_v20, %v4304_v62  ;;  %v4309_v59 = vor.u32 %v4753_v45, %v4306_v61  ;;  %v4234_v48 = vld [vmem:[#allocation18 + $0x120] sm:$0xf0]  ;;  %v4741_v26 = vld [vmem:[#allocation18 + $0x124] sm:$0xf0]  ;;  %v4737_v41 = vld [vmem:[#allocation18 + $0x10c] sm:$0xf] }
 0x6f6   :  { %v2369_v63 = vmax.f32 %v2361_v51, %v2367_v9  ;;  %v2370_v46 = vmax.f32 %v2362_v6, %v2368_v30  ;;  %v4277_v31 = vor.u32 %v4745_v58, %v4274_v17  ;;  %v4242_v16 = vld [vmem:[#allocation18 + $0x128] sm:$0xf0]  ;;  %v4237_v6 = vor.u32 %v4736_v15, %v4234_v48  ;;  %v4200_v30 = vld [vmem:[#allocation18 + $0xc0] sm:$0xf]  ;;  %v4871_v22 = vld [vmem:[#allocation13] ss:$0 sm:$0xff] }
 0x6f7   :  { %2918 = vmatpush.bf16.msrb.mxu3 %v4337_v42  ;;  %2932 = vmatpush.bf16.msra.mxu1 %v4309_v59  ;;  %v4241_v9 = vor.u32 %v4741_v26, %v4240_v24  ;;  %v4872_v38 = vld [vmem:[#allocation13 + $0x1] ss:$0 sm:$0xff]  ;;  %v4136_v42 = vld [vmem:[#allocation18 + $0x40] sm:$0xf]  ;;  %v4181_v19 = vor.u32 %v4721_v34, %v4178_v13  ;;  %v4144_v7 = vld [vmem:[#allocation18 + $0x48] sm:$0xf]  ;;  %v4281_v13 = vor.u32 %v4750_v43, %v4280_v8 }
 0x6f8   :  { %v2371_v32 = vmax.f32 %v2355_v49, %v2369_v63  ;;  %v2372_v37 = vmax.f32 %v2356_v18, %v2370_v46  ;;  %v4273_v49 = vor.u32 %v4749_v33, %v4272_v52  ;;  %v4232_v18 = vld [vmem:[#allocation18 + $0x100] sm:$0xf]  ;;  %v4728_v46 = vld [vmem:[#allocation18 + $0xc4] sm:$0xf]  ;;  %v4146_v62 = vld [vmem:[#allocation18 + $0x68] sm:$0xf0]  ;;  %v4137_v45 = vor.u32 %v4716_v47, %v4136_v42 }
 0x6f9   :  { %v4233_v51 = vor.u32 %v4740_v2, %v4232_v18  ;;  %v4732_v63 = vld [vmem:[#allocation18 + $0xdc] sm:$0xf0]  ;;  %v4145_v59 = vor.u32 %v4717_v5, %v4144_v7  ;;  %v4106_v52 = vld [vmem:[#allocation18 + $0x20] sm:$0xf0]  ;;  %v4112_v33 = vld [vmem:[#allocation18 + $0x8] sm:$0xf] }
 0x6fa   :  { %v2374_v23 = vpack.c.bf16 %v2372_v37, %v2371_v32  ;;  %v4245_v32 = vor.u32 %v4737_v41, %v4242_v16  ;;  %v4202_v37 = vld [vmem:[#allocation18 + $0xe0] sm:$0xf0]  ;;  %v4201_v21 = vor.u32 %v4732_v63, %v4200_v30  ;;  %v4104_v61 = vld [vmem:[#allocation18] sm:$0xf]  ;;  %v4709_v58 = vld [vmem:[#allocation18 + $0x24] sm:$0xf0]  ;;  %v4109_v41 = vor.u32 %v4704_v44, %v4106_v52 }
 0x6fb   :  { %2919 = vmatpush.bf16.msrb.mxu3 %v4305_v3  ;;  %2933 = vmatpush.bf16.msra.mxu1 %v4277_v31  ;;  %v4205_v4 = vor.u32 %v4728_v46, %v4202_v37  ;;  %v4141_v3 = vor.u32 %v4712_v39, %v4138_v60  ;;  %v4705_v17 = vld [vmem:[#allocation18 + $0xc] sm:$0xf]  ;;  %v4344_v18 = vld [vmem:[#allocation18 + $0x1d0] sm:$0xf]  ;;  %v4105_v15 = vor.u32 %v4708_v10, %v4104_v61  ;;  %v4762_v31 = vld [vmem:[#allocation18 + $0x1d4] sm:$0xf] }
 0x6fc   :  { %2385 = vmatpush.bf16.msrb.mxu0 %v2374_v23  ;;  %v4208_v23 = vld [vmem:[#allocation18 + $0xc8] sm:$0xf]  ;;  %2895 = vmatpush.bf16.msra.mxu2 %v4233_v51  ;;  %v4766_v2 = vld [vmem:[#allocation18 + $0x1ec] sm:$0xf0]  ;;  %v4346_v48 = vld [vmem:[#allocation18 + $0x1f0] sm:$0xf0] }
 0x6fd   :  { %v4352_v24 = vld [vmem:[#allocation18 + $0x1d8] sm:$0xf]  ;;  %v4763_v51 = vld [vmem:[#allocation18 + $0x1dc] sm:$0xf]  ;;  %v4345_v46 = vor.u32 %v4766_v2, %v4344_v18  ;;  %v4312_v37 = vld [vmem:[#allocation18 + $0x190] sm:$0xf] }
 0x6fe   :  { %v4767_v16 = vld [vmem:[#allocation18 + $0x1f4] sm:$0xf0]  ;;  %v4746_v34 = vld [vmem:[#allocation18 + $0x154] sm:$0xf]  ;;  %v4290_v47 = vld [vmem:[#allocation18 + $0x178] sm:$0xf0] }
 0x6ff   :  { %4069 = vmatmul.msk.bf16.vlgmr.msrb.gmra.mxu0 %vm325_vm0, %v2373_v55  ;;  %2920 = vmatpush.bf16.msrb.mxu3 %v4273_v49  ;;  %v4733_v55 = vld [vmem:[#allocation18 + $0xe4] sm:$0xf0]  ;;  %v4114_v49 = vld [vmem:[#allocation18 + $0x28] sm:$0xf0]  ;;  %v4248_v60 = vld [vmem:[#allocation18 + $0x110] sm:$0xf] }
 0x700   :  { %2905 = vmatpush.bf16.msra.mxu0 %v4333_v12  ;;  %v4209_v28 = vor.u32 %v4733_v55, %v4208_v23  ;;  %2934 = vmatpush.bf16.msra.mxu1 %v4245_v32  ;;  %v4117_v30 = vor.u32 %v4705_v17, %v4114_v49  ;;  %v4349_v32 = vor.u32 %v4762_v31, %v4346_v48  ;;  %v4758_v23 = vld [vmem:[#allocation18 + $0x1ac] sm:$0xf0]  ;;  %v4738_v7 = vld [vmem:[#allocation18 + $0x114] sm:$0xf]  ;;  %v4739_v61 = vld [vmem:[#allocation18 + $0x11c] sm:$0xf] }
 0x701   :  { %2896 = vmatpush.bf16.msra.mxu2 %v4201_v21  ;;  %v4353_v55 = vor.u32 %v4767_v16, %v4352_v24  ;;  %v4314_v21 = vld [vmem:[#allocation18 + $0x1b0] sm:$0xf0]  ;;  %v4734_v10 = vld [vmem:[#allocation18 + $0xec] sm:$0xf0]  ;;  %v4731_v49 = vld [vmem:[#allocation18 + $0xdc] sm:$0xf] }
 0x702   :  { %v4317_v53 = vor.u32 %v4754_v35, %v4314_v21  ;;  %v4730_v44 = vld [vmem:[#allocation18 + $0xd4] sm:$0xf]  ;;  %v4226_v18 = vld [vmem:[#allocation18 + $0xf8] sm:$0xf0]  ;;  %v4184_v2 = vld [vmem:[#allocation18 + $0x90] sm:$0xf] }
 0x703   :  { %2921 = vmatpush.bf16.msrb.mxu3 %v4241_v9  ;;  %v4113_v9 = vor.u32 %v4709_v58, %v4112_v33  ;;  %v4224_v33 = vld [vmem:[#allocation18 + $0xd8] sm:$0xf]  ;;  %v4726_v31 = vld [vmem:[#allocation18 + $0xac] sm:$0xf0]  ;;  %v4722_v48 = vld [vmem:[#allocation18 + $0x94] sm:$0xf] }
 0x704   :  { %2906 = vmatpush.bf16.msra.mxu0 %v4301_v57  ;;  %2935 = vmatpush.bf16.msra.mxu1 %v4213_v14  ;;  %v4713_v57 = vld [vmem:[#allocation18 + $0x4c] sm:$0xf]  ;;  %v4735_v58 = vld [vmem:[#allocation18 + $0xf4] sm:$0xf0]  ;;  %v4186_v24 = vld [vmem:[#allocation18 + $0xb0] sm:$0xf0] }
 0x705   :  { %v4149_v50 = vor.u32 %v4713_v57, %v4146_v62  ;;  %v4250_v57 = vld [vmem:[#allocation18 + $0x130] sm:$0xf0]  ;;  %v4256_v62 = vld [vmem:[#allocation18 + $0x118] sm:$0xf]  ;;  %v4715_v21 = vld [vmem:[#allocation18 + $0x5c] sm:$0xf] }
 0x706   :  { %v4192_v16 = vld [vmem:[#allocation18 + $0x98] sm:$0xf] }
 0x707   :  { %2922 = vmatpush.bf16.msrb.mxu3 %v4209_v28  ;;  %v4755_v28 = vld [vmem:[#allocation18 + $0x19c] sm:$0xf]  ;;  %v4719_v35 = vld [vmem:[#allocation18 + $0x74] sm:$0xf0] }
 0x708   :  { %2907 = vmatpush.bf16.msra.mxu0 %v4269_v56  ;;  %2936 = vmatpush.bf16.msra.mxu1 %v4181_v19  ;;  %v4742_v19 = vld [vmem:[#allocation18 + $0x12c] sm:$0xf0]  ;;  %v4128_v8 = vld [vmem:[#allocation18 + $0x18] sm:$0xf] }
 0x709   :  { %v4249_v5 = vor.u32 %v4742_v19, %v4248_v60  ;;  %v4711_v43 = vld [vmem:[#allocation18 + $0x34] sm:$0xf0] }
 0x70a   :  { %v4783_v19 = vld [vmem:[#allocation19 + $0x78] sm:$0xff] }
 0x70b   :  { %2923 = vmatpush.bf16.msrb.mxu3 %v4177_v29  ;;  %v4747_v29 = vld [vmem:[#allocation18 + $0x15c] sm:$0xf] }
 0x70c   :  { %2908 = vmatpush.bf16.msra.mxu0 %v4237_v6  ;;  %v4354_v6 = vld [vmem:[#allocation18 + $0x1f8] sm:$0xf0]  ;;  %2937 = vmatpush.bf16.msra.mxu1 %v4149_v50  ;;  %v4293_v39 = vor.u32 %v4747_v29, %v4290_v47  ;;  %v4218_v50 = vld [vmem:[#allocation18 + $0xf0] sm:$0xf0] }
 0x70d   :  { %v4357_v1 = vor.u32 %v4763_v51, %v4354_v6  ;;  %v4221_v17 = vor.u32 %v4730_v44, %v4218_v50  ;;  %v4727_v51 = vld [vmem:[#allocation18 + $0xb4] sm:$0xf0]  ;;  %v4723_v6 = vld [vmem:[#allocation18 + $0x9c] sm:$0xf]  ;;  %v4780_v44 = vld [vmem:[#allocation19 + $0x60] sm:$0xff] }
 0x70e   :  { %v4772_v50 = vld [vmem:[#allocation19 + $0x20] sm:$0xff] }
 0x70f   :  { %2924 = vmatpush.bf16.msrb.mxu3 %v4145_v59  ;;  %v4216_v59 = vld [vmem:[#allocation18 + $0xd0] sm:$0xf] }
 0x710   :  { %2909 = vmatpush.bf16.msra.mxu0 %v4205_v4  ;;  %v4759_v4 = vld [vmem:[#allocation18 + $0x1b4] sm:$0xf0]  ;;  %2938 = vmatpush.bf16.msra.mxu1 %v4117_v30  ;;  %v4217_v52 = vor.u32 %v4734_v10, %v4216_v59  ;;  %v4194_v30 = vld [vmem:[#allocation18 + $0xb8] sm:$0xf0]  ;;  %v4773_v59 = vld [vmem:[#allocation19 + $0x28] sm:$0xff] }
 0x711   :  { %v4789_v10 = vld [vmem:[#allocation19 + $0xa8] sm:$0xff] }
 0x713   :  { %2925 = vmatpush.bf16.msrb.mxu3 %v4113_v9  ;;  %v4193_v9 = vor.u32 %v4727_v51, %v4192_v16  ;;  %v4776_v16 = vld [vmem:[#allocation19 + $0x40] sm:$0xff] }
 0x714   :  { %2910 = vmatpush.bf16.msra.mxu0 %v4173_v0  ;;  %v4792_v51 = vld [vmem:[#allocation19 + $0xc0] sm:$0xff] }
 0x717   :  { %2970 = vmatpush.bf16.msra.mxu3 %v4353_v55  ;;  %v4160_v55 = vld [vmem:[#allocation18 + $0x58] sm:$0xf] }
 0x718   :  { %2911 = vmatpush.bf16.msra.mxu0 %v4141_v3 }
 0x71c   :  { %2912 = vmatpush.bf16.msra.mxu0 %v4109_v41  ;;  %v4189_v41 = vor.u32 %v4722_v48, %v4186_v24  ;;  %v4777_v48 = vld [vmem:[#allocation19 + $0x48] sm:$0xff] }
 0x71d   :  { %v4793_v24 = vld [vmem:[#allocation19 + $0xc8] sm:$0xff] }
 0x720   :  { %2957 = vmatpush.bf16.msrb.mxu0 %v4349_v32  ;;  %v4197_v32 = vor.u32 %v4723_v6, %v4194_v30  ;;  %v4815_v6 = vld [vmem:[#allocation19 + $0x178] sm:$0xff]  ;;  %v4768_v30 = vld [vmem:[#allocation19] sm:$0xff] }
 0x724   :  { %2958 = vmatpush.bf16.msrb.mxu0 %v4317_v53  ;;  %v4706_v53 = vld [vmem:[#allocation18 + $0x14] sm:$0xf] }
 0x77c   :  { %v6874_v40 = vpop.f32.mrf.mxu0 }
 0x77d   :  { %2394 = vrot.lane.b32.xlu1 %v6874_v40, %s6958_s7 }
 0x784   :  { %v2389_v54 = vpop.f32.mrf.mxu0 }
 0x785   :  { %v4724_v54 = vld [vmem:[#allocation18 + $0x9c] sm:$0xf0] }
 0x786   :  { %v4169_v12 = vor.u32 %v4724_v54, %v4168_v36  ;;  %v4322_v36 = vld [vmem:[#allocation18 + $0x1b8] sm:$0xf0]  ;;  %v4313_v54 = vor.u32 %v4758_v23, %v4312_v37  ;;  %v4714_v37 = vld [vmem:[#allocation18 + $0x54] sm:$0xf] }
 0x787   :  { %v4325_v11 = vor.u32 %v4755_v28, %v4322_v36  ;;  %v4154_v23 = vld [vmem:[#allocation18 + $0x70] sm:$0xf0]  ;;  %v4161_v28 = vor.u32 %v4719_v35, %v4160_v55  ;;  %v4120_v36 = vld [vmem:[#allocation18 + $0x10] sm:$0xf]  ;;  %v4813_v55 = vld [vmem:[#allocation19 + $0x168] sm:$0xff] }
 0x788   :  { %2897 = vmatpush.bf16.msra.mxu2 %v4169_v12  ;;  %v4751_v12 = vld [vmem:[#allocation18 + $0x174] sm:$0xf0]  ;;  %v4806_v35 = vld [vmem:[#allocation19 + $0x130] sm:$0xff] }
 0x78c   :  { %2898 = vmatpush.bf16.msra.mxu2 %v4137_v45  ;;  %v4253_v45 = vor.u32 %v4738_v7, %v4250_v57  ;;  %v4799_v7 = vld [vmem:[#allocation19 + $0xf8] sm:$0xff] }
 0x78d   :  { %v4791_v57 = vld [vmem:[#allocation19 + $0xb8] sm:$0xff] }
 0x790   :  { %2899 = vmatpush.bf16.msra.mxu2 %v4105_v15  ;;  %v4229_v15 = vor.u32 %v4731_v49, %v4226_v18  ;;  %v4787_v49 = vld [vmem:[#allocation19 + $0x98] sm:$0xff]  ;;  %v4778_v18 = vld [vmem:[#allocation19 + $0x50] sm:$0xff] }
 0x794   :  { %2944 = vmatpush.bf16.msrb.mxu2 %v4345_v46  ;;  %v4718_v46 = vld [vmem:[#allocation18 + $0x6c] sm:$0xf0] }
 0x798   :  { %2945 = vmatpush.bf16.msrb.mxu2 %v4313_v54  ;;  %v4710_v54 = vld [vmem:[#allocation18 + $0x2c] sm:$0xf0] }
 0x79c   :  { %2946 = vmatpush.bf16.msrb.mxu2 %v4281_v13  ;;  %v4130_v13 = vld [vmem:[#allocation18 + $0x38] sm:$0xf0] }
 0x7a0   :  { %2947 = vmatpush.bf16.msrb.mxu2 %v4249_v5  ;;  %v4775_v5 = vld [vmem:[#allocation19 + $0x38] sm:$0xff] }
 0x7a4   :  { %2948 = vmatpush.bf16.msrb.mxu2 %v4217_v52  ;;  %v4796_v52 = vld [vmem:[#allocation19 + $0xe0] sm:$0xff] }
 0x7ef   :  { %v2395_v20 = vpop.permute.xlu1 %2394 }
 0x7f0   :  { %v2399_v27 = vmul.f32 %v4871_v22, %v2395_v20  ;;  %v2403_v25 = vmul.f32 %v4872_v38, %v2395_v20  ;;  %v4282_v22 = vld [vmem:[#allocation18 + $0x170] sm:$0xf0]  ;;  %v4288_v38 = vld [vmem:[#allocation18 + $0x158] sm:$0xf] }
 0x7f1   :  { %v4285_v42 = vor.u32 %v4746_v34, %v4282_v22  ;;  %v4289_v0 = vor.u32 %v4751_v12, %v4288_v38  ;;  %v4743_v20 = vld [vmem:[#allocation18 + $0x134] sm:$0xf0]  ;;  %v4707_v34 = vld [vmem:[#allocation18 + $0x1c] sm:$0xf]  ;;  %v4121_v22 = vor.u32 %v4710_v54, %v4120_v36  ;;  %v4129_v12 = vor.u32 %v4711_v43, %v4128_v8  ;;  %v4821_v36 = vld [vmem:[#allocation19 + $0x1a8] sm:$0xff] }
 0x7f2   :  { %v2404_v56 = vmax.f32 %v2399_v27, %v2403_v25  ;;  %v4257_v3 = vor.u32 %v4743_v20, %v4256_v62  ;;  %v4258_v27 = vld [vmem:[#allocation18 + $0x138] sm:$0xf0]  ;;  %v4782_v20 = vld [vmem:[#allocation19 + $0x70] sm:$0xff] }
 0x7f3   :  { %2959 = vmatpush.bf16.msrb.mxu0 %v4285_v42  ;;  %v4261_v25 = vor.u32 %v4739_v61, %v4258_v27  ;;  %v4133_v42 = vor.u32 %v4707_v34, %v4130_v13  ;;  %v4790_v61 = vld [vmem:[#allocation19 + $0xb0] sm:$0xff]  ;;  %v4781_v27 = vld [vmem:[#allocation19 + $0x68] sm:$0xff]  ;;  %v4811_v54 = vld [vmem:[#allocation19 + $0x158] sm:$0xff] }
 0x7f4   :  { %v2405_v26 = vmax.f32 %v6874_v40, %v2404_v56  ;;  %v4320_v40 = vld [vmem:[#allocation18 + $0x198] sm:$0xf]  ;;  %v4225_v56 = vor.u32 %v4735_v58, %v4224_v33  ;;  %v4788_v33 = vld [vmem:[#allocation19 + $0xa0] sm:$0xff]  ;;  %v4810_v8 = vld [vmem:[#allocation19 + $0x150] sm:$0xff] }
 0x7f5   :  { %v4321_v14 = vor.u32 %v4759_v4, %v4320_v40  ;;  %v4162_v40 = vld [vmem:[#allocation18 + $0x78] sm:$0xf0]  ;;  %v4157_v4 = vor.u32 %v4714_v37, %v4154_v23  ;;  %v4814_v37 = vld [vmem:[#allocation19 + $0x170] sm:$0xff] }
 0x7f6   :  { %v2406_v63 = vpack.c.bf16 %v2405_v26, %v2405_v26  ;;  %v4185_v26 = vor.u32 %v4726_v31, %v4184_v2  ;;  %v4779_v58 = vld [vmem:[#allocation19 + $0x58] sm:$0xff]  ;;  %v4794_v2 = vld [vmem:[#allocation19 + $0xd0] sm:$0xff] }
 0x7f7   :  { %2971 = vmatpush.bf16.msra.mxu3 %v4321_v14  ;;  %2960 = vmatpush.bf16.msrb.mxu0 %v4253_v45  ;;  %v4165_v14 = vor.u32 %v4715_v21, %v4162_v40  ;;  %v4798_v45 = vld [vmem:[#allocation19 + $0xf0] sm:$0xff]  ;;  %v4812_v40 = vld [vmem:[#allocation19 + $0x160] sm:$0xff]  ;;  %v4803_v34 = vld [vmem:[#allocation19 + $0x118] sm:$0xff] }
 0x7f8   :  { %2483 = vmatmul.bf16.vlgmr.msrb.gmra.mxu1 %v2406_v63  ;;  %v4152_v63 = vld [vmem:[#allocation18 + $0x50] sm:$0xf]  ;;  %2949 = vmatpush.bf16.msrb.mxu2 %v4185_v26  ;;  %v4769_v26 = vld [vmem:[#allocation19 + $0x8] sm:$0xff]  ;;  %v4819_v13 = vld [vmem:[#allocation19 + $0x198] sm:$0xff] }
 0x7f9   :  { %2983 = vmatpush.bf16.msrb.mxu1 %v4357_v1  ;;  %v4153_v1 = vor.u32 %v4718_v46, %v4152_v63  ;;  %v4786_v31 = vld [vmem:[#allocation19 + $0x90] sm:$0xff]  ;;  %v4784_v63 = vld [vmem:[#allocation19 + $0x80] sm:$0xff]  ;;  %v4807_v46 = vld [vmem:[#allocation19 + $0x138] sm:$0xff] }
 0x7fa   :  { %v4830_v23 = vld [vmem:[#allocation19 + $0x1f0] sm:$0xff] }
 0x7fb   :  { %2972 = vmatpush.bf16.msra.mxu3 %v4289_v0  ;;  %2961 = vmatpush.bf16.msrb.mxu0 %v4221_v17  ;;  %v4873_v0 = vld [vmem:[#allocation16] ss:$0 sm:$0xff]  ;;  %v4822_v21 = vld [vmem:[#allocation19 + $0x1b0] sm:$0xff] }
 0x7fc   :  { %2950 = vmatpush.bf16.msrb.mxu2 %v4153_v1  ;;  %v4795_v17 = vld [vmem:[#allocation19 + $0xd8] sm:$0xff]  ;;  %v4829_v1 = vld [vmem:[#allocation19 + $0x1e8] sm:$0xff]  ;;  %v4826_v43 = vld [vmem:[#allocation19 + $0x1d0] sm:$0xff] }
 0x7fd   :  { %2984 = vmatpush.bf16.msrb.mxu1 %v4325_v11  ;;  %v4122_v11 = vld [vmem:[#allocation18 + $0x30] sm:$0xf0] }
 0x7fe   :  { %v4125_v38 = vor.u32 %v4706_v53, %v4122_v11  ;;  %v4827_v53 = vld [vmem:[#allocation19 + $0x1d8] sm:$0xff]  ;;  %v4820_v11 = vld [vmem:[#allocation19 + $0x1a0] sm:$0xff] }
 0x7ff   :  { %2973 = vmatpush.bf16.msra.mxu3 %v4257_v3  ;;  %2962 = vmatpush.bf16.msrb.mxu0 %v4189_v41  ;;  %v4774_v3 = vld [vmem:[#allocation19 + $0x30] sm:$0xff]  ;;  %v4785_v41 = vld [vmem:[#allocation19 + $0x88] sm:$0xff] }
 0x800   :  { %2951 = vmatpush.bf16.msrb.mxu2 %v4121_v22  ;;  %v4809_v22 = vld [vmem:[#allocation19 + $0x148] sm:$0xff] }
 0x801   :  { %2985 = vmatpush.bf16.msrb.mxu1 %v4293_v39 }
 0x803   :  { %2974 = vmatpush.bf16.msra.mxu3 %v4225_v56  ;;  %2963 = vmatpush.bf16.msrb.mxu0 %v4157_v4  ;;  %v4771_v56 = vld [vmem:[#allocation19 + $0x18] sm:$0xff]  ;;  %v4828_v4 = vld [vmem:[#allocation19 + $0x1e0] sm:$0xff] }
 0x805   :  { %2986 = vmatpush.bf16.msrb.mxu1 %v4261_v25  ;;  %v4797_v25 = vld [vmem:[#allocation19 + $0xe8] sm:$0xff] }
 0x807   :  { %2975 = vmatpush.bf16.msra.mxu3 %v4193_v9  ;;  %2964 = vmatpush.bf16.msrb.mxu0 %v4125_v38  ;;  %v4831_v9 = vld [vmem:[#allocation19 + $0x1f8] sm:$0xff]  ;;  %v4825_v38 = vld [vmem:[#allocation19 + $0x1c8] sm:$0xff] }
 0x809   :  { %2987 = vmatpush.bf16.msrb.mxu1 %v4229_v15  ;;  %v4770_v15 = vld [vmem:[#allocation19 + $0x10] sm:$0xff] }
 0x80b   :  { %2976 = vmatpush.bf16.msra.mxu3 %v4161_v28  ;;  %v4805_v28 = vld [vmem:[#allocation19 + $0x128] sm:$0xff] }
 0x80d   :  { %2988 = vmatpush.bf16.msrb.mxu1 %v4197_v32  ;;  %v4823_v32 = vld [vmem:[#allocation19 + $0x1b8] sm:$0xff] }
 0x80f   :  { %2977 = vmatpush.bf16.msra.mxu3 %v4129_v12  ;;  %v4802_v12 = vld [vmem:[#allocation19 + $0x110] sm:$0xff] }
 0x811   :  { %2989 = vmatpush.bf16.msrb.mxu1 %v4165_v14  ;;  %v4804_v14 = vld [vmem:[#allocation19 + $0x120] sm:$0xff] }
 0x815   :  { %2990 = vmatpush.bf16.msrb.mxu1 %v4133_v42  ;;  %v4818_v42 = vld [vmem:[#allocation19 + $0x190] sm:$0xff] }
 0x875   :  { %v2484_v29 = vpop.f32.mrf.mxu1 }
 0x876   :  { %v2485_v47 = vadd.f32 %v4873_v0, %v2484_v29  ;;  %v4808_v0 = vld [vmem:[#allocation19 + $0x140] sm:$0xff] }
 0x877   :  { %v4824_v29 = vld [vmem:[#allocation19 + $0x1c0] sm:$0xff] }
 0x878   :  { %v2488_v39 = vmax.f32 %v2485_v47, 0.0  ;;  %v4801_v47 = vld [vmem:[#allocation19 + $0x108] sm:$0xff] }
 0x87a   :  { %v2489_v60 = vpack.c.bf16 %v2488_v39, %v2488_v39  ;;  %v4817_v39 = vld [vmem:[#allocation19 + $0x188] sm:$0xff] }
 0x87c   :  { %2900 = vmatmul.bf16.vlgmr.msra.gmra.mxu2 %v2489_v60  ;;  %2913 = vmatmul.bf16.vlgmr.msra.gmra.mxu0 %v2489_v60 }
 0x87d   :  { %2926 = vmatmul.bf16.vlgmr.msrb.gmra.mxu3 %v2489_v60  ;;  %2939 = vmatmul.bf16.vlgmr.msra.gmra.mxu1 %v2489_v60  ;;  %v2486_v62 = vpop.f32.mrf.mxu1 }
 0x87e   :  { %3541 = vmatpush.bf16.msra.mxu0 %v4783_v19  ;;  %3567 = vmatpush.bf16.msra.mxu1 %v4799_v7  ;;  %v4816_v19 = vld [vmem:[#allocation19 + $0x180] sm:$0xff]  ;;  %v2554_v7 = vld [vmem:[%s6912_s24] sm:$0xff] }
 0x87f   :  { %3528 = vmatpush.bf16.msra.mxu2 %v4775_v5  ;;  %3554 = vmatpush.bf16.msrb.mxu3 %v4791_v57  ;;  %v2557_v5 = vperm.slane %v2554_v7, 1  ;;  %v2559_v57 = vperm.slane %v2554_v7, 3 }
 0x882   :  { %3542 = vmatpush.bf16.msra.mxu0 %v4782_v20  ;;  %3568 = vmatpush.bf16.msra.mxu1 %v4798_v45 }
 0x883   :  { %3529 = vmatpush.bf16.msra.mxu2 %v4774_v3  ;;  %3555 = vmatpush.bf16.msrb.mxu3 %v4790_v61 }
 0x886   :  { %3543 = vmatpush.bf16.msra.mxu0 %v4781_v27  ;;  %3569 = vmatpush.bf16.msra.mxu1 %v4797_v25  ;;  %v2556_v27 = vperm.slane %v2554_v7, 0 }
 0x887   :  { %3530 = vmatpush.bf16.msra.mxu2 %v4773_v59  ;;  %3556 = vmatpush.bf16.msrb.mxu3 %v4789_v10  ;;  %v2558_v59 = vperm.slane %v2554_v7, 2 }
 0x88a   :  { %3544 = vmatpush.bf16.msra.mxu0 %v4780_v44  ;;  %3570 = vmatpush.bf16.msra.mxu1 %v4796_v52 }
 0x88b   :  { %3531 = vmatpush.bf16.msra.mxu2 %v4772_v50  ;;  %3557 = vmatpush.bf16.msrb.mxu3 %v4788_v33 }
 0x88c   :  { %2952 = vmatmul.bf16.vlgmr.msrb.gmra.mxu2 %v2489_v60  ;;  %2965 = vmatmul.bf16.vlgmr.msrb.gmra.mxu0 %v2489_v60 }
 0x88d   :  { %2978 = vmatmul.bf16.vlgmr.msra.gmra.mxu3 %v2489_v60  ;;  %2991 = vmatmul.bf16.vlgmr.msrb.gmra.mxu1 %v2489_v60  ;;  %v4800_v60 = vld [vmem:[#allocation19 + $0x100] sm:$0xff] }
 0x88e   :  { %3545 = vmatpush.bf16.msra.mxu0 %v4779_v58  ;;  %3571 = vmatpush.bf16.msra.mxu1 %v4795_v17 }
 0x88f   :  { %3532 = vmatpush.bf16.msra.mxu2 %v4771_v56  ;;  %3558 = vmatpush.bf16.msrb.mxu3 %v4787_v49 }
 0x892   :  { %3546 = vmatpush.bf16.msra.mxu0 %v4778_v18  ;;  %3572 = vmatpush.bf16.msra.mxu1 %v4794_v2 }
 0x893   :  { %3533 = vmatpush.bf16.msra.mxu2 %v4770_v15  ;;  %3559 = vmatpush.bf16.msrb.mxu3 %v4786_v31  ;;  %v2561_v31 = vperm.slane %v2554_v7, 5 }
 0x896   :  { %3547 = vmatpush.bf16.msra.mxu0 %v4777_v48  ;;  %3573 = vmatpush.bf16.msra.mxu1 %v4793_v24  ;;  %v2563_v24 = vperm.slane %v2554_v7, 7 }
 0x897   :  { %3534 = vmatpush.bf16.msra.mxu2 %v4769_v26  ;;  %3560 = vmatpush.bf16.msrb.mxu3 %v4785_v41 }
 0x89a   :  { %3548 = vmatpush.bf16.msra.mxu0 %v4776_v16  ;;  %3574 = vmatpush.bf16.msra.mxu1 %v4792_v51 }
 0x89b   :  { %3535 = vmatpush.bf16.msra.mxu2 %v4768_v30  ;;  %3561 = vmatpush.bf16.msrb.mxu3 %v4784_v63  ;;  %v2560_v30 = vperm.slane %v2554_v7, 4 }
 0x89e   :  { %3593 = vmatpush.bf16.msrb.mxu0 %v4815_v6  ;;  %3619 = vmatpush.bf16.msrb.mxu1 %v4831_v9 }
 0x89f   :  { %3580 = vmatpush.bf16.msrb.mxu2 %v4807_v46  ;;  %3606 = vmatpush.bf16.msra.mxu3 %v4823_v32  ;;  %v2562_v46 = vperm.slane %v2554_v7, 6 }
 0x8a2   :  { %3594 = vmatpush.bf16.msrb.mxu0 %v4814_v37  ;;  %3620 = vmatpush.bf16.msrb.mxu1 %v4830_v23 }
 0x8a3   :  { %3581 = vmatpush.bf16.msrb.mxu2 %v4806_v35  ;;  %3607 = vmatpush.bf16.msra.mxu3 %v4822_v21 }
 0x8a6   :  { %3595 = vmatpush.bf16.msrb.mxu0 %v4813_v55  ;;  %3621 = vmatpush.bf16.msrb.mxu1 %v4829_v1 }
 0x8a7   :  { %3582 = vmatpush.bf16.msrb.mxu2 %v4805_v28  ;;  %3608 = vmatpush.bf16.msra.mxu3 %v4821_v36 }
 0x8aa   :  { %3596 = vmatpush.bf16.msrb.mxu0 %v4812_v40  ;;  %3622 = vmatpush.bf16.msrb.mxu1 %v4828_v4 }
 0x8ab   :  { %3583 = vmatpush.bf16.msrb.mxu2 %v4804_v14  ;;  %3609 = vmatpush.bf16.msra.mxu3 %v4820_v11 }
 0x8ae   :  { %3597 = vmatpush.bf16.msrb.mxu0 %v4811_v54  ;;  %3623 = vmatpush.bf16.msrb.mxu1 %v4827_v53 }
 0x8af   :  { %3584 = vmatpush.bf16.msrb.mxu2 %v4803_v34  ;;  %3610 = vmatpush.bf16.msra.mxu3 %v4819_v13  ;;  %v4874_v13 = vld [vmem:[#allocation21] ss:$0 sm:$0xff] }
 0x8b2   :  { %3598 = vmatpush.bf16.msrb.mxu0 %v4810_v8  ;;  %3624 = vmatpush.bf16.msrb.mxu1 %v4826_v43 }
 0x8b3   :  { %3585 = vmatpush.bf16.msrb.mxu2 %v4802_v12  ;;  %3611 = vmatpush.bf16.msra.mxu3 %v4818_v42 }
 0x8b6   :  { %3599 = vmatpush.bf16.msrb.mxu0 %v4809_v22  ;;  %3625 = vmatpush.bf16.msrb.mxu1 %v4825_v38 }
 0x8b7   :  { %3586 = vmatpush.bf16.msrb.mxu2 %v4801_v47  ;;  %3612 = vmatpush.bf16.msra.mxu3 %v4817_v39 }
 0x8ba   :  { %3600 = vmatpush.bf16.msrb.mxu0 %v4808_v0  ;;  %3626 = vmatpush.bf16.msrb.mxu1 %v4824_v29 }
 0x8bb   :  { %3587 = vmatpush.bf16.msrb.mxu2 %v4800_v60  ;;  %3613 = vmatpush.bf16.msra.mxu3 %v4816_v19 }
 0x8f9   :  { %v2914_v62 = vpop.f32.mrf.mxu0 }
 0x8fa   :  { %v2915_v20 = vadd.f32 %v2914_v62, %v2557_v5  ;;  %v2940_v45 = vpop.f32.mrf.mxu1 }
 0x8fb   :  { %v2941_v3 = vadd.f32 %v2940_v45, %v2559_v57 }
 0x8fc   :  { %v2997_v61 = vmax.f32 %v2915_v20, 0.0 }
 0x8fd   :  { %v2999_v25 = vmax.f32 %v2941_v3, 0.0 }
 0x8fe   :  { %v3005_v10 = vpack.c.bf16 %v2997_v61, %v2997_v61 }
 0x8ff   :  { %v3007_v44 = vpack.c.bf16 %v2999_v25, %v2999_v25  ;;  %v2901_v52 = vpop.f32.mrf.mxu2 }
 0x900   :  { %v2902_v50 = vadd.f32 %v2901_v52, %v2556_v27  ;;  %v2927_v33 = vpop.f32.mrf.mxu3  ;;  %3549 = vmatmul.bf16.vlgmr.msra.gmra.mxu0 %v3005_v10 }
 0x901   :  { %v2928_v58 = vadd.f32 %v2927_v33, %v2558_v59  ;;  %3575 = vmatmul.bf16.vlgmr.msra.gmra.mxu1 %v3007_v44  ;;  %v2916_v17 = vpop.f32.mrf.mxu0 }
 0x902   :  { %v2996_v56 = vmax.f32 %v2902_v50, 0.0  ;;  %v2942_v49 = vpop.f32.mrf.mxu1 }
 0x903   :  { %v2998_v18 = vmax.f32 %v2928_v58, 0.0 }
 0x904   :  { %v3004_v2 = vpack.c.bf16 %v2996_v56, %v2996_v56 }
 0x905   :  { %v3006_v15 = vpack.c.bf16 %v2998_v18, %v2998_v18 }
 0x906   :  { %3536 = vmatmul.bf16.vlgmr.msra.gmra.mxu2 %v3004_v2 }
 0x907   :  { %3562 = vmatmul.bf16.vlgmr.msrb.gmra.mxu3 %v3006_v15  ;;  %v2903_v48 = vpop.f32.mrf.mxu2 }
 0x908   :  { %v2929_v26 = vpop.f32.mrf.mxu3 }
 0x909   :  { %v2966_v41 = vpop.f32.mrf.mxu0 }
 0x90a   :  { %v2967_v16 = vadd.f32 %v2966_v41, %v2561_v31  ;;  %v2992_v51 = vpop.f32.mrf.mxu1 }
 0x90b   :  { %v2993_v6 = vadd.f32 %v2992_v51, %v2563_v24 }
 0x90c   :  { %v3001_v9 = vmax.f32 %v2967_v16, 0.0 }
 0x90d   :  { %v3003_v63 = vmax.f32 %v2993_v6, 0.0 }
 0x90e   :  { %v3009_v32 = vpack.c.bf16 %v3001_v9, %v3001_v9 }
 0x90f   :  { %v3011_v37 = vpack.c.bf16 %v3003_v63, %v3003_v63  ;;  %v2953_v23 = vpop.f32.mrf.mxu2 }
 0x910   :  { %v2954_v55 = vadd.f32 %v2953_v23, %v2560_v30  ;;  %v2979_v1 = vpop.f32.mrf.mxu3  ;;  %3601 = vmatmul.bf16.vlgmr.msrb.gmra.mxu0 %v3009_v32 }
 0x911   :  { %v2980_v35 = vadd.f32 %v2979_v1, %v2562_v46  ;;  %3627 = vmatmul.bf16.vlgmr.msrb.gmra.mxu1 %v3011_v37  ;;  %v2968_v21 = vpop.f32.mrf.mxu0 }
 0x912   :  { %v3000_v40 = vmax.f32 %v2954_v55, 0.0  ;;  %v2994_v4 = vpop.f32.mrf.mxu1 }
 0x913   :  { %v3002_v28 = vmax.f32 %v2980_v35, 0.0 }
 0x914   :  { %v3008_v36 = vpack.c.bf16 %v3000_v40, %v3000_v40 }
 0x915   :  { %v3010_v54 = vpack.c.bf16 %v3002_v28, %v3002_v28 }
 0x916   :  { %3588 = vmatmul.bf16.vlgmr.msrb.gmra.mxu2 %v3008_v36 }
 0x917   :  { %3614 = vmatmul.bf16.vlgmr.msra.gmra.mxu3 %v3010_v54  ;;  %v2955_v53 = vpop.f32.mrf.mxu2 }
 0x918   :  { %v2981_v14 = vpop.f32.mrf.mxu3 }
 0x97d   :  { %v3550_v11 = vpop.f32.mrf.mxu0 }
 0x97e   :  { %v3576_v8 = vpop.f32.mrf.mxu1 }
 0x985   :  { %v3552_v43 = vpop.f32.mrf.mxu0 }
 0x986   :  { %v3578_v34 = vpop.f32.mrf.mxu1 }
 0x989   :  { %v3537_v22 = vpop.f32.mrf.mxu2 }
 0x98a   :  { %v3563_v38 = vpop.f32.mrf.mxu3  ;;  %v3538_v12 = vadd.f32 %v4874_v13, %v3537_v22 }
 0x98c   :  { %v3551_v29 = vadd.f32 %v3550_v11, %v3538_v12 }
 0x98d   :  { %v3602_v42 = vpop.f32.mrf.mxu0 }
 0x98e   :  { %v3628_v0 = vpop.f32.mrf.mxu1  ;;  %v3564_v60 = vadd.f32 %v3563_v38, %v3551_v29 }
 0x990   :  { %v3577_v5 = vadd.f32 %v3576_v8, %v3564_v60 }
 0x991   :  { %v3539_v47 = vpop.f32.mrf.mxu2 }
 0x992   :  { %v3565_v39 = vpop.f32.mrf.mxu3 }
 0x995   :  { %v3604_v19 = vpop.f32.mrf.mxu0 }
 0x996   :  { %v3630_v7 = vpop.f32.mrf.mxu1 }
 0x999   :  { %v3589_v57 = vpop.f32.mrf.mxu2 }
 0x99a   :  { %v3590_v62 = vadd.f32 %v3589_v57, %v3577_v5  ;;  %v3615_v20 = vpop.f32.mrf.mxu3 }
 0x99c   :  { %v3603_v45 = vadd.f32 %v3602_v42, %v3590_v62 }
 0x99e   :  { %v3616_v3 = vadd.f32 %v3615_v20, %v3603_v45 }
 0x9a0   :  { %v3629_v61 = vadd.f32 %v3628_v0, %v3616_v3 }
 0x9a1   :  { %v3591_v27 = vpop.f32.mrf.mxu2 }
 0x9a2   :  { %3632 = vst [vmem:[%s6915_s27] sm:$0xff] %v3629_v61  ;;  %v3617_v25 = vpop.f32.mrf.mxu3  ;;  %v3637_v59 = vmul.f32 %v3629_v61, %v3629_v61  ;;  %v3633_v10 = vrot.slane %v3629_v61, 4 }
 0x9a4   :  { %3638 = vadd.xlane.f32.xlu2 %v3637_v59  ;;  %v3640_v44 = vmul.f32 %v3633_v10, %v3633_v10  ;;  %v3634_v52 = vmul.f32 %v3633_v10, %v3629_v61 }
 0x9a6   :  { %3641 = vadd.xlane.f32.xlu0 %v3640_v44  ;;  %3635 = vadd.xlane.f32.xlu1 %v3634_v52 }
 0xa17   :  { %v3639_v50 = vpop.xlane.xlu2 %3638 }
 0xa18   :  { %v3643_v33 = vmax.f32 %v3639_v50, 1e-16 }
 0xa19   :  { %v3642_v58 = vpop.xlane.xlu0 %3641  ;;  %v3636_v63 = vpop.xlane.xlu1 %3635 }
 0xa1a   :  { %4875 = vrsqrt.f32 %v3643_v33  ;;  %v3654_v17 = vmax.f32 %v3642_v58, 1e-16  ;;  %vm3650_vm7 = vweird.f32 %v3643_v33 }
 0xa1c   :  { %4877 = vrsqrt.f32 %v3654_v17  ;;  %vm3661_vm9 = vweird.f32 %v3654_v17 }
 0xa20   :  { %v4876_v56 = vpop.eup %4875 }
 0xa21   :  { %v3645_v49 = vmul.f32 %v4876_v56, %v3643_v33  ;;  %vm3651_vm5 = vweird.f32 %v4876_v56 }
 0xa22   :  { %v4878_v18 = vpop.eup %4877  ;;  %vm3652_vm8 = vmor %vm3650_vm7, %vm3651_vm5 }
 0xa23   :  { %v3646_v2 = vmul.f32 %v4876_v56, %v3645_v49  ;;  %v3656_v15 = vmul.f32 %v4878_v18, %v3654_v17  ;;  %vm3662_vm6 = vweird.f32 %v4878_v18 }
 0xa24   :  { %vm3663_vm10 = vmor %vm3661_vm9, %vm3662_vm6 }
 0xa25   :  { %v3647_v31 = vmul.f32 0.5, %v3646_v2  ;;  %v3657_v48 = vmul.f32 %v4878_v18, %v3656_v15 }
 0xa27   :  { %v3648_v24 = vsub.f32 1.5, %v3647_v31  ;;  %v3658_v26 = vmul.f32 0.5, %v3657_v48 }
 0xa29   :  { %v3659_v41 = vsub.f32 1.5, %v3658_v26  ;;  %v3649_v16 = vmul.f32 %v4876_v56, %v3648_v24 }
 0xa2b   :  { %v3660_v51 = vmul.f32 %v4878_v18, %v3659_v41  ;;  %v3653_v6 = vsel %vm3652_vm8, %v4876_v56, %v3649_v16 }
 0xa2d   :  { %v3664_v9 = vsel %vm3663_vm10, %v4878_v18, %v3660_v51 }
 0xa2e   :  { %v3665_v30 = vmul.f32 %v3664_v9, %v3653_v6 }
 0xa30   :  { %v3666_v46 = vmul.f32 %v3665_v30, %v3636_v63 }
 0xa32   :  { %3667 = vst [vmem:[%s6916_s28] sm:$0xff] %v3666_v46 }
 0xa33   :  { %3676 = vsyncpa [#allocation3], 1 }
 0xa34   :  { %3677 = vsyncpa [#allocation5], 1 }
 0xa35   :  { %3678 = vsyncpa [#allocation8], 1 }
 0xa36   :  { %3679 = vsyncpa [#allocation11], 1 }
 0xa37   :  { %3680 = vsyncpa [#allocation14], 1 }
 0xa38   :  { %3681 = vsyncpa [#allocation17], 1 }
 0xa39   :  { %3682 = vsyncpa [#allocation20], 1 }

</bundles_post_ra>
